<compile_context>
chip_gen: v5e
topology: v5e:2x2
jax: 0.10.0
libtpu: 0.0.40
codegen_flags: <defaults>
</compile_context>

<pallas_src>
import numpy as np
import jax
import jax.numpy as jnp
from jax.experimental import pallas as pl
from jax.experimental.pallas import tpu as pltpu


def _encoder_kernel(y0_ref, w_l_ref, b_l_ref, w_gl_ref, w_gg_ref, b_g_ref,
                    w_out_ref, b_out_ref, out_ref):
    bt = out_ref.shape[1]            # batch elements in this tile
    m = y0_ref.shape[1]              # rows = bt * n
    n = m // bt                      # points per batch element
    num_layers = w_l_ref.shape[0]
    h = w_l_ref.shape[2]
    o = w_out_ref.shape[2]

    y = y0_ref[0]                                          # (M, H) bf16, post conv_in+ReLU
    out_acc = jnp.zeros((m, o), jnp.float32)               # conv_out accumulator

    for i in range(num_layers):      # static unroll: num_layers is compile-time
        # layers[i] + ReLU  (bf16 MXU, f32 accumulate/elementwise)
        yl = jnp.dot(y, w_l_ref[i], preferred_element_type=jnp.float32) + b_l_ref[i]
        yl = jnp.maximum(yl, 0.0)                          # (M, H) f32
        # per-batch global max-pool over the point axis (sublane regroup only)
        g = jnp.max(yl.reshape(bt, n, h), axis=1)          # (Bt, H) f32
        # global_layers[i] on concat([y, broadcast(g)], channels)
        #   == yl @ W_local + (g @ W_global + b)  -- global part is a per-batch bias
        b_eff = (jnp.dot(g.astype(jnp.bfloat16), w_gg_ref[i],
                         preferred_element_type=jnp.float32) + b_g_ref[i])   # (Bt, H)
        yg = (jnp.dot(yl.astype(jnp.bfloat16), w_gl_ref[i],
                      preferred_element_type=jnp.float32)
              .reshape(bt, n, h) + b_eff.reshape(bt, 1, h))
        yg = jnp.maximum(yg, 0.0).reshape(m, h)            # (M, H) f32
        y = yg.astype(jnp.bfloat16)
        # conv_out contribution for this stage (no feats list / concat materialisation)
        out_acc = out_acc + jnp.dot(y, w_out_ref[i],
                                    preferred_element_type=jnp.float32)      # (M, O)

    # bias is constant over points -> fold it after the per-batch max
    out_ref[0] = jnp.max(out_acc.reshape(bt, n, o), axis=1) + b_out_ref[...]  # (Bt, O)


def _vmem_budget_bytes():
    """Generation-aware scoped-VMEM budget (v7x: ~48 MiB, v5e/v6e: up to ~100 MiB)."""
    try:
        cap = int(getattr(pltpu.get_tpu_info(), "vmem_capacity_bytes", 0))
    except Exception:
        cap = 0
    if cap <= 0:
        cap = 128 * 1024 * 1024
    return max(32 * 1024 * 1024, min(cap - 16 * 1024 * 1024, 100 * 1024 * 1024))


def _has_two_tensorcores():
    try:
        kind = jax.devices()[0].device_kind.lower()
        return ("v7" in kind) or ("7x" in kind)
    except Exception:
        return False


def multi_stage_pointnet_encoder(x, params, *, batch_tile=None):
    """x: (B, N, 3) float32 point cloud. Returns (B, out_channels)."""
    B, N, _ = x.shape
    L, H, _ = params["w_l"].shape
    O = params["w_out"].shape[1]
    O_pad = ((O + 127) // 128) * 128            # lane-dense final matmul / store

    # --- conv_in + ReLU as a cheap XLA prologue (dense (M, H) kernel input) ---
    y0 = jax.nn.relu(jnp.einsum("bnc,hc->bnh", x, params["w_in"])
                     + params["b_in"][0])                               # (B, N, H) f32

    # --- host-side weight prep: (C_in, C_out) layout, bf16 matmul operands ---
    w_l_t = jnp.transpose(params["w_l"], (0, 2, 1)).astype(jnp.bfloat16)   # (L, H, H)
    w_gl_t = jnp.transpose(params["w_gl"], (0, 2, 1)).astype(jnp.bfloat16)  # (L, H, H)
    w_gg_t = jnp.transpose(params["w_gg"], (0, 2, 1)).astype(jnp.bfloat16)  # (L, H, H)
    w_out_t = jnp.transpose(params["w_out"], (0, 2, 1))                     # (L, H, O)
    w_out_t = jnp.pad(w_out_t, ((0, 0), (0, 0), (0, O_pad - O))).astype(jnp.bfloat16)
    b_out_p = jnp.pad(params["b_out"], ((0, 0), (0, O_pad - O)))            # (1, O_pad) f32
    b_l, b_g = params["b_l"], params["b_g"]                                 # f32 biases

    # --- generation-aware batch tiling ---
    budget = _vmem_budget_bytes()
    per_row = (2 * 2 * H            # double-buffered bf16 input block
               + 6 * 4 * H          # live f32/bf16 activation copies per stage
               + 3 * 4 * O_pad)     # out_acc + per-stage dot result (+slack)
    max_rows = min(16384, max(8, int(0.75 * budget) // per_row))
    if batch_tile is None:
        cands = [t for t in range(1, B + 1) if B % t == 0 and t * N <= max_rows] or [1]
        if _has_two_tensorcores():
            even = [t for t in cands if (B // t) % 2 == 0]  # balanced grid for 2 TCs
            batch_tile = max(even) if even else max(cands)
        else:
            batch_tile = max(cands)
    Bt = batch_tile
    assert B % Bt == 0, (B, Bt)
    G = B // Bt
    M = Bt * N
    # TODO(synk): for very large N (Bt=1 with M=N exceeding max_rows) add a grid axis over
    # point chunks with a two-pass-per-stage running max; current code assumes one batch
    # tile's activations fit in VMEM.

    y0_g = y0.reshape(G, M, H).astype(jnp.bfloat16)
    weight_args = (w_l_t, b_l, w_gl_t, w_gg_t, b_g, w_out_t, b_out_p)

    def build(single_buffer_weights):
        def wspec(a):
            ndim = a.ndim
            if single_buffer_weights:
                # constant index_map -> double-buffering these is pure VMEM waste
                return pl.BlockSpec(a.shape, lambda g, _n=ndim: (0,) * _n,
                                    pipeline_mode=pl.Buffered(1))
            return pl.BlockSpec(a.shape, lambda g, _n=ndim: (0,) * _n)

        return pl.pallas_call(
            _encoder_kernel,
            out_shape=jax.ShapeDtypeStruct((G, Bt, O_pad), jnp.float32),
            grid=(G,),
            in_specs=[pl.BlockSpec((1, M, H), lambda g: (g, 0, 0))]
                     + [wspec(a) for a in weight_args],
            out_specs=pl.BlockSpec((1, Bt, O_pad), lambda g: (g, 0, 0)),
            compiler_params=pltpu.CompilerParams(
                dimension_semantics=("parallel",),
                vmem_limit_bytes=int(budget)),
        )

    try:
        out = build(True)(y0_g, *weight_args)
        out = jax.block_until_ready(out)
    except Exception:
        # pipeline_mode=pl.Buffered(1) unsupported on this jax version -> default specs
        out = build(False)(y0_g, *weight_args)

    return out.reshape(B, O_pad)[:, :O]


def make_params(key, h_dim, out_channels, num_layers):
    """Deterministic synthetic weights with PyTorch-Conv1d-like shapes (k=1 squeezed)."""
    ks = jax.random.split(key, 10)

    def unif(k, shape, fan_in):
        bound = 1.0 / np.sqrt(fan_in)
        return jax.random.uniform(k, shape, jnp.float32, -bound, bound)

    H, O, L = h_dim, out_channels, num_layers
    return {
        # conv_in: Conv1d(3, H, 1)
        "w_in": unif(ks[0], (H, 3), 3),
        "b_in": unif(ks[1], (1, H), 3),
        # layers[i]: Conv1d(H, H, 1)
        "w_l": unif(ks[2], (L, H, H), H),
        "b_l": unif(ks[3], (L, 1, H), H),
        # global_layers[i]: Conv1d(2H, H, 1), split into local / global halves
        "w_gl": unif(ks[4], (L, H, H), 2 * H),
        "w_gg": unif(ks[5], (L, H, H), 2 * H),
        "b_g": unif(ks[6], (L, 1, H), 2 * H),
        # conv_out: Conv1d(H*L, O, 1), split per feat_list entry
        "w_out": unif(ks[7], (L, O, H), H * L),
        "b_out": unif(ks[8], (1, O), H * L),
    }


def reference(x, p):
    """Pure-JAX f32 port of the PyTorch forward (NCL layout) for validation."""
    L = p["w_l"].shape[0]

    def conv(y, w, b):  # y: (B, C_in, N), w: (C_out, C_in), b: (C_out,)
        return jnp.einsum("oc,bcn->bon", w, y) + b[None, :, None]

    y = jnp.transpose(x, (0, 2, 1))  # (B, 3, N)
    y = jax.nn.relu(conv(y, p["w_in"], p["b_in"][0]))
    feats = []
    for i in range(L):
        y = jax.nn.relu(conv(y, p["w_l"][i], p["b_l"][i, 0]))
        g = jnp.max(y, axis=-1, keepdims=True)
        y = jnp.concatenate([y, jnp.broadcast_to(g, y.shape)], axis=1)
        w_g = jnp.concatenate([p["w_gl"][i], p["w_gg"][i]], axis=1)
        y = jax.nn.relu(conv(y, w_g, p["b_g"][i, 0]))
        feats.append(y)
    yc = jnp.concatenate(feats, axis=1)
    w_out = jnp.concatenate([p["w_out"][i] for i in range(L)], axis=1)
    out = conv(yc, w_out, p["b_out"][0])
    return jnp.max(out, axis=-1)


if __name__ == "__main__":
    B, N = 8, 16          # batch, num points (N multiple of 8 for clean sublane grouping)
    H, O, L = 32, 32, 4   # h_dim, out_channels, num_layers

    key = jax.random.PRNGKey(0)
    kx, kp = jax.random.split(key)
    x = jax.random.normal(kx, (B, N, 3), jnp.float32)
    params = make_params(kp, H, O, L)

    out = multi_stage_pointnet_encoder(x, params)
    out = jax.block_until_ready(out)

    ref = reference(x, params)
    assert out.shape == (B, O), out.shape
    # bf16 matmuls (f32 accumulation) -> relaxed tolerance vs. the f32 reference
    assert np.allclose(np.asarray(out), np.asarray(ref), rtol=5e-2, atol=5e-2), (
        "mismatch vs pure-JAX reference")

    print("KERNEL_OK")
</pallas_src>

<mosaic_0001>
module attributes {stable_mosaic.version = 11 : i64} {
  func.func @_encoder_kernel(%arg0: i32, %arg1: memref<1x128x32xbf16, #tpu.memory_space<vmem>>, %arg2: memref<4x32x32xbf16, #tpu.memory_space<vmem>>, %arg3: memref<4x1x32xf32, #tpu.memory_space<vmem>>, %arg4: memref<4x32x32xbf16, #tpu.memory_space<vmem>>, %arg5: memref<4x32x32xbf16, #tpu.memory_space<vmem>>, %arg6: memref<4x1x32xf32, #tpu.memory_space<vmem>>, %arg7: memref<4x32x128xbf16, #tpu.memory_space<vmem>>, %arg8: memref<1x128xf32, #tpu.memory_space<vmem>>, %arg9: memref<1x8x128xf32, #tpu.memory_space<vmem>>) attributes {dimension_semantics = [#tpu.dimension_semantics<parallel>], iteration_bounds = array<i64: 1>, scalar_prefetch = 0 : i64, scratch_operands = 0 : i64, tpu.core_type = #tpu.core_type<tc>, window_params = [{transform_indices = @transform_0, window_bounds = array<i64: 1, 128, 32>}, {pipeline_mode = #tpu.pipeline_mode<synchronous>, transform_indices = @transform_1, window_bounds = array<i64: 4, 32, 32>}, {pipeline_mode = #tpu.pipeline_mode<synchronous>, transform_indices = @transform_2, window_bounds = array<i64: 4, 1, 32>}, {pipeline_mode = #tpu.pipeline_mode<synchronous>, transform_indices = @transform_3, window_bounds = array<i64: 4, 32, 32>}, {pipeline_mode = #tpu.pipeline_mode<synchronous>, transform_indices = @transform_4, window_bounds = array<i64: 4, 32, 32>}, {pipeline_mode = #tpu.pipeline_mode<synchronous>, transform_indices = @transform_5, window_bounds = array<i64: 4, 1, 32>}, {pipeline_mode = #tpu.pipeline_mode<synchronous>, transform_indices = @transform_6, window_bounds = array<i64: 4, 32, 128>}, {pipeline_mode = #tpu.pipeline_mode<synchronous>, transform_indices = @transform_7, window_bounds = array<i64: 1, 128>}, {transform_indices = @transform_8, window_bounds = array<i64: 1, 8, 128>}]} {
    %c0 = arith.constant 0 : index
    %c0_0 = arith.constant 0 : index
    %c0_1 = arith.constant 0 : index
    %0 = vector.load %arg1[%c0, %c0_0, %c0_1] : memref<1x128x32xbf16, #tpu.memory_space<vmem>>, vector<1x128x32xbf16>
    %1 = vector.shape_cast %0 : vector<1x128x32xbf16> to vector<128x32xbf16>
    %cst = arith.constant 0.000000e+00 : f32
    %2 = vector.broadcast %cst : f32 to vector<128x128xf32>
    %c0_2 = arith.constant 0 : index
    %c0_3 = arith.constant 0 : index
    %c0_4 = arith.constant 0 : index
    %3 = vector.load %arg2[%c0_2, %c0_3, %c0_4] : memref<4x32x32xbf16, #tpu.memory_space<vmem>>, vector<1x32x32xbf16>
    %4 = vector.shape_cast %3 : vector<1x32x32xbf16> to vector<32x32xbf16>
    %cst_5 = arith.constant dense<0.000000e+00> : vector<128x32xf32>
    %5 = tpu.matmul %1, %4, %cst_5 {dimension_numbers = #tpu.dot_dimension_numbers<[1], [0], [0], [1], [0, 0, 1, 1], [], []>} : vector<128x32xbf16>, vector<32x32xbf16>, vector<128x32xf32> -> vector<128x32xf32>
    %c0_6 = arith.constant 0 : index
    %c0_7 = arith.constant 0 : index
    %c0_8 = arith.constant 0 : index
    %6 = vector.load %arg3[%c0_6, %c0_7, %c0_8] : memref<4x1x32xf32, #tpu.memory_space<vmem>>, vector<1x1x32xf32>
    %7 = vector.shape_cast %6 : vector<1x1x32xf32> to vector<1x32xf32>
    %8 = vector.broadcast %7 : vector<1x32xf32> to vector<128x32xf32>
    %9 = arith.addf %5, %8 : vector<128x32xf32>
    %cst_9 = arith.constant 0.000000e+00 : f32
    %10 = vector.broadcast %cst_9 : f32 to vector<128x32xf32>
    %11 = arith.maximumf %9, %10 : vector<128x32xf32>
    %12 = vector.shape_cast %11 : vector<128x32xf32> to vector<8x16x32xf32>
    %cst_10 = arith.constant dense<0xFF800000> : vector<8x32xf32>
    %13 = vector.multi_reduction <maximumf>, %12, %cst_10 [1] : vector<8x16x32xf32> to vector<8x32xf32>
    %14 = arith.truncf %13 : vector<8x32xf32> to vector<8x32xbf16>
    %c0_11 = arith.constant 0 : index
    %c0_12 = arith.constant 0 : index
    %c0_13 = arith.constant 0 : index
    %15 = vector.load %arg5[%c0_11, %c0_12, %c0_13] : memref<4x32x32xbf16, #tpu.memory_space<vmem>>, vector<1x32x32xbf16>
    %16 = vector.shape_cast %15 : vector<1x32x32xbf16> to vector<32x32xbf16>
    %cst_14 = arith.constant dense<0.000000e+00> : vector<8x32xf32>
    %17 = tpu.matmul %14, %16, %cst_14 {dimension_numbers = #tpu.dot_dimension_numbers<[1], [0], [0], [1], [0, 0, 1, 1], [], []>} : vector<8x32xbf16>, vector<32x32xbf16>, vector<8x32xf32> -> vector<8x32xf32>
    %c0_15 = arith.constant 0 : index
    %c0_16 = arith.constant 0 : index
    %c0_17 = arith.constant 0 : index
    %18 = vector.load %arg6[%c0_15, %c0_16, %c0_17] : memref<4x1x32xf32, #tpu.memory_space<vmem>>, vector<1x1x32xf32>
    %19 = vector.shape_cast %18 : vector<1x1x32xf32> to vector<1x32xf32>
    %20 = vector.broadcast %19 : vector<1x32xf32> to vector<8x32xf32>
    %21 = arith.addf %17, %20 : vector<8x32xf32>
    %22 = arith.truncf %11 : vector<128x32xf32> to vector<128x32xbf16>
    %c0_18 = arith.constant 0 : index
    %c0_19 = arith.constant 0 : index
    %c0_20 = arith.constant 0 : index
    %23 = vector.load %arg4[%c0_18, %c0_19, %c0_20] : memref<4x32x32xbf16, #tpu.memory_space<vmem>>, vector<1x32x32xbf16>
    %24 = vector.shape_cast %23 : vector<1x32x32xbf16> to vector<32x32xbf16>
    %cst_21 = arith.constant dense<0.000000e+00> : vector<128x32xf32>
    %25 = tpu.matmul %22, %24, %cst_21 {dimension_numbers = #tpu.dot_dimension_numbers<[1], [0], [0], [1], [0, 0, 1, 1], [], []>} : vector<128x32xbf16>, vector<32x32xbf16>, vector<128x32xf32> -> vector<128x32xf32>
    %26 = vector.shape_cast %25 : vector<128x32xf32> to vector<8x16x32xf32>
    %27 = vector.shape_cast %21 : vector<8x32xf32> to vector<8x1x32xf32>
    %28 = vector.broadcast %27 : vector<8x1x32xf32> to vector<8x16x32xf32>
    %29 = arith.addf %26, %28 : vector<8x16x32xf32>
    %cst_22 = arith.constant 0.000000e+00 : f32
    %30 = vector.broadcast %cst_22 : f32 to vector<8x16x32xf32>
    %31 = arith.maximumf %29, %30 : vector<8x16x32xf32>
    %32 = vector.shape_cast %31 : vector<8x16x32xf32> to vector<128x32xf32>
    %33 = arith.truncf %32 : vector<128x32xf32> to vector<128x32xbf16>
    %c0_23 = arith.constant 0 : index
    %c0_24 = arith.constant 0 : index
    %c0_25 = arith.constant 0 : index
    %34 = vector.load %arg7[%c0_23, %c0_24, %c0_25] : memref<4x32x128xbf16, #tpu.memory_space<vmem>>, vector<1x32x128xbf16>
    %35 = vector.shape_cast %34 : vector<1x32x128xbf16> to vector<32x128xbf16>
    %cst_26 = arith.constant dense<0.000000e+00> : vector<128x128xf32>
    %36 = tpu.matmul %33, %35, %cst_26 {dimension_numbers = #tpu.dot_dimension_numbers<[1], [0], [0], [1], [0, 0, 1, 1], [], []>} : vector<128x32xbf16>, vector<32x128xbf16>, vector<128x128xf32> -> vector<128x128xf32>
    %37 = arith.addf %2, %36 : vector<128x128xf32>
    %c1 = arith.constant 1 : index
    %c0_27 = arith.constant 0 : index
    %c0_28 = arith.constant 0 : index
    %38 = vector.load %arg2[%c1, %c0_27, %c0_28] : memref<4x32x32xbf16, #tpu.memory_space<vmem>>, vector<1x32x32xbf16>
    %39 = vector.shape_cast %38 : vector<1x32x32xbf16> to vector<32x32xbf16>
    %cst_29 = arith.constant dense<0.000000e+00> : vector<128x32xf32>
    %40 = tpu.matmul %33, %39, %cst_29 {dimension_numbers = #tpu.dot_dimension_numbers<[1], [0], [0], [1], [0, 0, 1, 1], [], []>} : vector<128x32xbf16>, vector<32x32xbf16>, vector<128x32xf32> -> vector<128x32xf32>
    %c1_30 = arith.constant 1 : index
    %c0_31 = arith.constant 0 : index
    %c0_32 = arith.constant 0 : index
    %41 = vector.load %arg3[%c1_30, %c0_31, %c0_32] : memref<4x1x32xf32, #tpu.memory_space<vmem>>, vector<1x1x32xf32>
    %42 = vector.shape_cast %41 : vector<1x1x32xf32> to vector<1x32xf32>
    %43 = vector.broadcast %42 : vector<1x32xf32> to vector<128x32xf32>
    %44 = arith.addf %40, %43 : vector<128x32xf32>
    %cst_33 = arith.constant 0.000000e+00 : f32
    %45 = vector.broadcast %cst_33 : f32 to vector<128x32xf32>
    %46 = arith.maximumf %44, %45 : vector<128x32xf32>
    %47 = vector.shape_cast %46 : vector<128x32xf32> to vector<8x16x32xf32>
    %cst_34 = arith.constant dense<0xFF800000> : vector<8x32xf32>
    %48 = vector.multi_reduction <maximumf>, %47, %cst_34 [1] : vector<8x16x32xf32> to vector<8x32xf32>
    %49 = arith.truncf %48 : vector<8x32xf32> to vector<8x32xbf16>
    %c1_35 = arith.constant 1 : index
    %c0_36 = arith.constant 0 : index
    %c0_37 = arith.constant 0 : index
    %50 = vector.load %arg5[%c1_35, %c0_36, %c0_37] : memref<4x32x32xbf16, #tpu.memory_space<vmem>>, vector<1x32x32xbf16>
    %51 = vector.shape_cast %50 : vector<1x32x32xbf16> to vector<32x32xbf16>
    %cst_38 = arith.constant dense<0.000000e+00> : vector<8x32xf32>
    %52 = tpu.matmul %49, %51, %cst_38 {dimension_numbers = #tpu.dot_dimension_numbers<[1], [0], [0], [1], [0, 0, 1, 1], [], []>} : vector<8x32xbf16>, vector<32x32xbf16>, vector<8x32xf32> -> vector<8x32xf32>
    %c1_39 = arith.constant 1 : index
    %c0_40 = arith.constant 0 : index
    %c0_41 = arith.constant 0 : index
    %53 = vector.load %arg6[%c1_39, %c0_40, %c0_41] : memref<4x1x32xf32, #tpu.memory_space<vmem>>, vector<1x1x32xf32>
    %54 = vector.shape_cast %53 : vector<1x1x32xf32> to vector<1x32xf32>
    %55 = vector.broadcast %54 : vector<1x32xf32> to vector<8x32xf32>
    %56 = arith.addf %52, %55 : vector<8x32xf32>
    %57 = arith.truncf %46 : vector<128x32xf32> to vector<128x32xbf16>
    %c1_42 = arith.constant 1 : index
    %c0_43 = arith.constant 0 : index
    %c0_44 = arith.constant 0 : index
    %58 = vector.load %arg4[%c1_42, %c0_43, %c0_44] : memref<4x32x32xbf16, #tpu.memory_space<vmem>>, vector<1x32x32xbf16>
    %59 = vector.shape_cast %58 : vector<1x32x32xbf16> to vector<32x32xbf16>
    %cst_45 = arith.constant dense<0.000000e+00> : vector<128x32xf32>
    %60 = tpu.matmul %57, %59, %cst_45 {dimension_numbers = #tpu.dot_dimension_numbers<[1], [0], [0], [1], [0, 0, 1, 1], [], []>} : vector<128x32xbf16>, vector<32x32xbf16>, vector<128x32xf32> -> vector<128x32xf32>
    %61 = vector.shape_cast %60 : vector<128x32xf32> to vector<8x16x32xf32>
    %62 = vector.shape_cast %56 : vector<8x32xf32> to vector<8x1x32xf32>
    %63 = vector.broadcast %62 : vector<8x1x32xf32> to vector<8x16x32xf32>
    %64 = arith.addf %61, %63 : vector<8x16x32xf32>
    %cst_46 = arith.constant 0.000000e+00 : f32
    %65 = vector.broadcast %cst_46 : f32 to vector<8x16x32xf32>
    %66 = arith.maximumf %64, %65 : vector<8x16x32xf32>
    %67 = vector.shape_cast %66 : vector<8x16x32xf32> to vector<128x32xf32>
    %68 = arith.truncf %67 : vector<128x32xf32> to vector<128x32xbf16>
    %c1_47 = arith.constant 1 : index
    %c0_48 = arith.constant 0 : index
    %c0_49 = arith.constant 0 : index
    %69 = vector.load %arg7[%c1_47, %c0_48, %c0_49] : memref<4x32x128xbf16, #tpu.memory_space<vmem>>, vector<1x32x128xbf16>
    %70 = vector.shape_cast %69 : vector<1x32x128xbf16> to vector<32x128xbf16>
    %cst_50 = arith.constant dense<0.000000e+00> : vector<128x128xf32>
    %71 = tpu.matmul %68, %70, %cst_50 {dimension_numbers = #tpu.dot_dimension_numbers<[1], [0], [0], [1], [0, 0, 1, 1], [], []>} : vector<128x32xbf16>, vector<32x128xbf16>, vector<128x128xf32> -> vector<128x128xf32>
    %72 = arith.addf %37, %71 : vector<128x128xf32>
    %c2 = arith.constant 2 : index
    %c0_51 = arith.constant 0 : index
    %c0_52 = arith.constant 0 : index
    %73 = vector.load %arg2[%c2, %c0_51, %c0_52] : memref<4x32x32xbf16, #tpu.memory_space<vmem>>, vector<1x32x32xbf16>
    %74 = vector.shape_cast %73 : vector<1x32x32xbf16> to vector<32x32xbf16>
    %cst_53 = arith.constant dense<0.000000e+00> : vector<128x32xf32>
    %75 = tpu.matmul %68, %74, %cst_53 {dimension_numbers = #tpu.dot_dimension_numbers<[1], [0], [0], [1], [0, 0, 1, 1], [], []>} : vector<128x32xbf16>, vector<32x32xbf16>, vector<128x32xf32> -> vector<128x32xf32>
    %c2_54 = arith.constant 2 : index
    %c0_55 = arith.constant 0 : index
    %c0_56 = arith.constant 0 : index
    %76 = vector.load %arg3[%c2_54, %c0_55, %c0_56] : memref<4x1x32xf32, #tpu.memory_space<vmem>>, vector<1x1x32xf32>
    %77 = vector.shape_cast %76 : vector<1x1x32xf32> to vector<1x32xf32>
    %78 = vector.broadcast %77 : vector<1x32xf32> to vector<128x32xf32>
    %79 = arith.addf %75, %78 : vector<128x32xf32>
    %cst_57 = arith.constant 0.000000e+00 : f32
    %80 = vector.broadcast %cst_57 : f32 to vector<128x32xf32>
    %81 = arith.maximumf %79, %80 : vector<128x32xf32>
    %82 = vector.shape_cast %81 : vector<128x32xf32> to vector<8x16x32xf32>
    %cst_58 = arith.constant dense<0xFF800000> : vector<8x32xf32>
    %83 = vector.multi_reduction <maximumf>, %82, %cst_58 [1] : vector<8x16x32xf32> to vector<8x32xf32>
    %84 = arith.truncf %83 : vector<8x32xf32> to vector<8x32xbf16>
    %c2_59 = arith.constant 2 : index
    %c0_60 = arith.constant 0 : index
    %c0_61 = arith.constant 0 : index
    %85 = vector.load %arg5[%c2_59, %c0_60, %c0_61] : memref<4x32x32xbf16, #tpu.memory_space<vmem>>, vector<1x32x32xbf16>
    %86 = vector.shape_cast %85 : vector<1x32x32xbf16> to vector<32x32xbf16>
    %cst_62 = arith.constant dense<0.000000e+00> : vector<8x32xf32>
    %87 = tpu.matmul %84, %86, %cst_62 {dimension_numbers = #tpu.dot_dimension_numbers<[1], [0], [0], [1], [0, 0, 1, 1], [], []>} : vector<8x32xbf16>, vector<32x32xbf16>, vector<8x32xf32> -> vector<8x32xf32>
    %c2_63 = arith.constant 2 : index
    %c0_64 = arith.constant 0 : index
    %c0_65 = arith.constant 0 : index
    %88 = vector.load %arg6[%c2_63, %c0_64, %c0_65] : memref<4x1x32xf32, #tpu.memory_space<vmem>>, vector<1x1x32xf32>
    %89 = vector.shape_cast %88 : vector<1x1x32xf32> to vector<1x32xf32>
    %90 = vector.broadcast %89 : vector<1x32xf32> to vector<8x32xf32>
    %91 = arith.addf %87, %90 : vector<8x32xf32>
    %92 = arith.truncf %81 : vector<128x32xf32> to vector<128x32xbf16>
    %c2_66 = arith.constant 2 : index
    %c0_67 = arith.constant 0 : index
    %c0_68 = arith.constant 0 : index
    %93 = vector.load %arg4[%c2_66, %c0_67, %c0_68] : memref<4x32x32xbf16, #tpu.memory_space<vmem>>, vector<1x32x32xbf16>
    %94 = vector.shape_cast %93 : vector<1x32x32xbf16> to vector<32x32xbf16>
    %cst_69 = arith.constant dense<0.000000e+00> : vector<128x32xf32>
    %95 = tpu.matmul %92, %94, %cst_69 {dimension_numbers = #tpu.dot_dimension_numbers<[1], [0], [0], [1], [0, 0, 1, 1], [], []>} : vector<128x32xbf16>, vector<32x32xbf16>, vector<128x32xf32> -> vector<128x32xf32>
    %96 = vector.shape_cast %95 : vector<128x32xf32> to vector<8x16x32xf32>
    %97 = vector.shape_cast %91 : vector<8x32xf32> to vector<8x1x32xf32>
    %98 = vector.broadcast %97 : vector<8x1x32xf32> to vector<8x16x32xf32>
    %99 = arith.addf %96, %98 : vector<8x16x32xf32>
    %cst_70 = arith.constant 0.000000e+00 : f32
    %100 = vector.broadcast %cst_70 : f32 to vector<8x16x32xf32>
    %101 = arith.maximumf %99, %100 : vector<8x16x32xf32>
    %102 = vector.shape_cast %101 : vector<8x16x32xf32> to vector<128x32xf32>
    %103 = arith.truncf %102 : vector<128x32xf32> to vector<128x32xbf16>
    %c2_71 = arith.constant 2 : index
    %c0_72 = arith.constant 0 : index
    %c0_73 = arith.constant 0 : index
    %104 = vector.load %arg7[%c2_71, %c0_72, %c0_73] : memref<4x32x128xbf16, #tpu.memory_space<vmem>>, vector<1x32x128xbf16>
    %105 = vector.shape_cast %104 : vector<1x32x128xbf16> to vector<32x128xbf16>
    %cst_74 = arith.constant dense<0.000000e+00> : vector<128x128xf32>
    %106 = tpu.matmul %103, %105, %cst_74 {dimension_numbers = #tpu.dot_dimension_numbers<[1], [0], [0], [1], [0, 0, 1, 1], [], []>} : vector<128x32xbf16>, vector<32x128xbf16>, vector<128x128xf32> -> vector<128x128xf32>
    %107 = arith.addf %72, %106 : vector<128x128xf32>
    %c3 = arith.constant 3 : index
    %c0_75 = arith.constant 0 : index
    %c0_76 = arith.constant 0 : index
    %108 = vector.load %arg2[%c3, %c0_75, %c0_76] : memref<4x32x32xbf16, #tpu.memory_space<vmem>>, vector<1x32x32xbf16>
    %109 = vector.shape_cast %108 : vector<1x32x32xbf16> to vector<32x32xbf16>
    %cst_77 = arith.constant dense<0.000000e+00> : vector<128x32xf32>
    %110 = tpu.matmul %103, %109, %cst_77 {dimension_numbers = #tpu.dot_dimension_numbers<[1], [0], [0], [1], [0, 0, 1, 1], [], []>} : vector<128x32xbf16>, vector<32x32xbf16>, vector<128x32xf32> -> vector<128x32xf32>
    %c3_78 = arith.constant 3 : index
    %c0_79 = arith.constant 0 : index
    %c0_80 = arith.constant 0 : index
    %111 = vector.load %arg3[%c3_78, %c0_79, %c0_80] : memref<4x1x32xf32, #tpu.memory_space<vmem>>, vector<1x1x32xf32>
    %112 = vector.shape_cast %111 : vector<1x1x32xf32> to vector<1x32xf32>
    %113 = vector.broadcast %112 : vector<1x32xf32> to vector<128x32xf32>
    %114 = arith.addf %110, %113 : vector<128x32xf32>
    %cst_81 = arith.constant 0.000000e+00 : f32
    %115 = vector.broadcast %cst_81 : f32 to vector<128x32xf32>
    %116 = arith.maximumf %114, %115 : vector<128x32xf32>
    %117 = vector.shape_cast %116 : vector<128x32xf32> to vector<8x16x32xf32>
    %cst_82 = arith.constant dense<0xFF800000> : vector<8x32xf32>
    %118 = vector.multi_reduction <maximumf>, %117, %cst_82 [1] : vector<8x16x32xf32> to vector<8x32xf32>
    %119 = arith.truncf %118 : vector<8x32xf32> to vector<8x32xbf16>
    %c3_83 = arith.constant 3 : index
    %c0_84 = arith.constant 0 : index
    %c0_85 = arith.constant 0 : index
    %120 = vector.load %arg5[%c3_83, %c0_84, %c0_85] : memref<4x32x32xbf16, #tpu.memory_space<vmem>>, vector<1x32x32xbf16>
    %121 = vector.shape_cast %120 : vector<1x32x32xbf16> to vector<32x32xbf16>
    %cst_86 = arith.constant dense<0.000000e+00> : vector<8x32xf32>
    %122 = tpu.matmul %119, %121, %cst_86 {dimension_numbers = #tpu.dot_dimension_numbers<[1], [0], [0], [1], [0, 0, 1, 1], [], []>} : vector<8x32xbf16>, vector<32x32xbf16>, vector<8x32xf32> -> vector<8x32xf32>
    %c3_87 = arith.constant 3 : index
    %c0_88 = arith.constant 0 : index
    %c0_89 = arith.constant 0 : index
    %123 = vector.load %arg6[%c3_87, %c0_88, %c0_89] : memref<4x1x32xf32, #tpu.memory_space<vmem>>, vector<1x1x32xf32>
    %124 = vector.shape_cast %123 : vector<1x1x32xf32> to vector<1x32xf32>
    %125 = vector.broadcast %124 : vector<1x32xf32> to vector<8x32xf32>
    %126 = arith.addf %122, %125 : vector<8x32xf32>
    %127 = arith.truncf %116 : vector<128x32xf32> to vector<128x32xbf16>
    %c3_90 = arith.constant 3 : index
    %c0_91 = arith.constant 0 : index
    %c0_92 = arith.constant 0 : index
    %128 = vector.load %arg4[%c3_90, %c0_91, %c0_92] : memref<4x32x32xbf16, #tpu.memory_space<vmem>>, vector<1x32x32xbf16>
    %129 = vector.shape_cast %128 : vector<1x32x32xbf16> to vector<32x32xbf16>
    %cst_93 = arith.constant dense<0.000000e+00> : vector<128x32xf32>
    %130 = tpu.matmul %127, %129, %cst_93 {dimension_numbers = #tpu.dot_dimension_numbers<[1], [0], [0], [1], [0, 0, 1, 1], [], []>} : vector<128x32xbf16>, vector<32x32xbf16>, vector<128x32xf32> -> vector<128x32xf32>
    %131 = vector.shape_cast %130 : vector<128x32xf32> to vector<8x16x32xf32>
    %132 = vector.shape_cast %126 : vector<8x32xf32> to vector<8x1x32xf32>
    %133 = vector.broadcast %132 : vector<8x1x32xf32> to vector<8x16x32xf32>
    %134 = arith.addf %131, %133 : vector<8x16x32xf32>
    %cst_94 = arith.constant 0.000000e+00 : f32
    %135 = vector.broadcast %cst_94 : f32 to vector<8x16x32xf32>
    %136 = arith.maximumf %134, %135 : vector<8x16x32xf32>
    %137 = vector.shape_cast %136 : vector<8x16x32xf32> to vector<128x32xf32>
    %138 = arith.truncf %137 : vector<128x32xf32> to vector<128x32xbf16>
    %c3_95 = arith.constant 3 : index
    %c0_96 = arith.constant 0 : index
    %c0_97 = arith.constant 0 : index
    %139 = vector.load %arg7[%c3_95, %c0_96, %c0_97] : memref<4x32x128xbf16, #tpu.memory_space<vmem>>, vector<1x32x128xbf16>
    %140 = vector.shape_cast %139 : vector<1x32x128xbf16> to vector<32x128xbf16>
    %cst_98 = arith.constant dense<0.000000e+00> : vector<128x128xf32>
    %141 = tpu.matmul %138, %140, %cst_98 {dimension_numbers = #tpu.dot_dimension_numbers<[1], [0], [0], [1], [0, 0, 1, 1], [], []>} : vector<128x32xbf16>, vector<32x128xbf16>, vector<128x128xf32> -> vector<128x128xf32>
    %142 = arith.addf %107, %141 : vector<128x128xf32>
    %143 = vector.shape_cast %142 : vector<128x128xf32> to vector<8x16x128xf32>
    %cst_99 = arith.constant dense<0xFF800000> : vector<8x128xf32>
    %144 = vector.multi_reduction <maximumf>, %143, %cst_99 [1] : vector<8x16x128xf32> to vector<8x128xf32>
    %c0_100 = arith.constant 0 : index
    %c0_101 = arith.constant 0 : index
    %145 = vector.load %arg8[%c0_100, %c0_101] : memref<1x128xf32, #tpu.memory_space<vmem>>, vector<1x128xf32>
    %146 = vector.broadcast %145 : vector<1x128xf32> to vector<8x128xf32>
    %147 = arith.addf %144, %146 : vector<8x128xf32>
    %c0_102 = arith.constant 0 : index
    %c0_103 = arith.constant 0 : index
    %c0_104 = arith.constant 0 : index
    %148 = vector.load %arg9[%c0_102, %c0_103, %c0_104] : memref<1x8x128xf32, #tpu.memory_space<vmem>>, vector<1x8x128xf32>
    %149 = vector.shape_cast %148 : vector<1x8x128xf32> to vector<8x128xf32>
    %150 = vector.shape_cast %147 : vector<8x128xf32> to vector<1x8x128xf32>
    tpu.vector_store %arg9[%c0_102, %c0_103, %c0_104], %150 {strides = array<i32>} : memref<1x8x128xf32, #tpu.memory_space<vmem>>, vector<1x8x128xf32>,
    return
  }
  func.func @transform_0(%arg0: i32) -> (i32, i32, i32) {
    %c0_i32 = arith.constant 0 : i32
    %c0_i32_0 = arith.constant 0 : i32
    %c0_i32_1 = arith.constant 0 : i32
    return %arg0, %c0_i32, %c0_i32_0 : i32, i32, i32
  }
  func.func @transform_1(%arg0: i32) -> (i32, i32, i32) {
    %c0_i32 = arith.constant 0 : i32
    %c0_i32_0 = arith.constant 0 : i32
    %c0_i32_1 = arith.constant 0 : i32
    %c0_i32_2 = arith.constant 0 : i32
    return %c0_i32, %c0_i32_0, %c0_i32_1 : i32, i32, i32
  }
  func.func @transform_2(%arg0: i32) -> (i32, i32, i32) {
    %c0_i32 = arith.constant 0 : i32
    %c0_i32_0 = arith.constant 0 : i32
    %c0_i32_1 = arith.constant 0 : i32
    %c0_i32_2 = arith.constant 0 : i32
    return %c0_i32, %c0_i32_0, %c0_i32_1 : i32, i32, i32
  }
  func.func @transform_3(%arg0: i32) -> (i32, i32, i32) {
    %c0_i32 = arith.constant 0 : i32
    %c0_i32_0 = arith.constant 0 : i32
    %c0_i32_1 = arith.constant 0 : i32
    %c0_i32_2 = arith.constant 0 : i32
    return %c0_i32, %c0_i32_0, %c0_i32_1 : i32, i32, i32
  }
  func.func @transform_4(%arg0: i32) -> (i32, i32, i32) {
    %c0_i32 = arith.constant 0 : i32
    %c0_i32_0 = arith.constant 0 : i32
    %c0_i32_1 = arith.constant 0 : i32
    %c0_i32_2 = arith.constant 0 : i32
    return %c0_i32, %c0_i32_0, %c0_i32_1 : i32, i32, i32
  }
  func.func @transform_5(%arg0: i32) -> (i32, i32, i32) {
    %c0_i32 = arith.constant 0 : i32
    %c0_i32_0 = arith.constant 0 : i32
    %c0_i32_1 = arith.constant 0 : i32
    %c0_i32_2 = arith.constant 0 : i32
    return %c0_i32, %c0_i32_0, %c0_i32_1 : i32, i32, i32
  }
  func.func @transform_6(%arg0: i32) -> (i32, i32, i32) {
    %c0_i32 = arith.constant 0 : i32
    %c0_i32_0 = arith.constant 0 : i32
    %c0_i32_1 = arith.constant 0 : i32
    %c0_i32_2 = arith.constant 0 : i32
    return %c0_i32, %c0_i32_0, %c0_i32_1 : i32, i32, i32
  }
  func.func @transform_7(%arg0: i32) -> (i32, i32) {
    %c0_i32 = arith.constant 0 : i32
    %c0_i32_0 = arith.constant 0 : i32
    %c0_i32_1 = arith.constant 0 : i32
    return %c0_i32, %c0_i32_0 : i32, i32
  }
  func.func @transform_8(%arg0: i32) -> (i32, i32, i32) {
    %c0_i32 = arith.constant 0 : i32
    %c0_i32_0 = arith.constant 0 : i32
    %c0_i32_1 = arith.constant 0 : i32
    return %arg0, %c0_i32, %c0_i32_0 : i32, i32, i32
  }
}

module attributes {stable_mosaic.version = 11 : i64} {
  func.func @_encoder_kernel(%arg0: i32, %arg1: memref<1x128x32xbf16, #tpu.memory_space<vmem>>, %arg2: memref<4x32x32xbf16, #tpu.memory_space<vmem>>, %arg3: memref<4x1x32xf32, #tpu.memory_space<vmem>>, %arg4: memref<4x32x32xbf16, #tpu.memory_space<vmem>>, %arg5: memref<4x32x32xbf16, #tpu.memory_space<vmem>>, %arg6: memref<4x1x32xf32, #tpu.memory_space<vmem>>, %arg7: memref<4x32x128xbf16, #tpu.memory_space<vmem>>, %arg8: memref<1x128xf32, #tpu.memory_space<vmem>>, %arg9: memref<1x8x128xf32, #tpu.memory_space<vmem>>) attributes {dimension_semantics = [#tpu.dimension_semantics<parallel>], iteration_bounds = array<i64: 1>, scalar_prefetch = 0 : i64, scratch_operands = 0 : i64, tpu.core_type = #tpu.core_type<tc>, window_params = [{transform_indices = @transform_0, window_bounds = array<i64: 1, 128, 32>}, {pipeline_mode = #tpu.pipeline_mode<synchronous>, transform_indices = @transform_1, window_bounds = array<i64: 4, 32, 32>}, {pipeline_mode = #tpu.pipeline_mode<synchronous>, transform_indices = @transform_2, window_bounds = array<i64: 4, 1, 32>}, {pipeline_mode = #tpu.pipeline_mode<synchronous>, transform_indices = @transform_3, window_bounds = array<i64: 4, 32, 32>}, {pipeline_mode = #tpu.pipeline_mode<synchronous>, transform_indices = @transform_4, window_bounds = array<i64: 4, 32, 32>}, {pipeline_mode = #tpu.pipeline_mode<synchronous>, transform_indices = @transform_5, window_bounds = array<i64: 4, 1, 32>}, {pipeline_mode = #tpu.pipeline_mode<synchronous>, transform_indices = @transform_6, window_bounds = array<i64: 4, 32, 128>}, {pipeline_mode = #tpu.pipeline_mode<synchronous>, transform_indices = @transform_7, window_bounds = array<i64: 1, 128>}, {transform_indices = @transform_8, window_bounds = array<i64: 1, 8, 128>}]} {
    %c0 = arith.constant 0 : index
    %c0_0 = arith.constant 0 : index
    %c0_1 = arith.constant 0 : index
    %0 = vector.load %arg1[%c0, %c0_0, %c0_1] : memref<1x128x32xbf16, #tpu.memory_space<vmem>>, vector<1x128x32xbf16>
    %1 = vector.shape_cast %0 : vector<1x128x32xbf16> to vector<128x32xbf16>
    %cst = arith.constant 0.000000e+00 : f32
    %2 = vector.broadcast %cst : f32 to vector<128x128xf32>
    %c0_2 = arith.constant 0 : index
    %c0_3 = arith.constant 0 : index
    %c0_4 = arith.constant 0 : index
    %3 = vector.load %arg2[%c0_2, %c0_3, %c0_4] : memref<4x32x32xbf16, #tpu.memory_space<vmem>>, vector<1x32x32xbf16>
    %4 = vector.shape_cast %3 : vector<1x32x32xbf16> to vector<32x32xbf16>
    %cst_5 = arith.constant dense<0.000000e+00> : vector<128x32xf32>
    %5 = tpu.matmul %1, %4, %cst_5 {dimension_numbers = #tpu.dot_dimension_numbers<[1], [0], [0], [1], [0, 0, 1, 1], [], []>} : vector<128x32xbf16>, vector<32x32xbf16>, vector<128x32xf32> -> vector<128x32xf32>
    %c0_6 = arith.constant 0 : index
    %c0_7 = arith.constant 0 : index
    %c0_8 = arith.constant 0 : index
    %6 = vector.load %arg3[%c0_6, %c0_7, %c0_8] : memref<4x1x32xf32, #tpu.memory_space<vmem>>, vector<1x1x32xf32>
    %7 = vector.shape_cast %6 : vector<1x1x32xf32> to vector<1x32xf32>
    %8 = vector.broadcast %7 : vector<1x32xf32> to vector<128x32xf32>
    %9 = arith.addf %5, %8 : vector<128x32xf32>
    %cst_9 = arith.constant 0.000000e+00 : f32
    %10 = vector.broadcast %cst_9 : f32 to vector<128x32xf32>
    %11 = arith.maximumf %9, %10 : vector<128x32xf32>
    %12 = vector.shape_cast %11 : vector<128x32xf32> to vector<8x16x32xf32>
    %cst_10 = arith.constant dense<0xFF800000> : vector<8x32xf32>
    %13 = vector.multi_reduction <maximumf>, %12, %cst_10 [1] : vector<8x16x32xf32> to vector<8x32xf32>
    %14 = arith.truncf %13 : vector<8x32xf32> to vector<8x32xbf16>
    %c0_11 = arith.constant 0 : index
    %c0_12 = arith.constant 0 : index
    %c0_13 = arith.constant 0 : index
    %15 = vector.load %arg5[%c0_11, %c0_12, %c0_13] : memref<4x32x32xbf16, #tpu.memory_space<vmem>>, vector<1x32x32xbf16>
    %16 = vector.shape_cast %15 : vector<1x32x32xbf16> to vector<32x32xbf16>
    %cst_14 = arith.constant dense<0.000000e+00> : vector<8x32xf32>
    %17 = tpu.matmul %14, %16, %cst_14 {dimension_numbers = #tpu.dot_dimension_numbers<[1], [0], [0], [1], [0, 0, 1, 1], [], []>} : vector<8x32xbf16>, vector<32x32xbf16>, vector<8x32xf32> -> vector<8x32xf32>
    %c0_15 = arith.constant 0 : index
    %c0_16 = arith.constant 0 : index
    %c0_17 = arith.constant 0 : index
    %18 = vector.load %arg6[%c0_15, %c0_16, %c0_17] : memref<4x1x32xf32, #tpu.memory_space<vmem>>, vector<1x1x32xf32>
    %19 = vector.shape_cast %18 : vector<1x1x32xf32> to vector<1x32xf32>
    %20 = vector.broadcast %19 : vector<1x32xf32> to vector<8x32xf32>
    %21 = arith.addf %17, %20 : vector<8x32xf32>
    %22 = arith.truncf %11 : vector<128x32xf32> to vector<128x32xbf16>
    %c0_18 = arith.constant 0 : index
    %c0_19 = arith.constant 0 : index
    %c0_20 = arith.constant 0 : index
    %23 = vector.load %arg4[%c0_18, %c0_19, %c0_20] : memref<4x32x32xbf16, #tpu.memory_space<vmem>>, vector<1x32x32xbf16>
    %24 = vector.shape_cast %23 : vector<1x32x32xbf16> to vector<32x32xbf16>
    %cst_21 = arith.constant dense<0.000000e+00> : vector<128x32xf32>
    %25 = tpu.matmul %22, %24, %cst_21 {dimension_numbers = #tpu.dot_dimension_numbers<[1], [0], [0], [1], [0, 0, 1, 1], [], []>} : vector<128x32xbf16>, vector<32x32xbf16>, vector<128x32xf32> -> vector<128x32xf32>
    %26 = vector.shape_cast %25 : vector<128x32xf32> to vector<8x16x32xf32>
    %27 = vector.shape_cast %21 : vector<8x32xf32> to vector<8x1x32xf32>
    %28 = vector.broadcast %27 : vector<8x1x32xf32> to vector<8x16x32xf32>
    %29 = arith.addf %26, %28 : vector<8x16x32xf32>
    %cst_22 = arith.constant 0.000000e+00 : f32
    %30 = vector.broadcast %cst_22 : f32 to vector<8x16x32xf32>
    %31 = arith.maximumf %29, %30 : vector<8x16x32xf32>
    %32 = vector.shape_cast %31 : vector<8x16x32xf32> to vector<128x32xf32>
    %33 = arith.truncf %32 : vector<128x32xf32> to vector<128x32xbf16>
    %c0_23 = arith.constant 0 : index
    %c0_24 = arith.constant 0 : index
    %c0_25 = arith.constant 0 : index
    %34 = vector.load %arg7[%c0_23, %c0_24, %c0_25] : memref<4x32x128xbf16, #tpu.memory_space<vmem>>, vector<1x32x128xbf16>
    %35 = vector.shape_cast %34 : vector<1x32x128xbf16> to vector<32x128xbf16>
    %cst_26 = arith.constant dense<0.000000e+00> : vector<128x128xf32>
    %36 = tpu.matmul %33, %35, %cst_26 {dimension_numbers = #tpu.dot_dimension_numbers<[1], [0], [0], [1], [0, 0, 1, 1], [], []>} : vector<128x32xbf16>, vector<32x128xbf16>, vector<128x128xf32> -> vector<128x128xf32>
    %37 = arith.addf %2, %36 : vector<128x128xf32>
    %c1 = arith.constant 1 : index
    %c0_27 = arith.constant 0 : index
    %c0_28 = arith.constant 0 : index
    %38 = vector.load %arg2[%c1, %c0_27, %c0_28] : memref<4x32x32xbf16, #tpu.memory_space<vmem>>, vector<1x32x32xbf16>
    %39 = vector.shape_cast %38 : vector<1x32x32xbf16> to vector<32x32xbf16>
    %cst_29 = arith.constant dense<0.000000e+00> : vector<128x32xf32>
    %40 = tpu.matmul %33, %39, %cst_29 {dimension_numbers = #tpu.dot_dimension_numbers<[1], [0], [0], [1], [0, 0, 1, 1], [], []>} : vector<128x32xbf16>, vector<32x32xbf16>, vector<128x32xf32> -> vector<128x32xf32>
    %c1_30 = arith.constant 1 : index
    %c0_31 = arith.constant 0 : index
    %c0_32 = arith.constant 0 : index
    %41 = vector.load %arg3[%c1_30, %c0_31, %c0_32] : memref<4x1x32xf32, #tpu.memory_space<vmem>>, vector<1x1x32xf32>
    %42 = vector.shape_cast %41 : vector<1x1x32xf32> to vector<1x32xf32>
    %43 = vector.broadcast %42 : vector<1x32xf32> to vector<128x32xf32>
    %44 = arith.addf %40, %43 : vector<128x32xf32>
    %cst_33 = arith.constant 0.000000e+00 : f32
    %45 = vector.broadcast %cst_33 : f32 to vector<128x32xf32>
    %46 = arith.maximumf %44, %45 : vector<128x32xf32>
    %47 = vector.shape_cast %46 : vector<128x32xf32> to vector<8x16x32xf32>
    %cst_34 = arith.constant dense<0xFF800000> : vector<8x32xf32>
    %48 = vector.multi_reduction <maximumf>, %47, %cst_34 [1] : vector<8x16x32xf32> to vector<8x32xf32>
    %49 = arith.truncf %48 : vector<8x32xf32> to vector<8x32xbf16>
    %c1_35 = arith.constant 1 : index
    %c0_36 = arith.constant 0 : index
    %c0_37 = arith.constant 0 : index
    %50 = vector.load %arg5[%c1_35, %c0_36, %c0_37] : memref<4x32x32xbf16, #tpu.memory_space<vmem>>, vector<1x32x32xbf16>
    %51 = vector.shape_cast %50 : vector<1x32x32xbf16> to vector<32x32xbf16>
    %cst_38 = arith.constant dense<0.000000e+00> : vector<8x32xf32>
    %52 = tpu.matmul %49, %51, %cst_38 {dimension_numbers = #tpu.dot_dimension_numbers<[1], [0], [0], [1], [0, 0, 1, 1], [], []>} : vector<8x32xbf16>, vector<32x32xbf16>, vector<8x32xf32> -> vector<8x32xf32>
    %c1_39 = arith.constant 1 : index
    %c0_40 = arith.constant 0 : index
    %c0_41 = arith.constant 0 : index
    %53 = vector.load %arg6[%c1_39, %c0_40, %c0_41] : memref<4x1x32xf32, #tpu.memory_space<vmem>>, vector<1x1x32xf32>
    %54 = vector.shape_cast %53 : vector<1x1x32xf32> to vector<1x32xf32>
    %55 = vector.broadcast %54 : vector<1x32xf32> to vector<8x32xf32>
    %56 = arith.addf %52, %55 : vector<8x32xf32>
    %57 = arith.truncf %46 : vector<128x32xf32> to vector<128x32xbf16>
    %c1_42 = arith.constant 1 : index
    %c0_43 = arith.constant 0 : index
    %c0_44 = arith.constant 0 : index
    %58 = vector.load %arg4[%c1_42, %c0_43, %c0_44] : memref<4x32x32xbf16, #tpu.memory_space<vmem>>, vector<1x32x32xbf16>
    %59 = vector.shape_cast %58 : vector<1x32x32xbf16> to vector<32x32xbf16>
    %cst_45 = arith.constant dense<0.000000e+00> : vector<128x32xf32>
    %60 = tpu.matmul %57, %59, %cst_45 {dimension_numbers = #tpu.dot_dimension_numbers<[1], [0], [0], [1], [0, 0, 1, 1], [], []>} : vector<128x32xbf16>, vector<32x32xbf16>, vector<128x32xf32> -> vector<128x32xf32>
    %61 = vector.shape_cast %60 : vector<128x32xf32> to vector<8x16x32xf32>
    %62 = vector.shape_cast %56 : vector<8x32xf32> to vector<8x1x32xf32>
    %63 = vector.broadcast %62 : vector<8x1x32xf32> to vector<8x16x32xf32>
    %64 = arith.addf %61, %63 : vector<8x16x32xf32>
    %cst_46 = arith.constant 0.000000e+00 : f32
    %65 = vector.broadcast %cst_46 : f32 to vector<8x16x32xf32>
    %66 = arith.maximumf %64, %65 : vector<8x16x32xf32>
    %67 = vector.shape_cast %66 : vector<8x16x32xf32> to vector<128x32xf32>
    %68 = arith.truncf %67 : vector<128x32xf32> to vector<128x32xbf16>
    %c1_47 = arith.constant 1 : index
    %c0_48 = arith.constant 0 : index
    %c0_49 = arith.constant 0 : index
    %69 = vector.load %arg7[%c1_47, %c0_48, %c0_49] : memref<4x32x128xbf16, #tpu.memory_space<vmem>>, vector<1x32x128xbf16>
    %70 = vector.shape_cast %69 : vector<1x32x128xbf16> to vector<32x128xbf16>
    %cst_50 = arith.constant dense<0.000000e+00> : vector<128x128xf32>
    %71 = tpu.matmul %68, %70, %cst_50 {dimension_numbers = #tpu.dot_dimension_numbers<[1], [0], [0], [1], [0, 0, 1, 1], [], []>} : vector<128x32xbf16>, vector<32x128xbf16>, vector<128x128xf32> -> vector<128x128xf32>
    %72 = arith.addf %37, %71 : vector<128x128xf32>
    %c2 = arith.constant 2 : index
    %c0_51 = arith.constant 0 : index
    %c0_52 = arith.constant 0 : index
    %73 = vector.load %arg2[%c2, %c0_51, %c0_52] : memref<4x32x32xbf16, #tpu.memory_space<vmem>>, vector<1x32x32xbf16>
    %74 = vector.shape_cast %73 : vector<1x32x32xbf16> to vector<32x32xbf16>
    %cst_53 = arith.constant dense<0.000000e+00> : vector<128x32xf32>
    %75 = tpu.matmul %68, %74, %cst_53 {dimension_numbers = #tpu.dot_dimension_numbers<[1], [0], [0], [1], [0, 0, 1, 1], [], []>} : vector<128x32xbf16>, vector<32x32xbf16>, vector<128x32xf32> -> vector<128x32xf32>
    %c2_54 = arith.constant 2 : index
    %c0_55 = arith.constant 0 : index
    %c0_56 = arith.constant 0 : index
    %76 = vector.load %arg3[%c2_54, %c0_55, %c0_56] : memref<4x1x32xf32, #tpu.memory_space<vmem>>, vector<1x1x32xf32>
    %77 = vector.shape_cast %76 : vector<1x1x32xf32> to vector<1x32xf32>
    %78 = vector.broadcast %77 : vector<1x32xf32> to vector<128x32xf32>
    %79 = arith.addf %75, %78 : vector<128x32xf32>
    %cst_57 = arith.constant 0.000000e+00 : f32
    %80 = vector.broadcast %cst_57 : f32 to vector<128x32xf32>
    %81 = arith.maximumf %79, %80 : vector<128x32xf32>
    %82 = vector.shape_cast %81 : vector<128x32xf32> to vector<8x16x32xf32>
    %cst_58 = arith.constant dense<0xFF800000> : vector<8x32xf32>
    %83 = vector.multi_reduction <maximumf>, %82, %cst_58 [1] : vector<8x16x32xf32> to vector<8x32xf32>
    %84 = arith.truncf %83 : vector<8x32xf32> to vector<8x32xbf16>
    %c2_59 = arith.constant 2 : index
    %c0_60 = arith.constant 0 : index
    %c0_61 = arith.constant 0 : index
    %85 = vector.load %arg5[%c2_59, %c0_60, %c0_61] : memref<4x32x32xbf16, #tpu.memory_space<vmem>>, vector<1x32x32xbf16>
    %86 = vector.shape_cast %85 : vector<1x32x32xbf16> to vector<32x32xbf16>
    %cst_62 = arith.constant dense<0.000000e+00> : vector<8x32xf32>
    %87 = tpu.matmul %84, %86, %cst_62 {dimension_numbers = #tpu.dot_dimension_numbers<[1], [0], [0], [1], [0, 0, 1, 1], [], []>} : vector<8x32xbf16>, vector<32x32xbf16>, vector<8x32xf32> -> vector<8x32xf32>
    %c2_63 = arith.constant 2 : index
    %c0_64 = arith.constant 0 : index
    %c0_65 = arith.constant 0 : index
    %88 = vector.load %arg6[%c2_63, %c0_64, %c0_65] : memref<4x1x32xf32, #tpu.memory_space<vmem>>, vector<1x1x32xf32>
    %89 = vector.shape_cast %88 : vector<1x1x32xf32> to vector<1x32xf32>
    %90 = vector.broadcast %89 : vector<1x32xf32> to vector<8x32xf32>
    %91 = arith.addf %87, %90 : vector<8x32xf32>
    %92 = arith.truncf %81 : vector<128x32xf32> to vector<128x32xbf16>
    %c2_66 = arith.constant 2 : index
    %c0_67 = arith.constant 0 : index
    %c0_68 = arith.constant 0 : index
    %93 = vector.load %arg4[%c2_66, %c0_67, %c0_68] : memref<4x32x32xbf16, #tpu.memory_space<vmem>>, vector<1x32x32xbf16>
    %94 = vector.shape_cast %93 : vector<1x32x32xbf16> to vector<32x32xbf16>
    %cst_69 = arith.constant dense<0.000000e+00> : vector<128x32xf32>
    %95 = tpu.matmul %92, %94, %cst_69 {dimension_numbers = #tpu.dot_dimension_numbers<[1], [0], [0], [1], [0, 0, 1, 1], [], []>} : vector<128x32xbf16>, vector<32x32xbf16>, vector<128x32xf32> -> vector<128x32xf32>
    %96 = vector.shape_cast %95 : vector<128x32xf32> to vector<8x16x32xf32>
    %97 = vector.shape_cast %91 : vector<8x32xf32> to vector<8x1x32xf32>
    %98 = vector.broadcast %97 : vector<8x1x32xf32> to vector<8x16x32xf32>
    %99 = arith.addf %96, %98 : vector<8x16x32xf32>
    %cst_70 = arith.constant 0.000000e+00 : f32
    %100 = vector.broadcast %cst_70 : f32 to vector<8x16x32xf32>
    %101 = arith.maximumf %99, %100 : vector<8x16x32xf32>
    %102 = vector.shape_cast %101 : vector<8x16x32xf32> to vector<128x32xf32>
    %103 = arith.truncf %102 : vector<128x32xf32> to vector<128x32xbf16>
    %c2_71 = arith.constant 2 : index
    %c0_72 = arith.constant 0 : index
    %c0_73 = arith.constant 0 : index
    %104 = vector.load %arg7[%c2_71, %c0_72, %c0_73] : memref<4x32x128xbf16, #tpu.memory_space<vmem>>, vector<1x32x128xbf16>
    %105 = vector.shape_cast %104 : vector<1x32x128xbf16> to vector<32x128xbf16>
    %cst_74 = arith.constant dense<0.000000e+00> : vector<128x128xf32>
    %106 = tpu.matmul %103, %105, %cst_74 {dimension_numbers = #tpu.dot_dimension_numbers<[1], [0], [0], [1], [0, 0, 1, 1], [], []>} : vector<128x32xbf16>, vector<32x128xbf16>, vector<128x128xf32> -> vector<128x128xf32>
    %107 = arith.addf %72, %106 : vector<128x128xf32>
    %c3 = arith.constant 3 : index
    %c0_75 = arith.constant 0 : index
    %c0_76 = arith.constant 0 : index
    %108 = vector.load %arg2[%c3, %c0_75, %c0_76] : memref<4x32x32xbf16, #tpu.memory_space<vmem>>, vector<1x32x32xbf16>
    %109 = vector.shape_cast %108 : vector<1x32x32xbf16> to vector<32x32xbf16>
    %cst_77 = arith.constant dense<0.000000e+00> : vector<128x32xf32>
    %110 = tpu.matmul %103, %109, %cst_77 {dimension_numbers = #tpu.dot_dimension_numbers<[1], [0], [0], [1], [0, 0, 1, 1], [], []>} : vector<128x32xbf16>, vector<32x32xbf16>, vector<128x32xf32> -> vector<128x32xf32>
    %c3_78 = arith.constant 3 : index
    %c0_79 = arith.constant 0 : index
    %c0_80 = arith.constant 0 : index
    %111 = vector.load %arg3[%c3_78, %c0_79, %c0_80] : memref<4x1x32xf32, #tpu.memory_space<vmem>>, vector<1x1x32xf32>
    %112 = vector.shape_cast %111 : vector<1x1x32xf32> to vector<1x32xf32>
    %113 = vector.broadcast %112 : vector<1x32xf32> to vector<128x32xf32>
    %114 = arith.addf %110, %113 : vector<128x32xf32>
    %cst_81 = arith.constant 0.000000e+00 : f32
    %115 = vector.broadcast %cst_81 : f32 to vector<128x32xf32>
    %116 = arith.maximumf %114, %115 : vector<128x32xf32>
    %117 = vector.shape_cast %116 : vector<128x32xf32> to vector<8x16x32xf32>
    %cst_82 = arith.constant dense<0xFF800000> : vector<8x32xf32>
    %118 = vector.multi_reduction <maximumf>, %117, %cst_82 [1] : vector<8x16x32xf32> to vector<8x32xf32>
    %119 = arith.truncf %118 : vector<8x32xf32> to vector<8x32xbf16>
    %c3_83 = arith.constant 3 : index
    %c0_84 = arith.constant 0 : index
    %c0_85 = arith.constant 0 : index
    %120 = vector.load %arg5[%c3_83, %c0_84, %c0_85] : memref<4x32x32xbf16, #tpu.memory_space<vmem>>, vector<1x32x32xbf16>
    %121 = vector.shape_cast %120 : vector<1x32x32xbf16> to vector<32x32xbf16>
    %cst_86 = arith.constant dense<0.000000e+00> : vector<8x32xf32>
    %122 = tpu.matmul %119, %121, %cst_86 {dimension_numbers = #tpu.dot_dimension_numbers<[1], [0], [0], [1], [0, 0, 1, 1], [], []>} : vector<8x32xbf16>, vector<32x32xbf16>, vector<8x32xf32> -> vector<8x32xf32>
    %c3_87 = arith.constant 3 : index
    %c0_88 = arith.constant 0 : index
    %c0_89 = arith.constant 0 : index
    %123 = vector.load %arg6[%c3_87, %c0_88, %c0_89] : memref<4x1x32xf32, #tpu.memory_space<vmem>>, vector<1x1x32xf32>
    %124 = vector.shape_cast %123 : vector<1x1x32xf32> to vector<1x32xf32>
    %125 = vector.broadcast %124 : vector<1x32xf32> to vector<8x32xf32>
    %126 = arith.addf %122, %125 : vector<8x32xf32>
    %127 = arith.truncf %116 : vector<128x32xf32> to vector<128x32xbf16>
    %c3_90 = arith.constant 3 : index
    %c0_91 = arith.constant 0 : index
    %c0_92 = arith.constant 0 : index
    %128 = vector.load %arg4[%c3_90, %c0_91, %c0_92] : memref<4x32x32xbf16, #tpu.memory_space<vmem>>, vector<1x32x32xbf16>
    %129 = vector.shape_cast %128 : vector<1x32x32xbf16> to vector<32x32xbf16>
    %cst_93 = arith.constant dense<0.000000e+00> : vector<128x32xf32>
    %130 = tpu.matmul %127, %129, %cst_93 {dimension_numbers = #tpu.dot_dimension_numbers<[1], [0], [0], [1], [0, 0, 1, 1], [], []>} : vector<128x32xbf16>, vector<32x32xbf16>, vector<128x32xf32> -> vector<128x32xf32>
    %131 = vector.shape_cast %130 : vector<128x32xf32> to vector<8x16x32xf32>
    %132 = vector.shape_cast %126 : vector<8x32xf32> to vector<8x1x32xf32>
    %133 = vector.broadcast %132 : vector<8x1x32xf32> to vector<8x16x32xf32>
    %134 = arith.addf %131, %133 : vector<8x16x32xf32>
    %cst_94 = arith.constant 0.000000e+00 : f32
    %135 = vector.broadcast %cst_94 : f32 to vector<8x16x32xf32>
    %136 = arith.maximumf %134, %135 : vector<8x16x32xf32>
    %137 = vector.shape_cast %136 : vector<8x16x32xf32> to vector<128x32xf32>
    %138 = arith.truncf %137 : vector<128x32xf32> to vector<128x32xbf16>
    %c3_95 = arith.constant 3 : index
    %c0_96 = arith.constant 0 : index
    %c0_97 = arith.constant 0 : index
    %139 = vector.load %arg7[%c3_95, %c0_96, %c0_97] : memref<4x32x128xbf16, #tpu.memory_space<vmem>>, vector<1x32x128xbf16>
    %140 = vector.shape_cast %139 : vector<1x32x128xbf16> to vector<32x128xbf16>
    %cst_98 = arith.constant dense<0.000000e+00> : vector<128x128xf32>
    %141 = tpu.matmul %138, %140, %cst_98 {dimension_numbers = #tpu.dot_dimension_numbers<[1], [0], [0], [1], [0, 0, 1, 1], [], []>} : vector<128x32xbf16>, vector<32x128xbf16>, vector<128x128xf32> -> vector<128x128xf32>
    %142 = arith.addf %107, %141 : vector<128x128xf32>
    %143 = vector.shape_cast %142 : vector<128x128xf32> to vector<8x16x128xf32>
    %cst_99 = arith.constant dense<0xFF800000> : vector<8x128xf32>
    %144 = vector.multi_reduction <maximumf>, %143, %cst_99 [1] : vector<8x16x128xf32> to vector<8x128xf32>
    %c0_100 = arith.constant 0 : index
    %c0_101 = arith.constant 0 : index
    %145 = vector.load %arg8[%c0_100, %c0_101] : memref<1x128xf32, #tpu.memory_space<vmem>>, vector<1x128xf32>
    %146 = vector.broadcast %145 : vector<1x128xf32> to vector<8x128xf32>
    %147 = arith.addf %144, %146 : vector<8x128xf32>
    %c0_102 = arith.constant 0 : index
    %c0_103 = arith.constant 0 : index
    %c0_104 = arith.constant 0 : index
    %148 = vector.load %arg9[%c0_102, %c0_103, %c0_104] : memref<1x8x128xf32, #tpu.memory_space<vmem>>, vector<1x8x128xf32>
    %149 = vector.shape_cast %148 : vector<1x8x128xf32> to vector<8x128xf32>
    %150 = vector.shape_cast %147 : vector<8x128xf32> to vector<1x8x128xf32>
    tpu.vector_store %arg9[%c0_102, %c0_103, %c0_104], %150 {strides = array<i32>} : memref<1x8x128xf32, #tpu.memory_space<vmem>>, vector<1x8x128xf32>,
    return
  }
  func.func @transform_0(%arg0: i32) -> (i32, i32, i32) {
    %c0_i32 = arith.constant 0 : i32
    %c0_i32_0 = arith.constant 0 : i32
    %c0_i32_1 = arith.constant 0 : i32
    return %arg0, %c0_i32, %c0_i32_0 : i32, i32, i32
  }
  func.func @transform_1(%arg0: i32) -> (i32, i32, i32) {
    %c0_i32 = arith.constant 0 : i32
    %c0_i32_0 = arith.constant 0 : i32
    %c0_i32_1 = arith.constant 0 : i32
    %c0_i32_2 = arith.constant 0 : i32
    return %c0_i32, %c0_i32_0, %c0_i32_1 : i32, i32, i32
  }
  func.func @transform_2(%arg0: i32) -> (i32, i32, i32) {
    %c0_i32 = arith.constant 0 : i32
    %c0_i32_0 = arith.constant 0 : i32
    %c0_i32_1 = arith.constant 0 : i32
    %c0_i32_2 = arith.constant 0 : i32
    return %c0_i32, %c0_i32_0, %c0_i32_1 : i32, i32, i32
  }
  func.func @transform_3(%arg0: i32) -> (i32, i32, i32) {
    %c0_i32 = arith.constant 0 : i32
    %c0_i32_0 = arith.constant 0 : i32
    %c0_i32_1 = arith.constant 0 : i32
    %c0_i32_2 = arith.constant 0 : i32
    return %c0_i32, %c0_i32_0, %c0_i32_1 : i32, i32, i32
  }
  func.func @transform_4(%arg0: i32) -> (i32, i32, i32) {
    %c0_i32 = arith.constant 0 : i32
    %c0_i32_0 = arith.constant 0 : i32
    %c0_i32_1 = arith.constant 0 : i32
    %c0_i32_2 = arith.constant 0 : i32
    return %c0_i32, %c0_i32_0, %c0_i32_1 : i32, i32, i32
  }
  func.func @transform_5(%arg0: i32) -> (i32, i32, i32) {
    %c0_i32 = arith.constant 0 : i32
    %c0_i32_0 = arith.constant 0 : i32
    %c0_i32_1 = arith.constant 0 : i32
    %c0_i32_2 = arith.constant 0 : i32
    return %c0_i32, %c0_i32_0, %c0_i32_1 : i32, i32, i32
  }
  func.func @transform_6(%arg0: i32) -> (i32, i32, i32) {
    %c0_i32 = arith.constant 0 : i32
    %c0_i32_0 = arith.constant 0 : i32
    %c0_i32_1 = arith.constant 0 : i32
    %c0_i32_2 = arith.constant 0 : i32
    return %c0_i32, %c0_i32_0, %c0_i32_1 : i32, i32, i32
  }
  func.func @transform_7(%arg0: i32) -> (i32, i32) {
    %c0_i32 = arith.constant 0 : i32
    %c0_i32_0 = arith.constant 0 : i32
    %c0_i32_1 = arith.constant 0 : i32
    return %c0_i32, %c0_i32_0 : i32, i32
  }
  func.func @transform_8(%arg0: i32) -> (i32, i32, i32) {
    %c0_i32 = arith.constant 0 : i32
    %c0_i32_0 = arith.constant 0 : i32
    %c0_i32_1 = arith.constant 0 : i32
    return %arg0, %c0_i32, %c0_i32_0 : i32, i32, i32
  }
}

</mosaic_0001>

<bundles_post_ra>
// kernel: tpu_custom_call.1
= control target key start
LH: loop header
LB: loop body
LE: loop exit
PB: predicated region body
PF: predicated region fallthrough
CT: control target
= control target key end

     0   :  { %13 = vsyncpa [#allocation3], 0  ;;  %s3345_s0 = inlined_call_operand.vmem [shape: bf16[1,128,32], index: 0, kind: input, shape index: {}]   ;;  %s3346_s1 = inlined_call_operand.vmem [shape: bf16[4,32,32], index: 1, kind: input, shape index: {}]   ;;  %s3347_s2 = inlined_call_operand.vmem [shape: f32[4,1,32], index: 2, kind: input, shape index: {}]   ;;  %s3348_s3 = inlined_call_operand.hbm [shape: bf16[4,32,32], index: 3, kind: input, shape index: {}]   ;;  %s3349_s4 = inlined_call_operand.hbm [shape: bf16[4,32,32], index: 4, kind: input, shape index: {}]   ;;  %s3350_s5 = inlined_call_operand.vmem [shape: f32[4,1,32], index: 5, kind: input, shape index: {}]   ;;  %s3351_s6 = inlined_call_operand.hbm [shape: bf16[4,32,128], index: 6, kind: input, shape index: {}]   ;;  %s3352_s7 = inlined_call_operand.vmem [shape: f32[1,128], index: 7, kind: input, shape index: {}]   ;;  %s3353_s8 = inlined_call_operand.hbm [shape: f32[1,8,128], index: 8, kind: output, shape index: {}]  }
   0x1   :  { %14 = vsyncpa [#allocation6], 0 }
   0x2   :  { %15 = vsyncpa [#allocation4], 0  ;;  %s39_s29 = sshll.u32 %s3349_s4, 4  ;;  %s2661_s30 = smov [#allocation5]   ;;  %s40_s29 = int_to_ptr.hbm [resolvable:$true] %s39_s29 }
   0x3   :  { %s41_s9 = sshll.u32 %s2661_s30, 4  ;;  %s26_s12 = sshll.u32 %s3348_s3, 4  ;;  %s42_s9 = int_to_ptr.vmem [resolvable:$true] %s41_s9  ;;  %s27_s12 = int_to_ptr.hbm [resolvable:$true] %s26_s12 }
   0x4   :  { %s2662_s13 = smov 64   ;;  %s2663_s14 = smov 4  }
   0x5   :  { %47 = dma.hbm_to_vmem [thread:$0]  %s40_s29, 1024, %s42_s9, [#allocation6], %s2662_s13, %s2662_s13, %s2663_s14  }
   0x6   :  { %s2664_s15 = smov [#allocation2]   ;;  %s54_s19 = sshll.u32 %s3351_s6, 4  ;;  %s55_s19 = int_to_ptr.hbm [resolvable:$true] %s54_s19 }
   0x7   :  { %s28_s16 = sshll.u32 %s2664_s15, 4  ;;  %s2665_s4 = smov [#allocation7]   ;;  %s29_s16 = int_to_ptr.vmem [resolvable:$true] %s28_s16 }
   0x8   :  { %34 = dma.hbm_to_vmem [thread:$0]  %s27_s12, 1024, %s29_s16, [#allocation3], %s2662_s13, %s2662_s13, %s2663_s14  }
   0x9   :  { %s56_s20 = sshll.u32 %s2665_s4, 4  ;;  %s57_s20 = int_to_ptr.vmem [resolvable:$true] %s56_s20 }
   0xa   :  { %62 = dma.hbm_to_vmem [thread:$0]  %s55_s19, 1024, %s57_s20, [#allocation6], %s2662_s13, %s2662_s13, %s2663_s14  }
   0xb   :  { %2655 = dma.done.wait [#allocation3], 1024  }
   0xc   :  { %2656 = vsyncadd [#allocation3], 4294966272 }
   0xd   :  { %2657 = dma.done.wait [#allocation6], 2048  }
   0xe   :  { %2658 = vsyncadd [#allocation6], 4294965248  ;;  %v2513_v0 = vld [vmem:[%s3346_s1 + $0x8] sm:$0xff]  ;;  %v2512_v1 = vld [vmem:[%s3346_s1] sm:$0xff]  ;;  %vm154_vm0 = vcmask 261120   ;;  %vm348_vm1 = vcmask 1041409  }
   0xf   :  { %185 = vmatpush.bf16.msra.mxu0 %v2513_v0  ;;  %v2504_v2 = vld [vmem:[%s3345_s0] sm:$0xff]  ;;  %v2505_v3 = vld [vmem:[%s3345_s0 + $0x8] sm:$0xff]  ;;  %v2506_v4 = vld [vmem:[%s3345_s0 + $0x10] sm:$0xff]  ;;  %vm350_vm2 = vcmask 1042434   ;;  %vm352_vm3 = vcmask 1043459   ;;  %vm354_vm4 = vcmask 1044484  }
  0x10   :  { %v2507_v5 = vld [vmem:[%s3345_s0 + $0x18] sm:$0xff]  ;;  %v2508_v6 = vld [vmem:[%s3345_s0 + $0x20] sm:$0xff]  ;;  %v2509_v7 = vld [vmem:[%s3345_s0 + $0x28] sm:$0xff]  ;;  %vm356_vm5 = vcmask 1045509   ;;  %vm358_vm6 = vcmask 1046534   ;;  %vm360_vm7 = vcmask 1047559  }
  0x11   :  { %v2510_v8 = vld [vmem:[%s3345_s0 + $0x30] sm:$0xff]  ;;  %v2517_v9 = vld [vmem:[#allocation2 + $0x8] sm:$0xff]  ;;  %v2516_v10 = vld [vmem:[#allocation2] sm:$0xff]  ;;  %s2215_s4 = sshll.u32 %s3353_s8, 4  ;;  %s2216_s4 = int_to_ptr.hbm [resolvable:$true] %s2215_s4 }
  0x12   :  { %445 = vmatpush.bf16.msra.mxu2 %v2517_v9  ;;  %v2511_v11 = vld [vmem:[%s3345_s0 + $0x38] sm:$0xff]  ;;  %v2515_v12 = vld [vmem:[#allocation5 + $0x8] sm:$0xff]  ;;  %v2762_v14 = vld [vmem:[%s3347_s2] ss:$0 sm:$0xff] }
  0x13   :  { %186 = vmatpush.bf16.msra.mxu0 %v2512_v1 }
  0x16   :  { %2266 = vmatmul.msk.bf16.vlgmr.msra.gmra.mxu0 %vm154_vm0, %v2504_v2  ;;  %446 = vmatpush.bf16.msra.mxu2 %v2516_v10 }
  0x17   :  { %384 = vmatpush.bf16.msrb.mxu0 %v2515_v12  ;;  %v2514_v12 = vld [vmem:[#allocation5] sm:$0xff] }
  0x1b   :  { %385 = vmatpush.bf16.msrb.mxu0 %v2514_v12 }
  0x26   :  { %2267 = vmatmul.msk.bf16.gmra.mxu0 %vm154_vm0, %v2505_v3 }
  0x36   :  { %2268 = vmatmul.msk.bf16.gmra.mxu0 %vm154_vm0, %v2506_v4 }
  0x46   :  { %2269 = vmatmul.msk.bf16.gmra.mxu0 %vm154_vm0, %v2507_v5 }
  0x56   :  { %2270 = vmatmul.msk.bf16.gmra.mxu0 %vm154_vm0, %v2508_v6 }
  0x66   :  { %2271 = vmatmul.msk.bf16.gmra.mxu0 %vm154_vm0, %v2509_v7 }
  0x76   :  { %2272 = vmatmul.msk.bf16.gmra.mxu0 %vm154_vm0, %v2510_v8 }
  0x86   :  { %2273 = vmatmul.msk.bf16.gmra.mxu0 %vm154_vm0, %v2511_v11 }
  0x93   :  { %v188_v13 = vpop.f32.mrf.mxu0 }
  0x94   :  { %v189_v15 = vadd.f32 %v2762_v14, %v188_v13 }
  0x96   :  { %v228_v17 = vmax.f32 %v189_v15, 0.0 }
  0x98   :  { %v244_v20 = vsel %vm154_vm0, %v228_v17, -inf }
  0x9b   :  { %v190_v16 = vpop.f32.mrf.mxu0 }
  0x9c   :  { %v191_v18 = vadd.f32 %v2762_v14, %v190_v16 }
  0x9e   :  { %v229_v19 = vmax.f32 %v191_v18, 0.0 }
  0xa0   :  { %v245_v21 = vsel %vm154_vm0, %v229_v19, -inf  ;;  %v391_v22 = vpack.c.bf16 %v229_v19, %v228_v17 }
  0xa1   :  { %v246_v23 = vmax.f32 %v244_v20, %v245_v21 }
  0xa2   :  { %2291 = vmatmul.msk.bf16.vlgmr.msra.gmra.mxu2 %vm154_vm0, %v391_v22 }
  0xa3   :  { %v193_v24 = vpop.f32.mrf.mxu0  ;;  %v247_v25 = vrot.slane %v246_v23, 4 }
  0xa4   :  { %v194_v26 = vadd.f32 %v2762_v14, %v193_v24 }
  0xa5   :  { %v248_v27 = vmax.f32 %v246_v23, %v247_v25 }
  0xa6   :  { %v230_v29 = vmax.f32 %v194_v26, 0.0 }
  0xa7   :  { %v249_v31 = vrot.slane %v248_v27, 2 }
  0xa8   :  { %v253_v33 = vsel %vm154_vm0, %v230_v29, -inf }
  0xa9   :  { %v250_v36 = vmax.f32 %v248_v27, %v249_v31 }
  0xab   :  { %v195_v28 = vpop.f32.mrf.mxu0  ;;  %v251_v40 = vrot.slane %v250_v36, 1 }
  0xac   :  { %v196_v30 = vadd.f32 %v2762_v14, %v195_v28 }
  0xad   :  { %v252_v44 = vmax.f32 %v250_v36, %v251_v40 }
  0xae   :  { %v231_v32 = vmax.f32 %v196_v30, 0.0 }
  0xaf   :  { %v316_v50 = vpack.c.bf16 %v252_v44, %v252_v44 }
  0xb0   :  { %v254_v34 = vsel %vm154_vm0, %v231_v32, -inf  ;;  %v392_v35 = vpack.c.bf16 %v231_v32, %v230_v29 }
  0xb1   :  { %v255_v37 = vmax.f32 %v253_v33, %v254_v34  ;;  %v340_v57 = vunpack.c.l.b16 %v316_v50 }
  0xb2   :  { %2292 = vmatmul.msk.bf16.gmra.mxu2 %vm154_vm0, %v392_v35 }
  0xb3   :  { %v256_v38 = vrot.slane %v255_v37, 4  ;;  %v198_v39 = vpop.f32.mrf.mxu0 }
  0xb4   :  { %v199_v43 = vadd.f32 %v2762_v14, %v198_v39 }
  0xb5   :  { %v257_v41 = vmax.f32 %v255_v37, %v256_v38 }
  0xb6   :  { %v232_v48 = vmax.f32 %v199_v43, 0.0 }
  0xb7   :  { %v258_v42 = vrot.slane %v257_v41, 2 }
  0xb8   :  { %v262_v54 = vsel %vm154_vm0, %v232_v48, -inf }
  0xb9   :  { %v259_v45 = vmax.f32 %v257_v41, %v258_v42 }
  0xbb   :  { %v260_v46 = vrot.slane %v259_v45, 1  ;;  %v200_v47 = vpop.f32.mrf.mxu0 }
  0xbc   :  { %v201_v49 = vadd.f32 %v2762_v14, %v200_v47 }
  0xbd   :  { %v261_v51 = vmax.f32 %v259_v45, %v260_v46 }
  0xbe   :  { %v233_v52 = vmax.f32 %v201_v49, 0.0 }
  0xbf   :  { %v317_v53 = vpack.c.bf16 %v261_v51, %v261_v51 }
  0xc0   :  { %v263_v55 = vsel %vm154_vm0, %v233_v52, -inf  ;;  %v393_v56 = vpack.c.bf16 %v233_v52, %v232_v48 }
  0xc1   :  { %v341_v58 = vunpack.c.l.b16 %v317_v53  ;;  %v264_v59 = vmax.f32 %v262_v54, %v263_v55 }
  0xc2   :  { %2293 = vmatmul.msk.bf16.gmra.mxu2 %vm154_vm0, %v393_v56 }
  0xc3   :  { %v349_v60 = vsel %vm348_vm1, %v341_v58, %v340_v57  ;;  %v265_v61 = vrot.slane %v264_v59, 4  ;;  %v203_v62 = vpop.f32.mrf.mxu0 }
  0xc4   :  { %v204_v2 = vadd.f32 %v2762_v14, %v203_v62 }
  0xc5   :  { %v266_v63 = vmax.f32 %v264_v59, %v265_v61 }
  0xc6   :  { %v234_v7 = vmax.f32 %v204_v2, 0.0 }
  0xc7   :  { %v267_v0 = vrot.slane %v266_v63, 2 }
  0xc8   :  { %v271_v33 = vsel %vm154_vm0, %v234_v7, -inf }
  0xc9   :  { %v268_v1 = vmax.f32 %v266_v63, %v267_v0 }
  0xcb   :  { %v269_v3 = vrot.slane %v268_v1, 1  ;;  %v205_v4 = vpop.f32.mrf.mxu0 }
  0xcc   :  { %v206_v5 = vadd.f32 %v2762_v14, %v205_v4 }
  0xcd   :  { %v270_v6 = vmax.f32 %v268_v1, %v269_v3 }
  0xce   :  { %v235_v8 = vmax.f32 %v206_v5, 0.0 }
  0xcf   :  { %v318_v9 = vpack.c.bf16 %v270_v6, %v270_v6 }
  0xd0   :  { %v394_v10 = vpack.c.bf16 %v235_v8, %v234_v7  ;;  %v272_v30 = vsel %vm154_vm0, %v235_v8, -inf }
  0xd1   :  { %v342_v11 = vunpack.c.l.b16 %v318_v9  ;;  %v273_v35 = vmax.f32 %v271_v33, %v272_v30 }
  0xd2   :  { %2294 = vmatmul.msk.bf16.gmra.mxu2 %vm154_vm0, %v394_v10 }
  0xd3   :  { %v2784_v13 = vsel %vm350_vm2, %v342_v11, %v349_v60  ;;  %v208_v15 = vpop.f32.mrf.mxu0  ;;  %v274_v44 = vrot.slane %v273_v35, 4 }
  0xd4   :  { %v209_v16 = vadd.f32 %v2762_v14, %v208_v15 }
  0xd5   :  { %v275_v51 = vmax.f32 %v273_v35, %v274_v44 }
  0xd6   :  { %v236_v19 = vmax.f32 %v209_v16, 0.0 }
  0xd7   :  { %v276_v57 = vrot.slane %v275_v51, 2 }
  0xd8   :  { %v280_v36 = vsel %vm154_vm0, %v236_v19, -inf }
  0xd9   :  { %v277_v62 = vmax.f32 %v275_v51, %v276_v57 }
  0xdb   :  { %v210_v17 = vpop.f32.mrf.mxu0  ;;  %v278_v6 = vrot.slane %v277_v62, 1 }
  0xdc   :  { %v211_v18 = vadd.f32 %v2762_v14, %v210_v17 }
  0xdd   :  { %v279_v16 = vmax.f32 %v277_v62, %v278_v6 }
  0xde   :  { %v237_v20 = vmax.f32 %v211_v18, 0.0 }
  0xe0   :  { %v395_v21 = vpack.c.bf16 %v237_v20, %v236_v19  ;;  %v281_v32 = vsel %vm154_vm0, %v237_v20, -inf }
  0xe1   :  { %v282_v38 = vmax.f32 %v280_v36, %v281_v32 }
  0xe2   :  { %2295 = vmatmul.msk.bf16.gmra.mxu2 %vm154_vm0, %v395_v21  ;;  %v319_v21 = vpack.c.bf16 %v279_v16, %v279_v16 }
  0xe3   :  { %v213_v22 = vpop.f32.mrf.mxu0  ;;  %v283_v45 = vrot.slane %v282_v38, 4 }
  0xe4   :  { %v214_v23 = vadd.f32 %v2762_v14, %v213_v22 }
  0xe5   :  { %v284_v54 = vmax.f32 %v282_v38, %v283_v45 }
  0xe6   :  { %v238_v26 = vmax.f32 %v214_v23, 0.0 }
  0xe7   :  { %v285_v58 = vrot.slane %v284_v54, 2 }
  0xe8   :  { %v289_v39 = vsel %vm154_vm0, %v238_v26, -inf }
  0xe9   :  { %v286_v0 = vmax.f32 %v284_v54, %v285_v58 }
  0xeb   :  { %v215_v24 = vpop.f32.mrf.mxu0  ;;  %v287_v7 = vrot.slane %v286_v0, 1 }
  0xec   :  { %v216_v25 = vadd.f32 %v2762_v14, %v215_v24 }
  0xed   :  { %v288_v18 = vmax.f32 %v286_v0, %v287_v7 }
  0xee   :  { %v239_v27 = vmax.f32 %v216_v25, 0.0 }
  0xef   :  { %v320_v23 = vpack.c.bf16 %v288_v18, %v288_v18 }
  0xf0   :  { %v396_v28 = vpack.c.bf16 %v239_v27, %v238_v26  ;;  %v290_v34 = vsel %vm154_vm0, %v239_v27, -inf  ;;  %v343_v27 = vunpack.c.l.b16 %v319_v21 }
  0xf1   :  { %v291_v42 = vmax.f32 %v289_v39, %v290_v34 }
  0xf2   :  { %2296 = vmatmul.msk.bf16.gmra.mxu2 %vm154_vm0, %v396_v28  ;;  %v353_v34 = vsel %vm352_vm3, %v343_v27, %v2784_v13 }
  0xf3   :  { %v218_v29 = vpop.f32.mrf.mxu0  ;;  %v292_v49 = vrot.slane %v291_v42, 4 }
  0xf4   :  { %v219_v31 = vadd.f32 %v2762_v14, %v218_v29  ;;  %v344_v29 = vunpack.c.l.b16 %v320_v23 }
  0xf5   :  { %v293_v55 = vmax.f32 %v291_v42, %v292_v49  ;;  %v2521_v42 = vld [vmem:[%s3346_s1 + $0x18] sm:$0xff] }
  0xf6   :  { %v240_v40 = vmax.f32 %v219_v31, 0.0  ;;  %v355_v35 = vsel %vm354_vm4, %v344_v29, %v353_v34  ;;  %608 = vmatpush.bf16.msra.mxu3 %v2521_v42 }
  0xf7   :  { %v294_v60 = vrot.slane %v293_v55, 2 }
  0xf8   :  { %v298_v46 = vsel %vm154_vm0, %v240_v40, -inf }
  0xf9   :  { %v295_v3 = vmax.f32 %v293_v55, %v294_v60 }
  0xfb   :  { %v220_v37 = vpop.f32.mrf.mxu0  ;;  %v296_v11 = vrot.slane %v295_v3, 1 }
  0xfc   :  { %v221_v41 = vadd.f32 %v2762_v14, %v220_v37 }
  0xfd   :  { %v297_v19 = vmax.f32 %v295_v3, %v296_v11 }
  0xfe   :  { %v241_v43 = vmax.f32 %v221_v41, 0.0 }
  0xff   :  { %v321_v24 = vpack.c.bf16 %v297_v19, %v297_v19 }
 0x100   :  { %v299_v47 = vsel %vm154_vm0, %v241_v43, -inf  ;;  %v397_v48 = vpack.c.bf16 %v241_v43, %v240_v40  ;;  %v2520_v43 = vld [vmem:[%s3346_s1 + $0x10] sm:$0xff] }
 0x101   :  { %v300_v50 = vmax.f32 %v298_v46, %v299_v47  ;;  %v345_v30 = vunpack.c.l.b16 %v321_v24  ;;  %609 = vmatpush.bf16.msra.mxu3 %v2520_v43  ;;  %v2551_v46 = vld [vmem:[%s3350_s5] ss:$0 sm:$0xff] }
 0x102   :  { %2297 = vmatmul.msk.bf16.gmra.mxu2 %vm154_vm0, %v397_v48 }
 0x103   :  { %v301_v52 = vrot.slane %v300_v50, 4  ;;  %v223_v53 = vpop.f32.mrf.mxu0  ;;  %v357_v37 = vsel %vm356_vm5, %v345_v30, %v355_v35 }
 0x104   :  { %v224_v59 = vadd.f32 %v2762_v14, %v223_v53 }
 0x105   :  { %v302_v56 = vmax.f32 %v300_v50, %v301_v52 }
 0x106   :  { %v242_v1 = vmax.f32 %v224_v59, 0.0 }
 0x107   :  { %v303_v61 = vrot.slane %v302_v56, 2 }
 0x108   :  { %v307_v8 = vsel %vm154_vm0, %v242_v1, -inf }
 0x109   :  { %v304_v4 = vmax.f32 %v302_v56, %v303_v61 }
 0x10b   :  { %v225_v63 = vpop.f32.mrf.mxu0  ;;  %v305_v15 = vrot.slane %v304_v4, 1 }
 0x10c   :  { %v226_v2 = vadd.f32 %v2762_v14, %v225_v63 }
 0x10d   :  { %v306_v20 = vmax.f32 %v304_v4, %v305_v15 }
 0x10e   :  { %v243_v5 = vmax.f32 %v226_v2, 0.0 }
 0x10f   :  { %v322_v26 = vpack.c.bf16 %v306_v20, %v306_v20 }
 0x110   :  { %v308_v9 = vsel %vm154_vm0, %v243_v5, -inf  ;;  %v398_v10 = vpack.c.bf16 %v243_v5, %v242_v1 }
 0x111   :  { %v309_v12 = vmax.f32 %v307_v8, %v308_v9  ;;  %v346_v32 = vunpack.c.l.b16 %v322_v26 }
 0x112   :  { %2298 = vmatmul.msk.bf16.gmra.mxu2 %vm154_vm0, %v398_v10 }
 0x113   :  { %v310_v17 = vrot.slane %v309_v12, 4  ;;  %v359_v38 = vsel %vm358_vm6, %v346_v32, %v357_v37 }
 0x115   :  { %v311_v14 = vmax.f32 %v309_v12, %v310_v17 }
 0x117   :  { %v312_v22 = vrot.slane %v311_v14, 2 }
 0x119   :  { %v313_v25 = vmax.f32 %v311_v14, %v312_v22 }
 0x11b   :  { %v314_v28 = vrot.slane %v313_v25, 1 }
 0x11d   :  { %v315_v31 = vmax.f32 %v313_v25, %v314_v28 }
 0x11f   :  { %v323_v33 = vpack.c.bf16 %v315_v31, %v315_v31 }
 0x121   :  { %v347_v36 = vunpack.c.l.b16 %v323_v33 }
 0x123   :  { %v361_v39 = vsel %vm360_vm7, %v347_v36, %v359_v38 }
 0x124   :  { %v362_v40 = vpack.c.b16 %v361_v39, %v361_v39 }
 0x125   :  { %v448_v41 = vpop.f32.mrf.mxu2 }
 0x126   :  { %2282 = vmatmul.msk.bf16.vlgmr.msrb.gmra.mxu0 %vm154_vm0, %v362_v40 }
 0x12d   :  { %v450_v13 = vpop.f32.mrf.mxu2 }
 0x135   :  { %v453_v44 = vpop.f32.mrf.mxu2 }
 0x13d   :  { %v455_v45 = vpop.f32.mrf.mxu2 }
 0x145   :  { %v458_v49 = vpop.f32.mrf.mxu2 }
 0x14d   :  { %v460_v58 = vpop.f32.mrf.mxu2 }
 0x155   :  { %v463_v0 = vpop.f32.mrf.mxu2 }
 0x15d   :  { %v465_v4 = vpop.f32.mrf.mxu2 }
 0x165   :  { %v468_v11 = vpop.f32.mrf.mxu2 }
 0x16d   :  { %v470_v17 = vpop.f32.mrf.mxu2 }
 0x175   :  { %v473_v22 = vpop.f32.mrf.mxu2 }
 0x17d   :  { %v475_v27 = vpop.f32.mrf.mxu2 }
 0x185   :  { %v478_v33 = vpop.f32.mrf.mxu2 }
 0x18d   :  { %v480_v38 = vpop.f32.mrf.mxu2 }
 0x195   :  { %v483_v43 = vpop.f32.mrf.mxu2 }
 0x1a3   :  { %v387_v47 = vpop.f32.mrf.mxu0 }
 0x1a4   :  { %v2824_v48 = vadd.f32 %v2551_v46, %v387_v47  ;;  %v485_v47 = vpop.f32.mrf.mxu2 }
 0x1a6   :  { %v496_v50 = vperm.slane %v2824_v48, 0  ;;  %v489_v57 = vrot.slane %v2824_v48, 1  ;;  %v490_v2 = vrot.slane %v2824_v48, 2  ;;  %v491_v10 = vrot.slane %v2824_v48, 3 }
 0x1a7   :  { %v492_v20 = vrot.slane %v2824_v48, 4  ;;  %v493_v29 = vrot.slane %v2824_v48, 5  ;;  %v494_v37 = vrot.slane %v2824_v48, 6 }
 0x1a8   :  { %v512_v51 = vadd.f32 %v496_v50, %v448_v41  ;;  %v513_v52 = vadd.f32 %v496_v50, %v450_v13  ;;  %v497_v59 = vperm.slane %v489_v57, 0  ;;  %v498_v3 = vperm.slane %v490_v2, 0  ;;  %v2523_v57 = vld [vmem:[#allocation5 + $0x18] sm:$0xff] }
 0x1a9   :  { %v499_v12 = vperm.slane %v491_v10, 0  ;;  %v500_v21 = vperm.slane %v492_v20, 0  ;;  %v501_v30 = vperm.slane %v493_v29, 0  ;;  %v502_v39 = vperm.slane %v494_v37, 0  ;;  %802 = vmatpush.bf16.msrb.mxu2 %v2523_v57 }
 0x1aa   :  { %v528_v53 = vmax.f32 %v512_v51, 0.0  ;;  %v529_v54 = vmax.f32 %v513_v52, 0.0  ;;  %v514_v60 = vadd.f32 %v497_v59, %v453_v44  ;;  %v515_v61 = vadd.f32 %v497_v59, %v455_v45 }
 0x1ab   :  { %v389_v55 = vpop.f32.mrf.mxu0  ;;  %v516_v5 = vadd.f32 %v498_v3, %v458_v49  ;;  %v517_v6 = vadd.f32 %v498_v3, %v460_v58  ;;  %v518_v15 = vadd.f32 %v499_v12, %v463_v0  ;;  %v519_v16 = vadd.f32 %v499_v12, %v465_v4  ;;  %v2869_v58 = vld [vmem:[%s3347_s2 + $0x1] ss:$0 sm:$0xff] }
 0x1ac   :  { %v2827_v56 = vpack.c.bf16 %v529_v54, %v528_v53  ;;  %v530_v62 = vmax.f32 %v514_v60, 0.0  ;;  %v531_v63 = vmax.f32 %v515_v61, 0.0  ;;  %v520_v23 = vadd.f32 %v500_v21, %v468_v11  ;;  %v2525_v54 = vld [vmem:[#allocation2 + $0x18] sm:$0xff]  ;;  %v2524_v55 = vld [vmem:[#allocation2 + $0x10] sm:$0xff] }
 0x1ad   :  { %v532_v7 = vmax.f32 %v516_v5, 0.0  ;;  %v533_v8 = vmax.f32 %v517_v6, 0.0  ;;  %v534_v18 = vmax.f32 %v518_v15, 0.0  ;;  %v535_v19 = vmax.f32 %v519_v16, 0.0  ;;  %864 = vmatpush.bf16.msra.mxu1 %v2525_v54 }
 0x1ae   :  { %2312 = vmatmul.msk.bf16.vlgmr.msra.gmra.mxu3 %vm154_vm0, %v2827_v56  ;;  %v2832_v1 = vpack.c.bf16 %v531_v63, %v530_v62  ;;  %v521_v24 = vadd.f32 %v500_v21, %v470_v17  ;;  %v536_v25 = vmax.f32 %v520_v23, 0.0  ;;  %v522_v31 = vadd.f32 %v501_v30, %v473_v22 }
 0x1af   :  { %v2837_v9 = vpack.c.bf16 %v533_v8, %v532_v7  ;;  %v2842_v14 = vpack.c.bf16 %v535_v19, %v534_v18  ;;  %v523_v32 = vadd.f32 %v501_v30, %v475_v27  ;;  %v524_v40 = vadd.f32 %v502_v39, %v478_v33 }
 0x1b0   :  { %v537_v26 = vmax.f32 %v521_v24, 0.0  ;;  %v538_v34 = vmax.f32 %v522_v31, 0.0  ;;  %v525_v41 = vadd.f32 %v502_v39, %v480_v38  ;;  %v495_v45 = vrot.slane %v2824_v48, 7 }
 0x1b1   :  { %v539_v35 = vmax.f32 %v523_v32, 0.0  ;;  %v540_v42 = vmax.f32 %v524_v40, 0.0  ;;  %865 = vmatpush.bf16.msra.mxu1 %v2524_v55 }
 0x1b2   :  { %v2847_v28 = vpack.c.bf16 %v537_v26, %v536_v25  ;;  %v541_v13 = vmax.f32 %v525_v41, 0.0  ;;  %v503_v46 = vperm.slane %v495_v45, 0 }
 0x1b3   :  { %v2852_v36 = vpack.c.bf16 %v539_v35, %v538_v34 }
 0x1b4   :  { %v2857_v44 = vpack.c.bf16 %v541_v13, %v540_v42  ;;  %v526_v49 = vadd.f32 %v503_v46, %v483_v43  ;;  %v527_v50 = vadd.f32 %v503_v46, %v485_v47 }
 0x1b6   :  { %v542_v51 = vmax.f32 %v526_v49, 0.0  ;;  %v543_v52 = vmax.f32 %v527_v50, 0.0 }
 0x1b8   :  { %v2862_v53 = vpack.c.bf16 %v543_v52, %v542_v51 }
 0x1be   :  { %2313 = vmatmul.msk.bf16.gmra.mxu3 %vm154_vm0, %v2832_v1 }
 0x1ce   :  { %2314 = vmatmul.msk.bf16.gmra.mxu3 %vm154_vm0, %v2837_v9 }
 0x1de   :  { %2315 = vmatmul.msk.bf16.gmra.mxu3 %vm154_vm0, %v2842_v14 }
 0x1ee   :  { %2316 = vmatmul.msk.bf16.gmra.mxu3 %vm154_vm0, %v2847_v28 }
 0x1fe   :  { %2317 = vmatmul.msk.bf16.gmra.mxu3 %vm154_vm0, %v2852_v36 }
 0x20e   :  { %2318 = vmatmul.msk.bf16.gmra.mxu3 %vm154_vm0, %v2857_v44 }
 0x21e   :  { %2319 = vmatmul.msk.bf16.gmra.mxu3 %vm154_vm0, %v2862_v53 }
 0x231   :  { %v611_v48 = vpop.f32.mrf.mxu3 }
 0x232   :  { %v612_v59 = vadd.f32 %v2869_v58, %v611_v48 }
 0x234   :  { %v651_v61 = vmax.f32 %v612_v59, 0.0 }
 0x236   :  { %v667_v0 = vsel %vm154_vm0, %v651_v61, -inf }
 0x239   :  { %v613_v60 = vpop.f32.mrf.mxu3 }
 0x23a   :  { %v614_v62 = vadd.f32 %v2869_v58, %v613_v60 }
 0x23c   :  { %v652_v63 = vmax.f32 %v614_v62, 0.0 }
 0x23e   :  { %v668_v2 = vsel %vm154_vm0, %v652_v63, -inf  ;;  %v809_v3 = vpack.c.bf16 %v652_v63, %v651_v61 }
 0x23f   :  { %v669_v4 = vmax.f32 %v667_v0, %v668_v2  ;;  %v2522_v2 = vld [vmem:[#allocation5 + $0x10] sm:$0xff] }
 0x240   :  { %2338 = vmatmul.msk.bf16.vlgmr.msra.gmra.mxu1 %vm154_vm0, %v809_v3  ;;  %803 = vmatpush.bf16.msrb.mxu2 %v2522_v2 }
 0x241   :  { %v616_v5 = vpop.f32.mrf.mxu3  ;;  %v670_v6 = vrot.slane %v669_v4, 4 }
 0x242   :  { %v617_v7 = vadd.f32 %v2869_v58, %v616_v5 }
 0x243   :  { %v671_v8 = vmax.f32 %v669_v4, %v670_v6 }
 0x244   :  { %v653_v11 = vmax.f32 %v617_v7, 0.0 }
 0x245   :  { %v672_v15 = vrot.slane %v671_v8, 2 }
 0x246   :  { %v676_v17 = vsel %vm154_vm0, %v653_v11, -inf }
 0x247   :  { %v673_v20 = vmax.f32 %v671_v8, %v672_v15 }
 0x249   :  { %v618_v10 = vpop.f32.mrf.mxu3  ;;  %v674_v24 = vrot.slane %v673_v20, 1 }
 0x24a   :  { %v619_v12 = vadd.f32 %v2869_v58, %v618_v10 }
 0x24b   :  { %v675_v29 = vmax.f32 %v673_v20, %v674_v24 }
 0x24c   :  { %v654_v16 = vmax.f32 %v619_v12, 0.0 }
 0x24d   :  { %v739_v35 = vpack.c.bf16 %v675_v29, %v675_v29 }
 0x24e   :  { %v677_v18 = vsel %vm154_vm0, %v654_v16, -inf  ;;  %v810_v19 = vpack.c.bf16 %v654_v16, %v653_v11 }
 0x24f   :  { %v678_v21 = vmax.f32 %v676_v17, %v677_v18  ;;  %v765_v13 = vunpack.c.l.b16 %v739_v35 }
 0x250   :  { %2339 = vmatmul.msk.bf16.gmra.mxu1 %vm154_vm0, %v810_v19 }
 0x251   :  { %v679_v22 = vrot.slane %v678_v21, 4  ;;  %v621_v23 = vpop.f32.mrf.mxu3 }
 0x252   :  { %v622_v27 = vadd.f32 %v2869_v58, %v621_v23 }
 0x253   :  { %v680_v25 = vmax.f32 %v678_v21, %v679_v22 }
 0x254   :  { %v655_v33 = vmax.f32 %v622_v27, 0.0 }
 0x255   :  { %v681_v26 = vrot.slane %v680_v25, 2 }
 0x256   :  { %v685_v40 = vsel %vm154_vm0, %v655_v33, -inf }
 0x257   :  { %v682_v30 = vmax.f32 %v680_v25, %v681_v26 }
 0x259   :  { %v683_v31 = vrot.slane %v682_v30, 1  ;;  %v623_v32 = vpop.f32.mrf.mxu3 }
 0x25a   :  { %v624_v34 = vadd.f32 %v2869_v58, %v623_v32 }
 0x25b   :  { %v684_v37 = vmax.f32 %v682_v30, %v683_v31 }
 0x25c   :  { %v656_v38 = vmax.f32 %v624_v34, 0.0 }
 0x25d   :  { %v740_v39 = vpack.c.bf16 %v684_v37, %v684_v37 }
 0x25e   :  { %v686_v41 = vsel %vm154_vm0, %v656_v38, -inf  ;;  %v811_v42 = vpack.c.bf16 %v656_v38, %v655_v33 }
 0x25f   :  { %v766_v43 = vunpack.c.l.b16 %v740_v39  ;;  %v687_v45 = vmax.f32 %v685_v40, %v686_v41 }
 0x260   :  { %2340 = vmatmul.msk.bf16.gmra.mxu1 %vm154_vm0, %v811_v42 }
 0x261   :  { %v773_v46 = vsel %vm348_vm1, %v766_v43, %v765_v13  ;;  %v688_v47 = vrot.slane %v687_v45, 4  ;;  %v626_v49 = vpop.f32.mrf.mxu3 }
 0x262   :  { %v627_v54 = vadd.f32 %v2869_v58, %v626_v49 }
 0x263   :  { %v689_v50 = vmax.f32 %v687_v45, %v688_v47 }
 0x264   :  { %v657_v60 = vmax.f32 %v627_v54, 0.0 }
 0x265   :  { %v690_v51 = vrot.slane %v689_v50, 2 }
 0x266   :  { %v694_v25 = vsel %vm154_vm0, %v657_v60, -inf }
 0x267   :  { %v691_v52 = vmax.f32 %v689_v50, %v690_v51 }
 0x269   :  { %v692_v55 = vrot.slane %v691_v52, 1  ;;  %v628_v57 = vpop.f32.mrf.mxu3 }
 0x26a   :  { %v629_v48 = vadd.f32 %v2869_v58, %v628_v57 }
 0x26b   :  { %v693_v59 = vmax.f32 %v691_v52, %v692_v55 }
 0x26c   :  { %v658_v61 = vmax.f32 %v629_v48, 0.0 }
 0x26d   :  { %v741_v62 = vpack.c.bf16 %v693_v59, %v693_v59 }
 0x26e   :  { %v812_v63 = vpack.c.bf16 %v658_v61, %v657_v60  ;;  %v695_v22 = vsel %vm154_vm0, %v658_v61, -inf }
 0x26f   :  { %v767_v0 = vunpack.c.l.b16 %v741_v62  ;;  %v696_v27 = vmax.f32 %v694_v25, %v695_v22 }
 0x270   :  { %2341 = vmatmul.msk.bf16.gmra.mxu1 %vm154_vm0, %v812_v63 }
 0x271   :  { %v2891_v3 = vsel %vm350_vm2, %v767_v0, %v773_v46  ;;  %v631_v4 = vpop.f32.mrf.mxu3  ;;  %v697_v38 = vrot.slane %v696_v27, 4 }
 0x272   :  { %v632_v5 = vadd.f32 %v2869_v58, %v631_v4 }
 0x273   :  { %v698_v45 = vmax.f32 %v696_v27, %v697_v38 }
 0x274   :  { %v659_v8 = vmax.f32 %v632_v5, 0.0 }
 0x275   :  { %v699_v52 = vrot.slane %v698_v45, 2 }
 0x276   :  { %v703_v29 = vsel %vm154_vm0, %v659_v8, -inf }
 0x277   :  { %v700_v59 = vmax.f32 %v698_v45, %v699_v52 }
 0x279   :  { %v633_v6 = vpop.f32.mrf.mxu3  ;;  %v701_v5 = vrot.slane %v700_v59, 1 }
 0x27a   :  { %v634_v7 = vadd.f32 %v2869_v58, %v633_v6  ;;  %v2519_v6 = vld [vmem:[#allocation7 + $0x8] sm:$0xff] }
 0x27b   :  { %1079 = vmatpush.bf16.msra.mxu2 %v2519_v6 }
 0x27c   :  { %v660_v10 = vmax.f32 %v634_v7, 0.0  ;;  %v2529_v7 = vld [vmem:[%s3346_s1 + $0x28] sm:$0xff] }
 0x27d   :  { %1150 = vmatpush.bf16.msrb.mxu3 %v2529_v7 }
 0x27e   :  { %v813_v11 = vpack.c.bf16 %v660_v10, %v659_v8  ;;  %v704_v24 = vsel %vm154_vm0, %v660_v10, -inf }
 0x27f   :  { %v705_v31 = vmax.f32 %v703_v29, %v704_v24 }
 0x280   :  { %2342 = vmatmul.msk.bf16.gmra.mxu1 %vm154_vm0, %v813_v11 }
 0x281   :  { %v636_v12 = vpop.f32.mrf.mxu3  ;;  %v706_v39 = vrot.slane %v705_v31, 4 }
 0x282   :  { %v637_v15 = vadd.f32 %v2869_v58, %v636_v12 }
 0x283   :  { %v707_v49 = vmax.f32 %v705_v31, %v706_v39 }
 0x284   :  { %v661_v18 = vmax.f32 %v637_v15, 0.0 }
 0x285   :  { %v708_v54 = vrot.slane %v707_v49, 2 }
 0x286   :  { %v712_v32 = vsel %vm154_vm0, %v661_v18, -inf }
 0x287   :  { %v709_v61 = vmax.f32 %v707_v49, %v708_v54 }
 0x289   :  { %v638_v16 = vpop.f32.mrf.mxu3  ;;  %v710_v8 = vrot.slane %v709_v61, 1 }
 0x28a   :  { %v639_v17 = vadd.f32 %v2869_v58, %v638_v16 }
 0x28c   :  { %v662_v19 = vmax.f32 %v639_v17, 0.0  ;;  %v2518_v17 = vld [vmem:[#allocation7] sm:$0xff] }
 0x28d   :  { %1080 = vmatpush.bf16.msra.mxu2 %v2518_v17 }
 0x28e   :  { %v814_v20 = vpack.c.bf16 %v662_v19, %v661_v18  ;;  %v713_v26 = vsel %vm154_vm0, %v662_v19, -inf  ;;  %v702_v18 = vmax.f32 %v700_v59, %v701_v5 }
 0x28f   :  { %v714_v35 = vmax.f32 %v712_v32, %v713_v26 }
 0x290   :  { %2343 = vmatmul.msk.bf16.gmra.mxu1 %vm154_vm0, %v814_v20  ;;  %v711_v20 = vmax.f32 %v709_v61, %v710_v8  ;;  %v742_v24 = vpack.c.bf16 %v702_v18, %v702_v18 }
 0x291   :  { %v641_v21 = vpop.f32.mrf.mxu3  ;;  %v715_v13 = vrot.slane %v714_v35, 4 }
 0x292   :  { %v642_v23 = vadd.f32 %v2869_v58, %v641_v21  ;;  %v743_v26 = vpack.c.bf16 %v711_v20, %v711_v20  ;;  %v768_v31 = vunpack.c.l.b16 %v742_v24 }
 0x293   :  { %v716_v50 = vmax.f32 %v714_v35, %v715_v13 }
 0x294   :  { %v663_v33 = vmax.f32 %v642_v23, 0.0  ;;  %v775_v39 = vsel %vm352_vm3, %v768_v31, %v2891_v3  ;;  %v2528_v3 = vld [vmem:[%s3346_s1 + $0x20] sm:$0xff] }
 0x295   :  { %v717_v57 = vrot.slane %v716_v50, 2  ;;  %1151 = vmatpush.bf16.msrb.mxu3 %v2528_v3 }
 0x296   :  { %v721_v40 = vsel %vm154_vm0, %v663_v33, -inf }
 0x297   :  { %v718_v0 = vmax.f32 %v716_v50, %v717_v57 }
 0x299   :  { %v643_v30 = vpop.f32.mrf.mxu3  ;;  %v719_v15 = vrot.slane %v718_v0, 1 }
 0x29a   :  { %v644_v34 = vadd.f32 %v2869_v58, %v643_v30 }
 0x29b   :  { %v720_v21 = vmax.f32 %v718_v0, %v719_v15 }
 0x29c   :  { %v664_v37 = vmax.f32 %v644_v34, 0.0 }
 0x29d   :  { %v744_v27 = vpack.c.bf16 %v720_v21, %v720_v21 }
 0x29e   :  { %v722_v41 = vsel %vm154_vm0, %v664_v37, -inf  ;;  %v815_v42 = vpack.c.bf16 %v664_v37, %v663_v33  ;;  %v769_v33 = vunpack.c.l.b16 %v743_v26 }
 0x29f   :  { %v723_v43 = vmax.f32 %v721_v40, %v722_v41  ;;  %v770_v34 = vunpack.c.l.b16 %v744_v27 }
 0x2a0   :  { %2344 = vmatmul.msk.bf16.gmra.mxu1 %vm154_vm0, %v815_v42  ;;  %v776_v40 = vsel %vm354_vm4, %v769_v33, %v775_v39 }
 0x2a1   :  { %v724_v46 = vrot.slane %v723_v43, 4  ;;  %v646_v47 = vpop.f32.mrf.mxu3  ;;  %v777_v42 = vsel %vm356_vm5, %v770_v34, %v776_v40 }
 0x2a2   :  { %v647_v55 = vadd.f32 %v2869_v58, %v646_v47  ;;  %v2526_v47 = vld [vmem:[#allocation7 + $0x10] sm:$0xff] }
 0x2a3   :  { %v725_v51 = vmax.f32 %v723_v43, %v724_v46 }
 0x2a4   :  { %v665_v62 = vmax.f32 %v647_v55, 0.0 }
 0x2a5   :  { %v726_v48 = vrot.slane %v725_v51, 2 }
 0x2a6   :  { %v730_v10 = vsel %vm154_vm0, %v665_v62, -inf }
 0x2a7   :  { %v727_v2 = vmax.f32 %v725_v51, %v726_v48 }
 0x2a9   :  { %v648_v60 = vpop.f32.mrf.mxu3 }
 0x2aa   :  { %v649_v63 = vadd.f32 %v2869_v58, %v648_v60  ;;  %v728_v58 = vrot.slane %v727_v2, 1 }
 0x2ac   :  { %v666_v4 = vmax.f32 %v649_v63, 0.0  ;;  %v729_v23 = vmax.f32 %v727_v2, %v728_v58 }
 0x2ae   :  { %v731_v11 = vsel %vm154_vm0, %v666_v4, -inf  ;;  %v816_v12 = vpack.c.bf16 %v666_v4, %v665_v62  ;;  %v745_v30 = vpack.c.bf16 %v729_v23, %v729_v23 }
 0x2af   :  { %v732_v16 = vmax.f32 %v730_v10, %v731_v11 }
 0x2b0   :  { %2345 = vmatmul.msk.bf16.gmra.mxu1 %vm154_vm0, %v816_v12  ;;  %v771_v37 = vunpack.c.l.b16 %v745_v30 }
 0x2b1   :  { %v733_v19 = vrot.slane %v732_v16, 4 }
 0x2b2   :  { %v778_v13 = vsel %vm358_vm6, %v771_v37, %v777_v42 }
 0x2b3   :  { %v734_v22 = vmax.f32 %v732_v16, %v733_v19 }
 0x2b5   :  { %v735_v25 = vrot.slane %v734_v22, 2 }
 0x2b7   :  { %v736_v29 = vmax.f32 %v734_v22, %v735_v25 }
 0x2b9   :  { %v737_v32 = vrot.slane %v736_v29, 1 }
 0x2bb   :  { %v738_v35 = vmax.f32 %v736_v29, %v737_v32 }
 0x2bd   :  { %v746_v38 = vpack.c.bf16 %v738_v35, %v738_v35  ;;  %v867_v46 = vpop.f32.mrf.mxu1 }
 0x2bf   :  { %v772_v41 = vunpack.c.l.b16 %v746_v38 }
 0x2c1   :  { %v779_v43 = vsel %vm360_vm7, %v772_v41, %v778_v13 }
 0x2c2   :  { %v780_v45 = vpack.c.b16 %v779_v43, %v779_v43 }
 0x2c4   :  { %2329 = vmatmul.msk.bf16.vlgmr.msrb.gmra.mxu2 %vm154_vm0, %v780_v45 }
 0x2d4   :  { %2370 = vmatmul.msk.bf16.vlgmr.msra.gmra.mxu2 %vm154_vm0, %v2827_v56  ;;  %v2527_v56 = vld [vmem:[#allocation7 + $0x18] sm:$0xff] }
 0x2d5   :  { %1018 = vmatpush.bf16.msra.mxu0 %v2527_v56 }
 0x2d9   :  { %1019 = vmatpush.bf16.msra.mxu0 %v2526_v47 }
 0x2e4   :  { %2371 = vmatmul.msk.bf16.gmra.mxu2 %vm154_vm0, %v2832_v1  ;;  %v869_v1 = vpop.f32.mrf.mxu1 }
 0x2ec   :  { %v872_v49 = vpop.f32.mrf.mxu1 }
 0x2f4   :  { %2372 = vmatmul.msk.bf16.gmra.mxu2 %vm154_vm0, %v2837_v9  ;;  %v874_v9 = vpop.f32.mrf.mxu1 }
 0x304   :  { %2373 = vmatmul.msk.bf16.gmra.mxu2 %vm154_vm0, %v2842_v14  ;;  %v2553_v14 = vld [vmem:[%s3350_s5 + $0x1] ss:$0 sm:$0xff] }
 0x314   :  { %2374 = vmatmul.msk.bf16.gmra.mxu2 %vm154_vm0, %v2847_v28 }
 0x324   :  { %2375 = vmatmul.msk.bf16.gmra.mxu2 %vm154_vm0, %v2852_v36  ;;  %v877_v36 = vpop.f32.mrf.mxu1 }
 0x334   :  { %2376 = vmatmul.msk.bf16.gmra.mxu2 %vm154_vm0, %v2857_v44 }
 0x344   :  { %2377 = vmatmul.msk.bf16.gmra.mxu2 %vm154_vm0, %v2862_v53  ;;  %v879_v53 = vpop.f32.mrf.mxu1 }
 0x347   :  { %v805_v28 = vpop.f32.mrf.mxu2 }
 0x348   :  { %v2947_v50 = vadd.f32 %v2553_v14, %v805_v28 }
 0x34a   :  { %v915_v51 = vperm.slane %v2947_v50, 0  ;;  %v908_v59 = vrot.slane %v2947_v50, 1  ;;  %v909_v5 = vrot.slane %v2947_v50, 2  ;;  %v910_v16 = vrot.slane %v2947_v50, 3 }
 0x34b   :  { %v911_v24 = vrot.slane %v2947_v50, 4  ;;  %v912_v34 = vrot.slane %v2947_v50, 5  ;;  %v913_v13 = vrot.slane %v2947_v50, 6 }
 0x34c   :  { %v931_v52 = vadd.f32 %v915_v51, %v867_v46  ;;  %v932_v54 = vadd.f32 %v915_v51, %v869_v1  ;;  %v916_v60 = vperm.slane %v908_v59, 0  ;;  %v882_v2 = vpop.f32.mrf.mxu1  ;;  %v917_v6 = vperm.slane %v909_v5, 0 }
 0x34d   :  { %v918_v58 = vperm.slane %v910_v16, 0  ;;  %v919_v25 = vperm.slane %v911_v24, 0  ;;  %v920_v35 = vperm.slane %v912_v34, 0  ;;  %v921_v45 = vperm.slane %v913_v13, 0 }
 0x34e   :  { %v947_v55 = vmax.f32 %v931_v52, 0.0  ;;  %v948_v57 = vmax.f32 %v932_v54, 0.0  ;;  %v933_v61 = vadd.f32 %v916_v60, %v872_v49  ;;  %v934_v62 = vadd.f32 %v916_v60, %v874_v9 }
 0x34f   :  { %v807_v44 = vpop.f32.mrf.mxu2  ;;  %v935_v8 = vadd.f32 %v917_v6, %v877_v36  ;;  %v936_v10 = vadd.f32 %v917_v6, %v879_v53  ;;  %v937_v18 = vadd.f32 %v918_v58, %v882_v2  ;;  %v914_v9 = vrot.slane %v2947_v50, 7  ;;  %v2976_v50 = vld [vmem:[%s3347_s2 + $0x2] ss:$0 sm:$0xff] }
 0x350   :  { %v963_v48 = vpack.c.bf16 %v948_v57, %v947_v55  ;;  %v949_v63 = vmax.f32 %v933_v61, 0.0  ;;  %v950_v0 = vmax.f32 %v934_v62, 0.0  ;;  %v2531_v57 = vld [vmem:[#allocation5 + $0x28] sm:$0xff] }
 0x351   :  { %v951_v11 = vmax.f32 %v935_v8, 0.0  ;;  %v952_v12 = vmax.f32 %v936_v10, 0.0  ;;  %v953_v21 = vmax.f32 %v937_v18, 0.0  ;;  %v922_v14 = vperm.slane %v914_v9, 0  ;;  %1344 = vmatpush.bf16.msrb.mxu1 %v2531_v57 }
 0x352   :  { %2354 = vmatmul.msk.bf16.vlgmr.msra.gmra.mxu0 %vm154_vm0, %v963_v48  ;;  %2391 = vmatmul.msk.bf16.vlgmr.msrb.gmra.mxu3 %vm154_vm0, %v963_v48  ;;  %v964_v4 = vpack.c.bf16 %v950_v0, %v949_v63 }
 0x353   :  { %v965_v15 = vpack.c.bf16 %v952_v12, %v951_v11 }
 0x354   :  { %v884_v7 = vpop.f32.mrf.mxu1 }
 0x355   :  { %v938_v19 = vadd.f32 %v918_v58, %v884_v7 }
 0x357   :  { %v954_v22 = vmax.f32 %v938_v19, 0.0 }
 0x359   :  { %v966_v23 = vpack.c.bf16 %v954_v22, %v953_v21 }
 0x35c   :  { %v887_v17 = vpop.f32.mrf.mxu1 }
 0x35d   :  { %v939_v27 = vadd.f32 %v919_v25, %v887_v17 }
 0x35f   :  { %v955_v30 = vmax.f32 %v939_v27, 0.0 }
 0x362   :  { %2355 = vmatmul.msk.bf16.gmra.mxu0 %vm154_vm0, %v964_v4  ;;  %2392 = vmatmul.msk.bf16.gmra.mxu3 %vm154_vm0, %v964_v4 }
 0x364   :  { %v889_v20 = vpop.f32.mrf.mxu1 }
 0x365   :  { %v940_v29 = vadd.f32 %v919_v25, %v889_v20 }
 0x367   :  { %v956_v31 = vmax.f32 %v940_v29, 0.0 }
 0x369   :  { %v967_v33 = vpack.c.bf16 %v956_v31, %v955_v30 }
 0x36c   :  { %v892_v26 = vpop.f32.mrf.mxu1 }
 0x36d   :  { %v941_v37 = vadd.f32 %v920_v35, %v892_v26 }
 0x36f   :  { %v957_v40 = vmax.f32 %v941_v37, 0.0 }
 0x372   :  { %2356 = vmatmul.msk.bf16.gmra.mxu0 %vm154_vm0, %v965_v15  ;;  %2393 = vmatmul.msk.bf16.gmra.mxu3 %vm154_vm0, %v965_v15 }
 0x374   :  { %v894_v32 = vpop.f32.mrf.mxu1 }
 0x375   :  { %v942_v38 = vadd.f32 %v920_v35, %v894_v32 }
 0x377   :  { %v958_v41 = vmax.f32 %v942_v38, 0.0 }
 0x379   :  { %v968_v42 = vpack.c.bf16 %v958_v41, %v957_v40 }
 0x37c   :  { %v897_v39 = vpop.f32.mrf.mxu1 }
 0x37d   :  { %v943_v3 = vadd.f32 %v921_v45, %v897_v39 }
 0x37f   :  { %v959_v56 = vmax.f32 %v943_v3, 0.0 }
 0x382   :  { %2357 = vmatmul.msk.bf16.gmra.mxu0 %vm154_vm0, %v966_v23  ;;  %2394 = vmatmul.msk.bf16.gmra.mxu3 %vm154_vm0, %v966_v23 }
 0x384   :  { %v899_v43 = vpop.f32.mrf.mxu1 }
 0x385   :  { %v944_v46 = vadd.f32 %v921_v45, %v899_v43 }
 0x387   :  { %v960_v1 = vmax.f32 %v944_v46, 0.0 }
 0x389   :  { %v969_v49 = vpack.c.bf16 %v960_v1, %v959_v56 }
 0x38c   :  { %v902_v47 = vpop.f32.mrf.mxu1 }
 0x38d   :  { %v945_v36 = vadd.f32 %v922_v14, %v902_v47 }
 0x38f   :  { %v961_v52 = vmax.f32 %v945_v36, 0.0 }
 0x392   :  { %2358 = vmatmul.msk.bf16.gmra.mxu0 %vm154_vm0, %v967_v33  ;;  %2395 = vmatmul.msk.bf16.gmra.mxu3 %vm154_vm0, %v967_v33 }
 0x394   :  { %v904_v28 = vpop.f32.mrf.mxu1 }
 0x395   :  { %v946_v51 = vadd.f32 %v922_v14, %v904_v28 }
 0x397   :  { %v962_v54 = vmax.f32 %v946_v51, 0.0 }
 0x399   :  { %v970_v55 = vpack.c.bf16 %v962_v54, %v961_v52 }
 0x3a2   :  { %2359 = vmatmul.msk.bf16.gmra.mxu0 %vm154_vm0, %v968_v42  ;;  %2396 = vmatmul.msk.bf16.gmra.mxu3 %vm154_vm0, %v968_v42 }
 0x3b2   :  { %2360 = vmatmul.msk.bf16.gmra.mxu0 %vm154_vm0, %v969_v49  ;;  %2397 = vmatmul.msk.bf16.gmra.mxu3 %vm154_vm0, %v969_v49 }
 0x3c2   :  { %2361 = vmatmul.msk.bf16.gmra.mxu0 %vm154_vm0, %v970_v55  ;;  %2398 = vmatmul.msk.bf16.gmra.mxu3 %vm154_vm0, %v970_v55 }
 0x3d5   :  { %v1153_v44 = vpop.f32.mrf.mxu3 }
 0x3d6   :  { %v2979_v48 = vadd.f32 %v2976_v50, %v1153_v44  ;;  %v2530_v44 = vld [vmem:[#allocation5 + $0x20] sm:$0xff] }
 0x3d7   :  { %1345 = vmatpush.bf16.msrb.mxu1 %v2530_v44 }
 0x3d8   :  { %v1193_v53 = vmax.f32 %v2979_v48, 0.0  ;;  %v2535_v48 = vld [vmem:[#allocation7 + $0x28] sm:$0xff] }
 0x3d9   :  { %1560 = vmatpush.bf16.msrb.mxu0 %v2535_v48 }
 0x3da   :  { %v1209_v62 = vsel %vm154_vm0, %v1193_v53, -inf }
 0x3dd   :  { %v1155_v59 = vpop.f32.mrf.mxu3 }
 0x3de   :  { %v2983_v60 = vadd.f32 %v2976_v50, %v1155_v59 }
 0x3e0   :  { %v1194_v61 = vmax.f32 %v2983_v60, 0.0  ;;  %v2534_v60 = vld [vmem:[#allocation7 + $0x20] sm:$0xff] }
 0x3e1   :  { %1561 = vmatpush.bf16.msrb.mxu0 %v2534_v60 }
 0x3e2   :  { %v1210_v63 = vsel %vm154_vm0, %v1194_v61, -inf }
 0x3e3   :  { %v1211_v0 = vmax.f32 %v1209_v62, %v1210_v63 }
 0x3e5   :  { %v1158_v2 = vpop.f32.mrf.mxu3  ;;  %v1212_v4 = vrot.slane %v1211_v0, 4 }
 0x3e6   :  { %v2993_v5 = vadd.f32 %v2976_v50, %v1158_v2 }
 0x3e7   :  { %v1213_v6 = vmax.f32 %v1211_v0, %v1212_v4 }
 0x3e8   :  { %v1195_v8 = vmax.f32 %v2993_v5, 0.0  ;;  %v3080_v5 = vpop.f32.mrf.mxu2 }
 0x3e9   :  { %v1214_v11 = vrot.slane %v1213_v6, 2 }
 0x3ea   :  { %v1218_v15 = vsel %vm154_vm0, %v1195_v8, -inf }
 0x3eb   :  { %v1215_v17 = vmax.f32 %v1213_v6, %v1214_v11 }
 0x3ed   :  { %v1160_v7 = vpop.f32.mrf.mxu3  ;;  %v1216_v20 = vrot.slane %v1215_v17, 1 }
 0x3ee   :  { %v2997_v10 = vadd.f32 %v2976_v50, %v1160_v7 }
 0x3ef   :  { %v1217_v24 = vmax.f32 %v1215_v17, %v1216_v20 }
 0x3f0   :  { %v1196_v12 = vmax.f32 %v2997_v10, 0.0 }
 0x3f1   :  { %v1281_v31 = vpack.c.bf16 %v1217_v24, %v1217_v24 }
 0x3f2   :  { %v1219_v16 = vsel %vm154_vm0, %v1196_v12, -inf }
 0x3f3   :  { %v1220_v58 = vmax.f32 %v1218_v15, %v1219_v16  ;;  %v1307_v39 = vunpack.c.l.b16 %v1281_v31 }
 0x3f5   :  { %v1221_v18 = vrot.slane %v1220_v58, 4  ;;  %v1163_v19 = vpop.f32.mrf.mxu3 }
 0x3f6   :  { %v1164_v23 = vadd.f32 %v2976_v50, %v1163_v19 }
 0x3f7   :  { %v1222_v21 = vmax.f32 %v1220_v58, %v1221_v18 }
 0x3f8   :  { %v1197_v29 = vmax.f32 %v1164_v23, 0.0 }
 0x3f9   :  { %v1223_v22 = vrot.slane %v1222_v21, 2 }
 0x3fa   :  { %v1227_v35 = vsel %vm154_vm0, %v1197_v29, -inf }
 0x3fb   :  { %v1224_v25 = vmax.f32 %v1222_v21, %v1223_v22 }
 0x3fd   :  { %v1225_v26 = vrot.slane %v1224_v25, 1  ;;  %v1165_v27 = vpop.f32.mrf.mxu3 }
 0x3fe   :  { %v1166_v30 = vadd.f32 %v2976_v50, %v1165_v27 }
 0x3ff   :  { %v1226_v32 = vmax.f32 %v1224_v25, %v1225_v26 }
 0x400   :  { %v1198_v33 = vmax.f32 %v1166_v30, 0.0 }
 0x401   :  { %v1282_v34 = vpack.c.bf16 %v1226_v32, %v1226_v32 }
 0x402   :  { %v1228_v37 = vsel %vm154_vm0, %v1198_v33, -inf  ;;  %v3010_v38 = vpack.c.bf16 %v1198_v33, %v1197_v29 }
 0x403   :  { %v1308_v40 = vunpack.c.l.b16 %v1282_v34  ;;  %v1229_v41 = vmax.f32 %v1227_v35, %v1228_v37 }
 0x405   :  { %v1315_v42 = vsel %vm348_vm1, %v1308_v40, %v1307_v39  ;;  %v1230_v13 = vrot.slane %v1229_v41, 4  ;;  %v1168_v43 = vpop.f32.mrf.mxu3 }
 0x406   :  { %v1169_v46 = vadd.f32 %v2976_v50, %v1168_v43 }
 0x407   :  { %v1231_v45 = vmax.f32 %v1229_v41, %v1230_v13 }
 0x408   :  { %v1199_v49 = vmax.f32 %v1169_v46, 0.0 }
 0x409   :  { %v1232_v3 = vrot.slane %v1231_v45, 2 }
 0x40a   :  { %v1236_v51 = vsel %vm154_vm0, %v1199_v49, -inf }
 0x40b   :  { %v1233_v56 = vmax.f32 %v1231_v45, %v1232_v3 }
 0x40d   :  { %v1234_v1 = vrot.slane %v1233_v56, 1  ;;  %v1170_v47 = vpop.f32.mrf.mxu3 }
 0x40e   :  { %v1171_v9 = vadd.f32 %v2976_v50, %v1170_v47 }
 0x40f   :  { %v1235_v14 = vmax.f32 %v1233_v56, %v1234_v1 }
 0x410   :  { %v1200_v28 = vmax.f32 %v1171_v9, 0.0 }
 0x411   :  { %v1283_v36 = vpack.c.bf16 %v1235_v14, %v1235_v14 }
 0x412   :  { %v1237_v52 = vsel %vm154_vm0, %v1200_v28, -inf  ;;  %v3017_v54 = vpack.c.bf16 %v1200_v28, %v1199_v49 }
 0x413   :  { %v1309_v55 = vunpack.c.l.b16 %v1283_v36  ;;  %v1238_v57 = vmax.f32 %v1236_v51, %v1237_v52  ;;  %v2533_v36 = vld [vmem:[#allocation2 + $0x28] sm:$0xff] }
 0x414   :  { %1406 = vmatpush.bf16.msra.mxu1 %v2533_v36 }
 0x415   :  { %v1316_v59 = vsel %vm350_vm2, %v1309_v55, %v1315_v42  ;;  %v1239_v62 = vrot.slane %v1238_v57, 4  ;;  %v1173_v63 = vpop.f32.mrf.mxu3  ;;  %v2532_v55 = vld [vmem:[#allocation2 + $0x20] sm:$0xff] }
 0x416   :  { %v1174_v6 = vadd.f32 %v2976_v50, %v1173_v63 }
 0x417   :  { %v1240_v0 = vmax.f32 %v1238_v57, %v1239_v62 }
 0x418   :  { %v1201_v17 = vmax.f32 %v1174_v6, 0.0  ;;  %1407 = vmatpush.bf16.msra.mxu1 %v2532_v55 }
 0x419   :  { %v1241_v2 = vrot.slane %v1240_v0, 2 }
 0x41a   :  { %v1245_v34 = vsel %vm154_vm0, %v1201_v17, -inf }
 0x41b   :  { %v1242_v4 = vmax.f32 %v1240_v0, %v1241_v2 }
 0x41d   :  { %v1243_v7 = vrot.slane %v1242_v4, 1  ;;  %v1175_v11 = vpop.f32.mrf.mxu3 }
 0x41e   :  { %v1176_v15 = vadd.f32 %v2976_v50, %v1175_v11 }
 0x41f   :  { %v1244_v16 = vmax.f32 %v1242_v4, %v1243_v7 }
 0x420   :  { %v1202_v58 = vmax.f32 %v1176_v15, 0.0 }
 0x421   :  { %v1284_v18 = vpack.c.bf16 %v1244_v16, %v1244_v16 }
 0x422   :  { %v3022_v19 = vpack.c.bf16 %v1202_v58, %v1201_v17  ;;  %v1246_v32 = vsel %vm154_vm0, %v1202_v58, -inf }
 0x423   :  { %v1310_v20 = vunpack.c.l.b16 %v1284_v18  ;;  %v1247_v37 = vmax.f32 %v1245_v34, %v1246_v32 }
 0x425   :  { %v1178_v21 = vpop.f32.mrf.mxu3  ;;  %v3025_v22 = vsel %vm352_vm3, %v1310_v20, %v1316_v59  ;;  %v1248_v43 = vrot.slane %v1247_v37, 4 }
 0x426   :  { %v1179_v23 = vadd.f32 %v2976_v50, %v1178_v21 }
 0x427   :  { %v1249_v9 = vmax.f32 %v1247_v37, %v1248_v43 }
 0x428   :  { %v1203_v26 = vmax.f32 %v1179_v23, 0.0 }
 0x429   :  { %v1250_v51 = vrot.slane %v1249_v9, 2 }
 0x42a   :  { %v1254_v39 = vsel %vm154_vm0, %v1203_v26, -inf }
 0x42b   :  { %v1251_v62 = vmax.f32 %v1249_v9, %v1250_v51 }
 0x42d   :  { %v1180_v24 = vpop.f32.mrf.mxu3  ;;  %v1252_v7 = vrot.slane %v1251_v62, 1 }
 0x42e   :  { %v1181_v25 = vadd.f32 %v2976_v50, %v1180_v24 }
 0x42f   :  { %v1253_v21 = vmax.f32 %v1251_v62, %v1252_v7 }
 0x430   :  { %v1204_v27 = vmax.f32 %v1181_v25, 0.0 }
 0x432   :  { %v3029_v29 = vpack.c.bf16 %v1204_v27, %v1203_v26  ;;  %v1255_v33 = vsel %vm154_vm0, %v1204_v27, -inf  ;;  %v1285_v27 = vpack.c.bf16 %v1253_v21, %v1253_v21 }
 0x433   :  { %v1256_v42 = vmax.f32 %v1254_v39, %v1255_v33 }
 0x434   :  { %v1311_v34 = vunpack.c.l.b16 %v1285_v27 }
 0x435   :  { %v1183_v30 = vpop.f32.mrf.mxu3  ;;  %v1257_v56 = vrot.slane %v1256_v42, 4 }
 0x436   :  { %v1184_v31 = vadd.f32 %v2976_v50, %v1183_v30 }
 0x437   :  { %v1258_v14 = vmax.f32 %v1256_v42, %v1257_v56  ;;  %v1351_v56 = vpack.c.bf16 %v1194_v61, %v1193_v53  ;;  %v3077_v53 = vpop.f32.mrf.mxu0 }
 0x438   :  { %v1205_v40 = vmax.f32 %v1184_v31, 0.0 }
 0x439   :  { %v1259_v57 = vrot.slane %v1258_v14, 2 }
 0x43a   :  { %v1263_v45 = vsel %vm154_vm0, %v1205_v40, -inf }
 0x43b   :  { %v1260_v2 = vmax.f32 %v1258_v14, %v1259_v57 }
 0x43d   :  { %v1185_v35 = vpop.f32.mrf.mxu3  ;;  %v1261_v17 = vrot.slane %v1260_v2, 1 }
 0x43e   :  { %v1186_v41 = vadd.f32 %v2976_v50, %v1185_v35 }
 0x43f   :  { %v1262_v23 = vmax.f32 %v1260_v2, %v1261_v17 }
 0x440   :  { %v1206_v13 = vmax.f32 %v1186_v41, 0.0  ;;  %v1318_v41 = vsel %vm354_vm4, %v1311_v34, %v3025_v22  ;;  %v1352_v22 = vpack.c.bf16 %v1196_v12, %v1195_v8  ;;  %v3082_v8 = vpop.f32.mrf.mxu0  ;;  %v2555_v12 = vld [vmem:[%s3350_s5 + $0x2] ss:$0 sm:$0xff] }
 0x441   :  { %v1286_v30 = vpack.c.bf16 %v1262_v23, %v1262_v23 }
 0x442   :  { %v1264_v3 = vsel %vm154_vm0, %v1206_v13, -inf  ;;  %v3039_v46 = vpack.c.bf16 %v1206_v13, %v1205_v40 }
 0x443   :  { %v1265_v1 = vmax.f32 %v1263_v45, %v1264_v3  ;;  %v1312_v35 = vunpack.c.l.b16 %v1286_v30 }
 0x445   :  { %v1266_v47 = vrot.slane %v1265_v1, 4  ;;  %v1188_v49 = vpop.f32.mrf.mxu3  ;;  %v1319_v13 = vsel %vm356_vm5, %v1312_v35, %v1318_v41 }
 0x446   :  { %v1189_v52 = vadd.f32 %v2976_v50, %v1188_v49 }
 0x447   :  { %v1267_v28 = vmax.f32 %v1265_v1, %v1266_v47  ;;  %v2536_v1 = vld [vmem:[%s3346_s1 + $0x30] sm:$0xff] }
 0x448   :  { %v1207_v63 = vmax.f32 %v1189_v52, 0.0 }
 0x449   :  { %v1268_v44 = vrot.slane %v1267_v28, 2 }
 0x44a   :  { %v1272_v11 = vsel %vm154_vm0, %v1207_v63, -inf }
 0x44b   :  { %v1269_v4 = vmax.f32 %v1267_v28, %v1268_v44 }
 0x44d   :  { %v1190_v59 = vpop.f32.mrf.mxu3  ;;  %v1270_v18 = vrot.slane %v1269_v4, 1 }
 0x44e   :  { %v1191_v0 = vadd.f32 %v2976_v50, %v1190_v59  ;;  %v2537_v50 = vld [vmem:[%s3346_s1 + $0x38] sm:$0xff] }
 0x44f   :  { %v1271_v25 = vmax.f32 %v1269_v4, %v1270_v18  ;;  %1647 = vmatpush.bf16.msrb.mxu2 %v2537_v50 }
 0x450   :  { %v1208_v6 = vmax.f32 %v1191_v0, 0.0 }
 0x451   :  { %v1287_v32 = vpack.c.bf16 %v1271_v25, %v1271_v25 }
 0x452   :  { %v1273_v15 = vsel %vm154_vm0, %v1208_v6, -inf  ;;  %v1358_v16 = vpack.c.bf16 %v1208_v6, %v1207_v63 }
 0x453   :  { %v1274_v58 = vmax.f32 %v1272_v11, %v1273_v15  ;;  %v1313_v39 = vunpack.c.l.b16 %v1287_v32  ;;  %1648 = vmatpush.bf16.msrb.mxu2 %v2536_v1 }
 0x455   :  { %v1275_v20 = vrot.slane %v1274_v58, 4  ;;  %v1320_v43 = vsel %vm358_vm6, %v1313_v39, %v1319_v13 }
 0x457   :  { %v1276_v24 = vmax.f32 %v1274_v58, %v1275_v20 }
 0x459   :  { %v1277_v26 = vrot.slane %v1276_v24, 2 }
 0x45b   :  { %v1278_v31 = vmax.f32 %v1276_v24, %v1277_v26 }
 0x45d   :  { %v1279_v33 = vrot.slane %v1278_v31, 1 }
 0x45f   :  { %v1280_v37 = vmax.f32 %v1278_v31, %v1279_v33 }
 0x461   :  { %v1288_v40 = vpack.c.bf16 %v1280_v37, %v1280_v37 }
 0x463   :  { %v1314_v42 = vunpack.c.l.b16 %v1288_v40 }
 0x465   :  { %v1321_v45 = vsel %vm360_vm7, %v1314_v42, %v1320_v43 }
 0x466   :  { %v1322_v3 = vpack.c.b16 %v1321_v45, %v1321_v45 }
 0x468   :  { %2408 = vmatmul.msk.bf16.vlgmr.msrb.gmra.mxu1 %vm154_vm0, %v1322_v3 }
 0x478   :  { %2417 = vmatmul.msk.bf16.vlgmr.msra.gmra.mxu1 %vm154_vm0, %v1351_v56 }
 0x488   :  { %2418 = vmatmul.msk.bf16.gmra.mxu1 %vm154_vm0, %v1352_v22 }
 0x498   :  { %2419 = vmatmul.msk.bf16.gmra.mxu1 %vm154_vm0, %v3010_v38  ;;  %v3087_v38 = vpop.f32.mrf.mxu2 }
 0x4a0   :  { %v3094_v49 = vpop.f32.mrf.mxu2 }
 0x4a8   :  { %2420 = vmatmul.msk.bf16.gmra.mxu1 %vm154_vm0, %v3017_v54  ;;  %v3101_v44 = vpop.f32.mrf.mxu2 }
 0x4b0   :  { %v3105_v7 = vpop.f32.mrf.mxu2 }
 0x4b8   :  { %2421 = vmatmul.msk.bf16.gmra.mxu1 %vm154_vm0, %v3022_v19  ;;  %v3112_v18 = vpop.f32.mrf.mxu2 }
 0x4c0   :  { %v3118_v27 = vpop.f32.mrf.mxu2 }
 0x4c8   :  { %2422 = vmatmul.msk.bf16.gmra.mxu1 %vm154_vm0, %v3029_v29  ;;  %v3091_v29 = vpop.f32.mrf.mxu0  ;;  %v3123_v39 = vpop.f32.mrf.mxu2 }
 0x4d0   :  { %v3096_v51 = vpop.f32.mrf.mxu0  ;;  %v3130_v3 = vpop.f32.mrf.mxu2 }
 0x4d8   :  { %2423 = vmatmul.msk.bf16.gmra.mxu1 %vm154_vm0, %v3039_v46  ;;  %v3103_v62 = vpop.f32.mrf.mxu0 }
 0x4e0   :  { %v3109_v15 = vpop.f32.mrf.mxu0 }
 0x4e5   :  { %v1347_v61 = vpop.f32.mrf.mxu1 }
 0x4e6   :  { %v3089_v19 = vadd.f32 %v2555_v12, %v1347_v61 }
 0x4e8   :  { %2424 = vmatmul.msk.bf16.gmra.mxu1 %vm154_vm0, %v1358_v16  ;;  %v1457_v46 = vperm.slane %v3089_v19, 0  ;;  %v1450_v57 = vrot.slane %v3089_v19, 1  ;;  %v1451_v17 = vrot.slane %v3089_v19, 2  ;;  %v3114_v24 = vpop.f32.mrf.mxu0  ;;  %v1452_v31 = vrot.slane %v3089_v19, 3 }
 0x4e9   :  { %v1453_v45 = vrot.slane %v3089_v19, 4 }
 0x4ea   :  { %v1458_v59 = vperm.slane %v1450_v57, 0  ;;  %v1459_v58 = vperm.slane %v1451_v17, 0  ;;  %v1460_v33 = vperm.slane %v1452_v31, 0  ;;  %v1456_v31 = vrot.slane %v3089_v19, 7 }
 0x4eb   :  { %v1461_v56 = vperm.slane %v1453_v45, 0 }
 0x4ed   :  { %v1349_v10 = vpop.f32.mrf.mxu1 }
 0x4f0   :  { %v3121_v32 = vpop.f32.mrf.mxu0 }
 0x4f5   :  { %v1409_v54 = vpop.f32.mrf.mxu1 }
 0x4f6   :  { %v1473_v47 = vadd.f32 %v1457_v46, %v1409_v54  ;;  %v3134_v54 = vpop.f32.mrf.mxu2 }
 0x4f8   :  { %v1489_v28 = vmax.f32 %v1473_v47, 0.0  ;;  %v3125_v13 = vpop.f32.mrf.mxu0  ;;  %v1454_v47 = vrot.slane %v3089_v19, 5 }
 0x4fd   :  { %v1411_v9 = vpop.f32.mrf.mxu1 }
 0x4fe   :  { %v1474_v14 = vadd.f32 %v1457_v46, %v1411_v9 }
 0x500   :  { %v1490_v36 = vmax.f32 %v1474_v14, 0.0  ;;  %v3132_v1 = vpop.f32.mrf.mxu0  ;;  %v1462_v14 = vperm.slane %v1454_v47, 0 }
 0x502   :  { %v1505_v52 = vpack.c.bf16 %v1490_v36, %v1489_v28  ;;  %v3141_v36 = vpop.f32.mrf.mxu2 }
 0x504   :  { %2433 = vmatmul.msk.bf16.vlgmr.msrb.gmra.mxu0 %vm154_vm0, %v1505_v52  ;;  %2454 = vmatmul.msk.bf16.vlgmr.msrb.gmra.mxu2 %vm154_vm0, %v1505_v52 }
 0x505   :  { %v1414_v55 = vpop.f32.mrf.mxu1 }
 0x506   :  { %v1475_v63 = vadd.f32 %v1458_v59, %v1414_v55 }
 0x508   :  { %v1491_v4 = vmax.f32 %v1475_v63, 0.0  ;;  %v3139_v9 = vpop.f32.mrf.mxu0 }
 0x50d   :  { %v1416_v0 = vpop.f32.mrf.mxu1 }
 0x50e   :  { %v1476_v2 = vadd.f32 %v1458_v59, %v1416_v0 }
 0x510   :  { %v1492_v6 = vmax.f32 %v1476_v2, 0.0  ;;  %v3143_v63 = vpop.f32.mrf.mxu0 }
 0x512   :  { %v1506_v11 = vpack.c.bf16 %v1492_v6, %v1491_v4  ;;  %v1455_v4 = vrot.slane %v3089_v19, 6  ;;  %v3148_v6 = vpop.f32.mrf.mxu2 }
 0x514   :  { %2434 = vmatmul.msk.bf16.gmra.mxu0 %vm154_vm0, %v1506_v11  ;;  %2455 = vmatmul.msk.bf16.gmra.mxu2 %vm154_vm0, %v1506_v11  ;;  %v1463_v11 = vperm.slane %v1455_v4, 0 }
 0x515   :  { %v1419_v16 = vpop.f32.mrf.mxu1 }
 0x516   :  { %v1477_v20 = vadd.f32 %v1459_v58, %v1419_v16 }
 0x518   :  { %v1493_v25 = vmax.f32 %v1477_v20, 0.0  ;;  %v3150_v16 = vpop.f32.mrf.mxu0 }
 0x51d   :  { %v1421_v21 = vpop.f32.mrf.mxu1 }
 0x51e   :  { %v1478_v23 = vadd.f32 %v1459_v58, %v1421_v21 }
 0x520   :  { %v1494_v50 = vmax.f32 %v1478_v23, 0.0 }
 0x522   :  { %v1507_v26 = vpack.c.bf16 %v1494_v50, %v1493_v25  ;;  %v3152_v25 = vpop.f32.mrf.mxu2 }
 0x524   :  { %2435 = vmatmul.msk.bf16.gmra.mxu0 %vm154_vm0, %v1507_v26  ;;  %2456 = vmatmul.msk.bf16.gmra.mxu2 %vm154_vm0, %v1507_v26  ;;  %v3156_v26 = vpop.f32.mrf.mxu0 }
 0x525   :  { %v1424_v30 = vpop.f32.mrf.mxu1 }
 0x526   :  { %v1479_v34 = vadd.f32 %v1460_v33, %v1424_v30 }
 0x528   :  { %v1495_v40 = vmax.f32 %v1479_v34, 0.0 }
 0x52a   :  { %v3159_v34 = vpop.f32.mrf.mxu2 }
 0x52d   :  { %v1426_v35 = vpop.f32.mrf.mxu1 }
 0x52e   :  { %v1480_v37 = vadd.f32 %v1460_v33, %v1426_v35  ;;  %v1464_v33 = vperm.slane %v1456_v31, 0 }
 0x530   :  { %v1496_v41 = vmax.f32 %v1480_v37, 0.0 }
 0x532   :  { %v1508_v42 = vpack.c.bf16 %v1496_v41, %v1495_v40  ;;  %v3161_v41 = vpop.f32.mrf.mxu0 }
 0x534   :  { %2436 = vmatmul.msk.bf16.gmra.mxu0 %vm154_vm0, %v1508_v42  ;;  %2457 = vmatmul.msk.bf16.gmra.mxu2 %vm154_vm0, %v1508_v42 }
 0x535   :  { %v1429_v43 = vpop.f32.mrf.mxu1 }
 0x536   :  { %v1481_v22 = vadd.f32 %v1461_v56, %v1429_v43 }
 0x538   :  { %v1497_v61 = vmax.f32 %v1481_v22, 0.0 }
 0x53a   :  { %v3167_v22 = vpop.f32.mrf.mxu0 }
 0x53b   :  { %3355 = vst [vmem:[#allocation13_spill] sm:$0xff] %v3167_v22 }
 0x53d   :  { %v1431_v48 = vpop.f32.mrf.mxu1 }
 0x53e   :  { %v1482_v60 = vadd.f32 %v1461_v56, %v1431_v48  ;;  %v3165_v56 = vpop.f32.mrf.mxu2  ;;  %v1083_v48 = vadd.f32 %v3080_v5, %v3077_v53 }
 0x53f   :  { %3354 = vst [vmem:[#allocation12_spill] sm:$0xff] %v3165_v56 }
 0x540   :  { %v1498_v10 = vmax.f32 %v1482_v60, 0.0 }
 0x542   :  { %v1509_v12 = vpack.c.bf16 %v1498_v10, %v1497_v61  ;;  %v2539_v10 = vld [vmem:[#allocation5 + $0x38] sm:$0xff] }
 0x543   :  { %1841 = vmatpush.bf16.msra.mxu3 %v2539_v10 }
 0x544   :  { %2437 = vmatmul.msk.bf16.gmra.mxu0 %vm154_vm0, %v1509_v12  ;;  %2458 = vmatmul.msk.bf16.gmra.mxu2 %vm154_vm0, %v1509_v12 }
 0x545   :  { %v1434_v46 = vpop.f32.mrf.mxu1 }
 0x546   :  { %v1483_v28 = vadd.f32 %v1462_v14, %v1434_v46  ;;  %v3169_v19 = vpop.f32.mrf.mxu2  ;;  %v3178_v46 = vld [vmem:[%s3347_s2 + $0x3] ss:$0 sm:$0xff] }
 0x547   :  { %3356 = vst [vmem:[#allocation14_spill] sm:$0xff] %v3169_v19 }
 0x548   :  { %v1499_v57 = vmax.f32 %v1483_v28, 0.0 }
 0x54d   :  { %v1436_v52 = vpop.f32.mrf.mxu1 }
 0x54e   :  { %v1484_v55 = vadd.f32 %v1462_v14, %v1436_v52  ;;  %v1088_v52 = vadd.f32 %v3094_v49, %v3091_v29 }
 0x550   :  { %v1500_v59 = vmax.f32 %v1484_v55, 0.0 }
 0x552   :  { %v1510_v0 = vpack.c.bf16 %v1500_v59, %v1499_v57 }
 0x554   :  { %2438 = vmatmul.msk.bf16.gmra.mxu0 %vm154_vm0, %v1510_v0  ;;  %2459 = vmatmul.msk.bf16.gmra.mxu2 %vm154_vm0, %v1510_v0 }
 0x555   :  { %v1439_v2 = vpop.f32.mrf.mxu1 }
 0x556   :  { %v1485_v17 = vadd.f32 %v1463_v11, %v1439_v2 }
 0x558   :  { %v1501_v21 = vmax.f32 %v1485_v17, 0.0 }
 0x55d   :  { %v1441_v58 = vpop.f32.mrf.mxu1 }
 0x55e   :  { %v1486_v20 = vadd.f32 %v1463_v11, %v1441_v58 }
 0x560   :  { %v1502_v23 = vmax.f32 %v1486_v20, 0.0 }
 0x562   :  { %v1511_v50 = vpack.c.bf16 %v1502_v23, %v1501_v21  ;;  %v1093_v23 = vadd.f32 %v3105_v7, %v3103_v62 }
 0x564   :  { %2439 = vmatmul.msk.bf16.gmra.mxu0 %vm154_vm0, %v1511_v50  ;;  %2460 = vmatmul.msk.bf16.gmra.mxu2 %vm154_vm0, %v1511_v50 }
 0x565   :  { %v1444_v30 = vpop.f32.mrf.mxu1 }
 0x566   :  { %v1487_v35 = vadd.f32 %v1464_v33, %v1444_v30 }
 0x568   :  { %v1503_v42 = vmax.f32 %v1487_v35, 0.0 }
 0x56d   :  { %v1446_v37 = vpop.f32.mrf.mxu1 }
 0x56e   :  { %v1488_v40 = vadd.f32 %v1464_v33, %v1446_v37 }
 0x570   :  { %v1504_v43 = vmax.f32 %v1488_v40, 0.0 }
 0x572   :  { %v1512_v45 = vpack.c.bf16 %v1504_v43, %v1503_v42 }
 0x574   :  { %2440 = vmatmul.msk.bf16.gmra.mxu0 %vm154_vm0, %v1512_v45  ;;  %2461 = vmatmul.msk.bf16.gmra.mxu2 %vm154_vm0, %v1512_v45 }
 0x581   :  { %v1563_v60 = vpop.f32.mrf.mxu0 }
 0x582   :  { %v3173_v61 = vadd.f32 %v1563_v60, %v1083_v48 }
 0x587   :  { %v1650_v12 = vpop.f32.mrf.mxu2 }
 0x588   :  { %v1651_v14 = vadd.f32 %v3178_v46, %v1650_v12 }
 0x589   :  { %v3180_v47 = vpop.f32.mrf.mxu0 }
 0x58a   :  { %v1690_v53 = vmax.f32 %v1651_v14, 0.0 }
 0x58c   :  { %v1706_v0 = vsel %vm154_vm0, %v1690_v53, -inf }
 0x58f   :  { %v1652_v28 = vpop.f32.mrf.mxu2 }
 0x590   :  { %v1653_v5 = vadd.f32 %v3178_v46, %v1652_v28 }
 0x591   :  { %v1568_v55 = vpop.f32.mrf.mxu0 }
 0x592   :  { %v1691_v57 = vmax.f32 %v1653_v5, 0.0  ;;  %v3186_v59 = vadd.f32 %v1568_v55, %v1088_v52 }
 0x594   :  { %v1707_v2 = vsel %vm154_vm0, %v1691_v57, -inf  ;;  %v3190_v4 = vpack.c.bf16 %v1691_v57, %v1690_v53  ;;  %v1098_v57 = vadd.f32 %v3118_v27, %v3114_v24 }
 0x595   :  { %v1708_v11 = vmax.f32 %v1706_v0, %v1707_v2 }
 0x597   :  { %v1655_v17 = vpop.f32.mrf.mxu2  ;;  %v1709_v58 = vrot.slane %v1708_v11, 4 }
 0x598   :  { %v1656_v29 = vadd.f32 %v3178_v46, %v1655_v17 }
 0x599   :  { %v3192_v20 = vpop.f32.mrf.mxu0  ;;  %v1710_v49 = vmax.f32 %v1708_v11, %v1709_v58 }
 0x59a   :  { %v1692_v50 = vmax.f32 %v1656_v29, 0.0 }
 0x59b   :  { %v1711_v31 = vrot.slane %v1710_v49, 2 }
 0x59c   :  { %v1715_v40 = vsel %vm154_vm0, %v1692_v50, -inf }
 0x59d   :  { %v1712_v45 = vmax.f32 %v1710_v49, %v1711_v31 }
 0x59f   :  { %v1657_v21 = vpop.f32.mrf.mxu2  ;;  %v1713_v12 = vrot.slane %v1712_v45, 1 }
 0x5a0   :  { %v1658_v30 = vadd.f32 %v3178_v46, %v1657_v21 }
 0x5a1   :  { %v1573_v33 = vpop.f32.mrf.mxu0  ;;  %v1714_v52 = vmax.f32 %v1712_v45, %v1713_v12 }
 0x5a2   :  { %v1693_v35 = vmax.f32 %v1658_v30, 0.0  ;;  %v3198_v37 = vadd.f32 %v1573_v33, %v1093_v23 }
 0x5a3   :  { %v1778_v11 = vpack.c.bf16 %v1714_v52, %v1714_v52 }
 0x5a4   :  { %v1716_v42 = vsel %vm154_vm0, %v1693_v35, -inf  ;;  %v3202_v43 = vpack.c.bf16 %v1693_v35, %v1692_v50 }
 0x5a5   :  { %v1717_v48 = vmax.f32 %v1715_v40, %v1716_v42  ;;  %v1804_v31 = vunpack.c.l.b16 %v1778_v11 }
 0x5a7   :  { %v1718_v60 = vrot.slane %v1717_v48, 4  ;;  %v1660_v10 = vpop.f32.mrf.mxu2 }
 0x5a8   :  { %v1661_v28 = vadd.f32 %v3178_v46, %v1660_v10 }
 0x5a9   :  { %v1719_v62 = vmax.f32 %v1717_v48, %v1718_v60  ;;  %v3204_v7 = vpop.f32.mrf.mxu0 }
 0x5aa   :  { %v1694_v0 = vmax.f32 %v1661_v28, 0.0 }
 0x5ab   :  { %v1720_v14 = vrot.slane %v1719_v62, 2 }
 0x5ac   :  { %v1724_v23 = vsel %vm154_vm0, %v1694_v0, -inf }
 0x5ad   :  { %v1721_v53 = vmax.f32 %v1719_v62, %v1720_v14 }
 0x5af   :  { %v1722_v5 = vrot.slane %v1721_v53, 1  ;;  %v1662_v55 = vpop.f32.mrf.mxu2 }
 0x5b0   :  { %v1663_v2 = vadd.f32 %v3178_v46, %v1662_v55 }
 0x5b1   :  { %v1723_v17 = vmax.f32 %v1721_v53, %v1722_v5  ;;  %v1578_v58 = vpop.f32.mrf.mxu0 }
 0x5b2   :  { %v1695_v29 = vmax.f32 %v1663_v2, 0.0  ;;  %v3210_v49 = vadd.f32 %v1578_v58, %v1098_v57 }
 0x5b3   :  { %v1779_v21 = vpack.c.bf16 %v1723_v17, %v1723_v17 }
 0x5b4   :  { %v1725_v50 = vsel %vm154_vm0, %v1695_v29, -inf  ;;  %v3214_v30 = vpack.c.bf16 %v1695_v29, %v1694_v0  ;;  %v2538_v29 = vld [vmem:[#allocation5 + $0x30] sm:$0xff] }
 0x5b5   :  { %v1805_v33 = vunpack.c.l.b16 %v1779_v21  ;;  %v1726_v35 = vmax.f32 %v1724_v23, %v1725_v50  ;;  %1842 = vmatpush.bf16.msra.mxu3 %v2538_v29 }
 0x5b7   :  { %v1812_v24 = vsel %vm348_vm1, %v1805_v33, %v1804_v31  ;;  %v1727_v27 = vrot.slane %v1726_v35, 4  ;;  %v1665_v40 = vpop.f32.mrf.mxu2 }
 0x5b8   :  { %v1666_v48 = vadd.f32 %v3178_v46, %v1665_v40 }
 0x5b9   :  { %v1728_v42 = vmax.f32 %v1726_v35, %v1727_v27 }
 0x5ba   :  { %v1696_v62 = vmax.f32 %v1666_v48, 0.0 }
 0x5bb   :  { %v1729_v45 = vrot.slane %v1728_v42, 2 }
 0x5bc   :  { %v1733_v5 = vsel %vm154_vm0, %v1696_v62, -inf }
 0x5bd   :  { %v1730_v60 = vmax.f32 %v1728_v42, %v1729_v45 }
 0x5bf   :  { %v1731_v10 = vrot.slane %v1730_v60, 1  ;;  %v1667_v12 = vpop.f32.mrf.mxu2 }
 0x5c0   :  { %v1668_v14 = vadd.f32 %v3178_v46, %v1667_v12 }
 0x5c1   :  { %v1732_v28 = vmax.f32 %v1730_v60, %v1731_v10 }
 0x5c2   :  { %v1697_v52 = vmax.f32 %v1668_v14, 0.0 }
 0x5c3   :  { %v1780_v53 = vpack.c.bf16 %v1732_v28, %v1732_v28 }
 0x5c4   :  { %v1734_v55 = vsel %vm154_vm0, %v1697_v52, -inf  ;;  %v3221_v57 = vpack.c.bf16 %v1697_v52, %v1696_v62 }
 0x5c5   :  { %v1806_v0 = vunpack.c.l.b16 %v1780_v53  ;;  %v1735_v2 = vmax.f32 %v1733_v5, %v1734_v55 }
 0x5c7   :  { %v1813_v11 = vsel %vm350_vm2, %v1806_v0, %v1812_v24  ;;  %v1736_v17 = vrot.slane %v1735_v2, 4  ;;  %v1670_v58 = vpop.f32.mrf.mxu2 }
 0x5c8   :  { %v1671_v31 = vadd.f32 %v3178_v46, %v1670_v58 }
 0x5c9   :  { %v1737_v21 = vmax.f32 %v1735_v2, %v1736_v17 }
 0x5ca   :  { %v1698_v42 = vmax.f32 %v1671_v31, 0.0 }
 0x5cb   :  { %v1738_v23 = vrot.slane %v1737_v21, 2 }
 0x5cd   :  { %v1739_v50 = vmax.f32 %v1737_v21, %v1738_v23 }
 0x5cf   :  { %v1740_v33 = vrot.slane %v1739_v50, 1  ;;  %v1672_v35 = vpop.f32.mrf.mxu2 }
 0x5d0   :  { %v1673_v27 = vadd.f32 %v3178_v46, %v1672_v35 }
 0x5d1   :  { %v1741_v40 = vmax.f32 %v1739_v50, %v1740_v33 }
 0x5d2   :  { %v1699_v45 = vmax.f32 %v1673_v27, 0.0 }
 0x5d3   :  { %v1781_v48 = vpack.c.bf16 %v1741_v40, %v1741_v40 }
 0x5d4   :  { %v3226_v60 = vpack.c.bf16 %v1699_v45, %v1698_v42  ;;  %v1743_v2 = vsel %vm154_vm0, %v1699_v45, -inf }
 0x5d5   :  { %v1807_v24 = vunpack.c.l.b16 %v1781_v48 }
 0x5d7   :  { %v3229_v10 = vsel %vm352_vm3, %v1807_v24, %v1813_v11  ;;  %v1675_v12 = vpop.f32.mrf.mxu2  ;;  %v1742_v11 = vsel %vm154_vm0, %v1698_v42, -inf }
 0x5d8   :  { %v1676_v62 = vadd.f32 %v3178_v46, %v1675_v12  ;;  %v1744_v29 = vmax.f32 %v1742_v11, %v1743_v2 }
 0x5da   :  { %v1700_v52 = vmax.f32 %v1676_v62, 0.0  ;;  %v1745_v35 = vrot.slane %v1744_v29, 4 }
 0x5dc   :  { %v1751_v21 = vsel %vm154_vm0, %v1700_v52, -inf  ;;  %v1746_v62 = vmax.f32 %v1744_v29, %v1745_v35 }
 0x5df   :  { %v1677_v14 = vpop.f32.mrf.mxu2 }
 0x5e0   :  { %v1678_v28 = vadd.f32 %v3178_v46, %v1677_v14 }
 0x5e2   :  { %v1701_v53 = vmax.f32 %v1678_v28, 0.0 }
 0x5e4   :  { %v3233_v5 = vpack.c.bf16 %v1701_v53, %v1700_v52  ;;  %v1752_v17 = vsel %vm154_vm0, %v1701_v53, -inf  ;;  %v2541_v52 = vld [vmem:[#allocation2 + $0x38] sm:$0xff]  ;;  %v1747_v53 = vrot.slane %v1746_v62, 2 }
 0x5e5   :  { %v1753_v31 = vmax.f32 %v1751_v21, %v1752_v17  ;;  %1903 = vmatpush.bf16.msrb.mxu3 %v2541_v52 }
 0x5e7   :  { %v1680_v55 = vpop.f32.mrf.mxu2  ;;  %v1754_v45 = vrot.slane %v1753_v31, 4 }
 0x5e8   :  { %v1681_v0 = vadd.f32 %v3178_v46, %v1680_v55 }
 0x5e9   :  { %v1755_v14 = vmax.f32 %v1753_v31, %v1754_v45 }
 0x5ea   :  { %v1702_v23 = vmax.f32 %v1681_v0, 0.0  ;;  %v2540_v0 = vld [vmem:[#allocation2 + $0x30] sm:$0xff] }
 0x5eb   :  { %v1756_v2 = vrot.slane %v1755_v14, 2  ;;  %1904 = vmatpush.bf16.msrb.mxu3 %v2540_v0 }
 0x5ec   :  { %v1760_v27 = vsel %vm154_vm0, %v1702_v23, -inf }
 0x5ef   :  { %v1682_v58 = vpop.f32.mrf.mxu2 }
 0x5f0   :  { %v1683_v50 = vadd.f32 %v3178_v46, %v1682_v58  ;;  %v1748_v58 = vmax.f32 %v1746_v62, %v1747_v53 }
 0x5f2   :  { %v1703_v33 = vmax.f32 %v1683_v50, 0.0  ;;  %v1757_v50 = vmax.f32 %v1755_v14, %v1756_v2  ;;  %v1749_v29 = vrot.slane %v1748_v58, 1 }
 0x5f4   :  { %v1761_v40 = vsel %vm154_vm0, %v1703_v33, -inf  ;;  %v3243_v48 = vpack.c.bf16 %v1703_v33, %v1702_v23  ;;  %v1758_v45 = vrot.slane %v1757_v50, 1  ;;  %v1750_v52 = vmax.f32 %v1748_v58, %v1749_v29 }
 0x5f5   :  { %v1762_v24 = vmax.f32 %v1760_v27, %v1761_v40 }
 0x5f6   :  { %v1759_v19 = vmax.f32 %v1757_v50, %v1758_v45 }
 0x5f7   :  { %v1763_v12 = vrot.slane %v1762_v24, 4  ;;  %v1685_v42 = vpop.f32.mrf.mxu2 }
 0x5f8   :  { %v1686_v55 = vadd.f32 %v3178_v46, %v1685_v42  ;;  %v1783_v0 = vpack.c.bf16 %v1759_v19, %v1759_v19  ;;  %v2543_v19 = vld [vmem:[#allocation7 + $0x38] sm:$0xff] }
 0x5f9   :  { %v1764_v28 = vmax.f32 %v1762_v24, %v1763_v12  ;;  %2057 = vmatpush.bf16.msrb.mxu1 %v2543_v19 }
 0x5fa   :  { %v1704_v21 = vmax.f32 %v1686_v55, 0.0 }
 0x5fb   :  { %v1765_v17 = vrot.slane %v1764_v28, 2 }
 0x5fc   :  { %v1769_v31 = vsel %vm154_vm0, %v1704_v21, -inf }
 0x5fd   :  { %v1766_v33 = vmax.f32 %v1764_v28, %v1765_v17 }
 0x5ff   :  { %v1687_v11 = vpop.f32.mrf.mxu2  ;;  %v1767_v12 = vrot.slane %v1766_v33, 1 }
 0x600   :  { %v1688_v23 = vadd.f32 %v3178_v46, %v1687_v11  ;;  %v1782_v46 = vpack.c.bf16 %v1750_v52, %v1750_v52  ;;  %v1809_v11 = vunpack.c.l.b16 %v1783_v0 }
 0x601   :  { %v1768_v53 = vmax.f32 %v1766_v33, %v1767_v12 }
 0x602   :  { %v1705_v27 = vmax.f32 %v1688_v23, 0.0  ;;  %v1808_v17 = vunpack.c.l.b16 %v1782_v46 }
 0x603   :  { %v1784_v28 = vpack.c.bf16 %v1768_v53, %v1768_v53 }
 0x604   :  { %v1770_v35 = vsel %vm154_vm0, %v1705_v27, -inf  ;;  %v1855_v40 = vpack.c.bf16 %v1705_v27, %v1704_v21  ;;  %v1815_v21 = vsel %vm354_vm4, %v1808_v17, %v3229_v10 }
 0x605   :  { %v1771_v24 = vmax.f32 %v1769_v31, %v1770_v35  ;;  %v1810_v22 = vunpack.c.l.b16 %v1784_v28  ;;  %v1816_v27 = vsel %vm356_vm5, %v1809_v11, %v1815_v21 }
 0x607   :  { %v1772_v42 = vrot.slane %v1771_v24, 4  ;;  %v1817_v50 = vsel %vm358_vm6, %v1810_v22, %v1816_v27 }
 0x609   :  { %v1773_v62 = vmax.f32 %v1771_v24, %v1772_v42 }
 0x60b   :  { %v1774_v55 = vrot.slane %v1773_v62, 2 }
 0x60d   :  { %v1775_v14 = vmax.f32 %v1773_v62, %v1774_v55 }
 0x60f   :  { %v1776_v2 = vrot.slane %v1775_v14, 1 }
 0x611   :  { %v1777_v23 = vmax.f32 %v1775_v14, %v1776_v2 }
 0x613   :  { %v1785_v56 = vpack.c.bf16 %v1777_v23, %v1777_v23 }
 0x615   :  { %v1811_v58 = vunpack.c.l.b16 %v1785_v56  ;;  %v2542_v56 = vld [vmem:[#allocation7 + $0x30] sm:$0xff] }
 0x616   :  { %2058 = vmatpush.bf16.msrb.mxu1 %v2542_v56 }
 0x617   :  { %v1818_v33 = vsel %vm360_vm7, %v1811_v58, %v1817_v50 }
 0x618   :  { %v1819_v29 = vpack.c.b16 %v1818_v33, %v1818_v33 }
 0x61a   :  { %2471 = vmatmul.msk.bf16.vlgmr.msra.gmra.mxu3 %vm154_vm0, %v1819_v29 }
 0x62a   :  { %2480 = vmatmul.msk.bf16.vlgmr.msrb.gmra.mxu3 %vm154_vm0, %v3190_v4 }
 0x63a   :  { %2481 = vmatmul.msk.bf16.gmra.mxu3 %vm154_vm0, %v3202_v43  ;;  %v2557_v43 = vld [vmem:[%s3350_s5 + $0x3] ss:$0 sm:$0xff] }
 0x64a   :  { %2482 = vmatmul.msk.bf16.gmra.mxu3 %vm154_vm0, %v3214_v30 }
 0x65a   :  { %2483 = vmatmul.msk.bf16.gmra.mxu3 %vm154_vm0, %v3221_v57 }
 0x66a   :  { %2484 = vmatmul.msk.bf16.gmra.mxu3 %vm154_vm0, %v3226_v60 }
 0x67a   :  { %2485 = vmatmul.msk.bf16.gmra.mxu3 %vm154_vm0, %v3233_v5 }
 0x68a   :  { %2486 = vmatmul.msk.bf16.gmra.mxu3 %vm154_vm0, %v3243_v48 }
 0x69a   :  { %2487 = vmatmul.msk.bf16.gmra.mxu3 %vm154_vm0, %v1855_v40 }
 0x69d   :  { %v1844_v22 = vpop.f32.mrf.mxu3 }
 0x69e   :  { %v3273_v57 = vadd.f32 %v2557_v43, %v1844_v22 }
 0x6a0   :  { %v1954_v10 = vperm.slane %v3273_v57, 0  ;;  %v1947_v40 = vrot.slane %v3273_v57, 1  ;;  %v1948_v14 = vrot.slane %v3273_v57, 2  ;;  %v1949_v50 = vrot.slane %v3273_v57, 3 }
 0x6a2   :  { %v1955_v12 = vperm.slane %v1947_v40, 0  ;;  %v1956_v28 = vperm.slane %v1948_v14, 0  ;;  %v1957_v33 = vperm.slane %v1949_v50, 0 }
 0x6a5   :  { %v1846_v4 = vpop.f32.mrf.mxu3 }
 0x6ad   :  { %v1906_v30 = vpop.f32.mrf.mxu3 }
 0x6ae   :  { %v1970_v60 = vadd.f32 %v1954_v10, %v1906_v30 }
 0x6b0   :  { %v1986_v5 = vmax.f32 %v1970_v60, 0.0 }
 0x6b5   :  { %v1908_v31 = vpop.f32.mrf.mxu3 }
 0x6b6   :  { %v1971_v35 = vadd.f32 %v1954_v10, %v1908_v31  ;;  %v1950_v10 = vrot.slane %v3273_v57, 4 }
 0x6b8   :  { %v1987_v45 = vmax.f32 %v1971_v35, 0.0  ;;  %v1958_v60 = vperm.slane %v1950_v10, 0 }
 0x6ba   :  { %v2002_v24 = vpack.c.bf16 %v1987_v45, %v1986_v5 }
 0x6bc   :  { %2496 = vmatmul.msk.bf16.vlgmr.msrb.gmra.mxu1 %vm154_vm0, %v2002_v24 }
 0x6bd   :  { %v1911_v48 = vpop.f32.mrf.mxu3 }
 0x6be   :  { %v1972_v42 = vadd.f32 %v1955_v12, %v1911_v48 }
 0x6c0   :  { %v1988_v53 = vmax.f32 %v1972_v42, 0.0 }
 0x6c5   :  { %v1913_v52 = vpop.f32.mrf.mxu3 }
 0x6c6   :  { %v1973_v62 = vadd.f32 %v1955_v12, %v1913_v52  ;;  %v1951_v12 = vrot.slane %v3273_v57, 5 }
 0x6c8   :  { %v1989_v55 = vmax.f32 %v1973_v62, 0.0  ;;  %v1959_v42 = vperm.slane %v1951_v12, 0  ;;  %v1090_v12 = vadd.f32 %v3101_v44, %v3096_v51  ;;  %v1095_v51 = vadd.f32 %v3112_v18, %v3109_v15 }
 0x6ca   :  { %v2003_v46 = vpack.c.bf16 %v1989_v55, %v1988_v53 }
 0x6cc   :  { %2497 = vmatmul.msk.bf16.gmra.mxu1 %vm154_vm0, %v2003_v46 }
 0x6cd   :  { %v1916_v0 = vpop.f32.mrf.mxu3 }
 0x6ce   :  { %v1974_v2 = vadd.f32 %v1956_v28, %v1916_v0 }
 0x6d0   :  { %v1990_v23 = vmax.f32 %v1974_v2, 0.0 }
 0x6d5   :  { %v1918_v17 = vpop.f32.mrf.mxu3 }
 0x6d6   :  { %v1975_v11 = vadd.f32 %v1956_v28, %v1918_v17  ;;  %v1952_v28 = vrot.slane %v3273_v57, 6 }
 0x6d8   :  { %v1991_v21 = vmax.f32 %v1975_v11, 0.0  ;;  %v1960_v2 = vperm.slane %v1952_v28, 0 }
 0x6da   :  { %v2004_v27 = vpack.c.bf16 %v1991_v21, %v1990_v23 }
 0x6dc   :  { %2498 = vmatmul.msk.bf16.gmra.mxu1 %vm154_vm0, %v2004_v27 }
 0x6dd   :  { %v1921_v58 = vpop.f32.mrf.mxu3 }
 0x6de   :  { %v1976_v29 = vadd.f32 %v1957_v33, %v1921_v58 }
 0x6e0   :  { %v1992_v22 = vmax.f32 %v1976_v29, 0.0 }
 0x6e5   :  { %v1923_v19 = vpop.f32.mrf.mxu3 }
 0x6e6   :  { %v1977_v56 = vadd.f32 %v1957_v33, %v1923_v19  ;;  %v1953_v33 = vrot.slane %v3273_v57, 7 }
 0x6e8   :  { %v1993_v4 = vmax.f32 %v1977_v56, 0.0  ;;  %v1961_v29 = vperm.slane %v1953_v33, 0 }
 0x6ea   :  { %v2005_v43 = vpack.c.bf16 %v1993_v4, %v1992_v22 }
 0x6ec   :  { %2499 = vmatmul.msk.bf16.gmra.mxu1 %vm154_vm0, %v2005_v43 }
 0x6ed   :  { %v1926_v30 = vpop.f32.mrf.mxu3 }
 0x6ee   :  { %v1978_v31 = vadd.f32 %v1958_v60, %v1926_v30 }
 0x6f0   :  { %v1994_v45 = vmax.f32 %v1978_v31, 0.0  ;;  %v1085_v31 = vadd.f32 %v3087_v38, %v3082_v8 }
 0x6f5   :  { %v1928_v35 = vpop.f32.mrf.mxu3 }
 0x6f6   :  { %v1979_v5 = vadd.f32 %v1958_v60, %v1928_v35  ;;  %v1604_v35 = vadd.f32 %v3180_v47, %v1085_v31 }
 0x6f8   :  { %v1995_v24 = vmax.f32 %v1979_v5, 0.0 }
 0x6fa   :  { %v2006_v48 = vpack.c.bf16 %v1995_v24, %v1994_v45 }
 0x6fc   :  { %2500 = vmatmul.msk.bf16.gmra.mxu1 %vm154_vm0, %v2006_v48 }
 0x6fd   :  { %v1931_v40 = vpop.f32.mrf.mxu3 }
 0x6fe   :  { %v1980_v52 = vadd.f32 %v1959_v42, %v1931_v40 }
 0x700   :  { %v1996_v55 = vmax.f32 %v1980_v52, 0.0 }
 0x705   :  { %v1933_v62 = vpop.f32.mrf.mxu3 }
 0x706   :  { %v1981_v53 = vadd.f32 %v1959_v42, %v1933_v62  ;;  %v1606_v42 = vadd.f32 %v3192_v20, %v1090_v12  ;;  %v1608_v20 = vadd.f32 %v3204_v7, %v1095_v51 }
 0x708   :  { %v1997_v46 = vmax.f32 %v1981_v53, 0.0 }
 0x70a   :  { %v2007_v0 = vpack.c.bf16 %v1997_v46, %v1996_v55 }
 0x70c   :  { %2501 = vmatmul.msk.bf16.gmra.mxu1 %vm154_vm0, %v2007_v0 }
 0x70d   :  { %v1936_v14 = vpop.f32.mrf.mxu3 }
 0x70e   :  { %v1982_v17 = vadd.f32 %v1960_v2, %v1936_v14 }
 0x710   :  { %v1998_v21 = vmax.f32 %v1982_v17, 0.0 }
 0x715   :  { %v1938_v11 = vpop.f32.mrf.mxu3 }
 0x716   :  { %v1983_v23 = vadd.f32 %v1960_v2, %v1938_v11  ;;  %v1580_v2 = vpop.f32.mrf.mxu0  ;;  %v3306_v11 = vld [vmem:[%s3352_s7] ss:$0 sm:$0xff]  ;;  %s2666_s7 = smov [#allocation8]  }
 0x717   :  { %s2213_s18 = sshll.u32 %s2666_s7, 4  ;;  %s2214_s18 = int_to_ptr.vmem [resolvable:$true] %s2213_s18 }
 0x718   :  { %v1999_v27 = vmax.f32 %v1983_v23, 0.0 }
 0x71a   :  { %v2008_v58 = vpack.c.bf16 %v1999_v27, %v1998_v21 }
 0x71c   :  { %2502 = vmatmul.msk.bf16.gmra.mxu1 %vm154_vm0, %v2008_v58 }
 0x71d   :  { %v1941_v50 = vpop.f32.mrf.mxu3 }
 0x71e   :  { %v1984_v19 = vadd.f32 %v1961_v29, %v1941_v50 }
 0x720   :  { %v2000_v4 = vmax.f32 %v1984_v19, 0.0 }
 0x725   :  { %v1943_v56 = vpop.f32.mrf.mxu3 }
 0x726   :  { %v1985_v22 = vadd.f32 %v1961_v29, %v1943_v56  ;;  %v1583_v29 = vpop.f32.mrf.mxu0 }
 0x728   :  { %v2001_v43 = vmax.f32 %v1985_v22, 0.0 }
 0x72a   :  { %v2009_v30 = vpack.c.bf16 %v2001_v43, %v2000_v4  ;;  %v1100_v43 = vadd.f32 %v3123_v39, %v3121_v32  ;;  %v1103_v32 = vadd.f32 %v3130_v3, %v3125_v13  ;;  %v1105_v39 = vadd.f32 %v3134_v54, %v3132_v1 }
 0x72b   :  { %v1108_v1 = vadd.f32 %v3141_v36, %v3139_v9  ;;  %v1110_v54 = vadd.f32 %v3148_v6, %v3143_v63  ;;  %v1113_v6 = vadd.f32 %v3152_v25, %v3150_v16 }
 0x72c   :  { %2503 = vmatmul.msk.bf16.gmra.mxu1 %vm154_vm0, %v2009_v30 }
 0x72e   :  { %v1585_v31 = vpop.f32.mrf.mxu0 }
 0x739   :  { %v2060_v10 = vpop.f32.mrf.mxu1 }
 0x73a   :  { %v2100_v60 = vadd.f32 %v2060_v10, %v3173_v61  ;;  %v1610_v10 = vadd.f32 %v1580_v2, %v1100_v43 }
 0x741   :  { %v2062_v5 = vpop.f32.mrf.mxu1 }
 0x742   :  { %v2101_v45 = vadd.f32 %v2062_v5, %v1604_v35 }
 0x744   :  { %v2116_v57 = vmax.f32 %v2100_v60, %v2101_v45 }
 0x746   :  { %v2117_v40 = vrot.slane %v2116_v57, 4 }
 0x748   :  { %v2118_v52 = vmax.f32 %v2116_v57, %v2117_v40 }
 0x749   :  { %v2065_v24 = vpop.f32.mrf.mxu1 }
 0x74a   :  { %v2102_v48 = vadd.f32 %v2065_v24, %v3186_v59  ;;  %v2119_v53 = vrot.slane %v2118_v52, 2 }
 0x74c   :  { %v2120_v38 = vmax.f32 %v2118_v52, %v2119_v53  ;;  %v1588_v52 = vpop.f32.mrf.mxu0  ;;  %v1611_v53 = vadd.f32 %v1583_v29, %v1103_v32  ;;  %v3359_v32 = vld [vmem:[#allocation14_spill] sm:$0xff] }
 0x74e   :  { %v2121_v28 = vrot.slane %v2120_v38, 1 }
 0x750   :  { %v2122_v17 = vmax.f32 %v2120_v38, %v2121_v28 }
 0x751   :  { %v2067_v62 = vpop.f32.mrf.mxu1 }
 0x752   :  { %v2103_v61 = vadd.f32 %v2067_v62, %v1606_v42  ;;  %v2176_v58 = vadd.f32 %v3306_v11, %v2122_v17 }
 0x754   :  { %v2123_v55 = vmax.f32 %v2102_v48, %v2103_v61 }
 0x756   :  { %v2124_v8 = vrot.slane %v2123_v55, 4 }
 0x758   :  { %v2125_v47 = vmax.f32 %v2123_v55, %v2124_v8  ;;  %v1612_v55 = vadd.f32 %v1585_v31, %v1105_v39 }
 0x759   :  { %v2070_v46 = vpop.f32.mrf.mxu1 }
 0x75a   :  { %v2126_v0 = vrot.slane %v2125_v47, 2  ;;  %v2104_v14 = vadd.f32 %v2070_v46, %v3198_v37 }
 0x75c   :  { %v2127_v59 = vmax.f32 %v2125_v47, %v2126_v0 }
 0x75e   :  { %v2128_v44 = vrot.slane %v2127_v59, 1 }
 0x760   :  { %v2129_v23 = vmax.f32 %v2127_v59, %v2128_v44  ;;  %v1590_v59 = vpop.f32.mrf.mxu0 }
 0x761   :  { %v2072_v21 = vpop.f32.mrf.mxu1 }
 0x762   :  { %v2177_v27 = vadd.f32 %v3306_v11, %v2129_v23  ;;  %v2105_v37 = vadd.f32 %v2072_v21, %v1608_v20  ;;  %v1613_v21 = vadd.f32 %v1588_v52, %v1108_v1 }
 0x764   :  { %v2192_v50 = vrot.slane %v2177_v27, 7  ;;  %v2130_v33 = vmax.f32 %v2104_v14, %v2105_v37  ;;  %v1614_v27 = vadd.f32 %v1590_v59, %v1110_v54 }
 0x766   :  { %v2193_v15 = vsel %vm348_vm1, %v2192_v50, %v2176_v58  ;;  %v2131_v18 = vrot.slane %v2130_v33, 4 }
 0x768   :  { %v2132_v7 = vmax.f32 %v2130_v33, %v2131_v18  ;;  %v1593_v23 = vpop.f32.mrf.mxu0 }
 0x769   :  { %v2075_v19 = vpop.f32.mrf.mxu1 }
 0x76a   :  { %v2133_v56 = vrot.slane %v2132_v7, 2  ;;  %v2106_v22 = vadd.f32 %v2075_v19, %v3210_v49 }
 0x76c   :  { %v2134_v4 = vmax.f32 %v2132_v7, %v2133_v56 }
 0x76e   :  { %v2135_v30 = vrot.slane %v2134_v4, 1 }
 0x770   :  { %v2136_v60 = vmax.f32 %v2134_v4, %v2135_v30  ;;  %v1595_v9 = vpop.f32.mrf.mxu0  ;;  %v1115_v4 = vadd.f32 %v3159_v34, %v3156_v26  ;;  %v1615_v30 = vadd.f32 %v1593_v23, %v1113_v6  ;;  %v3357_v34 = vld [vmem:[#allocation12_spill] sm:$0xff] }
 0x771   :  { %v2077_v35 = vpop.f32.mrf.mxu1  ;;  %v1118_v52 = vadd.f32 %v3357_v34, %v3161_v41 }
 0x772   :  { %v2178_v5 = vadd.f32 %v3306_v11, %v2136_v60  ;;  %v2107_v45 = vadd.f32 %v2077_v35, %v1610_v10  ;;  %v1616_v10 = vadd.f32 %v1595_v9, %v1115_v4 }
 0x774   :  { %v2194_v57 = vrot.slane %v2178_v5, 6  ;;  %v2137_v24 = vmax.f32 %v2106_v22, %v2107_v45 }
 0x776   :  { %v2195_v48 = vsel %vm350_vm2, %v2194_v57, %v2193_v15  ;;  %v2138_v40 = vrot.slane %v2137_v24, 4 }
 0x778   :  { %v2139_v12 = vmax.f32 %v2137_v24, %v2138_v40  ;;  %v1598_v57 = vpop.f32.mrf.mxu0 }
 0x779   :  { %v2080_v42 = vpop.f32.mrf.mxu1 }
 0x77a   :  { %v2140_v49 = vrot.slane %v2139_v12, 2  ;;  %v2108_v46 = vadd.f32 %v2080_v42, %v1611_v53  ;;  %v1617_v53 = vadd.f32 %v1598_v57, %v1118_v52 }
 0x77c   :  { %v2141_v62 = vmax.f32 %v2139_v12, %v2140_v49 }
 0x77e   :  { %v2142_v61 = vrot.slane %v2141_v62, 1 }
 0x780   :  { %v2143_v8 = vmax.f32 %v2141_v62, %v2142_v61  ;;  %v1600_v26 = vpop.f32.mrf.mxu0  ;;  %v3358_v62 = vld [vmem:[#allocation13_spill] sm:$0xff] }
 0x781   :  { %v2082_v38 = vpop.f32.mrf.mxu1  ;;  %v1120_v39 = vadd.f32 %v3359_v32, %v3358_v62 }
 0x782   :  { %v2179_v47 = vadd.f32 %v3306_v11, %v2143_v8  ;;  %v2109_v0 = vadd.f32 %v2082_v38, %v1612_v55 }
 0x783   :  { %v1618_v55 = vadd.f32 %v1600_v26, %v1120_v39 }
 0x784   :  { %v2196_v14 = vrot.slane %v2179_v47, 5  ;;  %v2144_v28 = vmax.f32 %v2108_v46, %v2109_v0 }
 0x786   :  { %v2145_v2 = vrot.slane %v2144_v28, 4  ;;  %v2197_v51 = vsel %vm352_vm3, %v2196_v14, %v2195_v48 }
 0x788   :  { %v2146_v44 = vmax.f32 %v2144_v28, %v2145_v2 }
 0x789   :  { %v2085_v13 = vpop.f32.mrf.mxu1 }
 0x78a   :  { %v2147_v3 = vrot.slane %v2146_v44, 2  ;;  %v2110_v33 = vadd.f32 %v2085_v13, %v1613_v21 }
 0x78c   :  { %v2148_v20 = vmax.f32 %v2146_v44, %v2147_v3 }
 0x78e   :  { %v2149_v17 = vrot.slane %v2148_v20, 1 }
 0x790   :  { %v2150_v37 = vmax.f32 %v2148_v20, %v2149_v17 }
 0x791   :  { %v2087_v58 = vpop.f32.mrf.mxu1 }
 0x792   :  { %v2180_v50 = vadd.f32 %v3306_v11, %v2150_v37  ;;  %v2111_v15 = vadd.f32 %v2087_v58, %v1614_v27 }
 0x794   :  { %v2198_v18 = vrot.slane %v2180_v50, 4  ;;  %v2151_v29 = vmax.f32 %v2110_v33, %v2111_v15 }
 0x796   :  { %v2152_v7 = vrot.slane %v2151_v29, 4  ;;  %v2199_v19 = vsel %vm354_vm4, %v2198_v18, %v2197_v51 }
 0x798   :  { %v2153_v56 = vmax.f32 %v2151_v29, %v2152_v7 }
 0x799   :  { %v2090_v36 = vpop.f32.mrf.mxu1 }
 0x79a   :  { %v2154_v22 = vrot.slane %v2153_v56, 2  ;;  %v2112_v5 = vadd.f32 %v2090_v36, %v1615_v30 }
 0x79c   :  { %v2155_v63 = vmax.f32 %v2153_v56, %v2154_v22 }
 0x79e   :  { %v2156_v43 = vrot.slane %v2155_v63, 1 }
 0x7a0   :  { %v2157_v60 = vmax.f32 %v2155_v63, %v2156_v43 }
 0x7a1   :  { %v2092_v31 = vpop.f32.mrf.mxu1 }
 0x7a2   :  { %v2181_v35 = vadd.f32 %v3306_v11, %v2157_v60  ;;  %v2113_v45 = vadd.f32 %v2092_v31, %v1616_v10 }
 0x7a4   :  { %v2200_v24 = vrot.slane %v2181_v35, 3  ;;  %v2158_v48 = vmax.f32 %v2112_v5, %v2113_v45 }
 0x7a6   :  { %v2159_v40 = vrot.slane %v2158_v48, 4  ;;  %v2201_v12 = vsel %vm356_vm5, %v2200_v24, %v2199_v19 }
 0x7a8   :  { %v2160_v42 = vmax.f32 %v2158_v48, %v2159_v40 }
 0x7a9   :  { %v2095_v16 = vpop.f32.mrf.mxu1 }
 0x7aa   :  { %v2161_v25 = vrot.slane %v2160_v42, 2  ;;  %v2114_v46 = vadd.f32 %v2095_v16, %v1617_v53 }
 0x7ac   :  { %v2162_v49 = vmax.f32 %v2160_v42, %v2161_v25 }
 0x7ae   :  { %v2163_v61 = vrot.slane %v2162_v49, 1 }
 0x7b0   :  { %v2164_v8 = vmax.f32 %v2162_v49, %v2163_v61 }
 0x7b1   :  { %v2097_v38 = vpop.f32.mrf.mxu1 }
 0x7b2   :  { %v2182_v47 = vadd.f32 %v3306_v11, %v2164_v8  ;;  %v2115_v0 = vadd.f32 %v2097_v38, %v1618_v55 }
 0x7b4   :  { %v2202_v14 = vrot.slane %v2182_v47, 2  ;;  %v2165_v28 = vmax.f32 %v2114_v46, %v2115_v0 }
 0x7b6   :  { %v2166_v59 = vrot.slane %v2165_v28, 4  ;;  %v2203_v2 = vsel %vm358_vm6, %v2202_v14, %v2201_v12 }
 0x7b8   :  { %v2167_v51 = vmax.f32 %v2165_v28, %v2166_v59 }
 0x7ba   :  { %v2168_v44 = vrot.slane %v2167_v51, 2 }
 0x7bc   :  { %v2169_v41 = vmax.f32 %v2167_v51, %v2168_v44 }
 0x7be   :  { %v2170_v13 = vrot.slane %v2169_v41, 1 }
 0x7c0   :  { %v2171_v3 = vmax.f32 %v2169_v41, %v2170_v13 }
 0x7c2   :  { %v2183_v20 = vadd.f32 %v3306_v11, %v2171_v3 }
 0x7c4   :  { %v2204_v1 = vrot.slane %v2183_v20, 1 }
 0x7c6   :  { %v2205_v54 = vsel %vm360_vm7, %v2204_v1, %v2203_v2 }
 0x7c7   :  { %2207 = vst [vmem:[#allocation8] sm:$0xff] %v2205_v54 }
 0x7c8   :  { %2218 = dma.vmem_to_hbm [thread:$0]  %s2214_s18, 128, %s2216_s4, [#allocation4]  }
 0x7c9   :  { %2659 = dma.done.wait [#allocation4], 128  }
 0x7ca   :  { %2660 = vsyncadd [#allocation4], 4294967168 }
 0x7cb   :  { %2223 = vsyncpa [#allocation3], 1 }
 0x7cc   :  { %2224 = vsyncpa [#allocation6], 1 }
 0x7cd   :  { %2225 = vsyncpa [#allocation4], 1 }

// kernel: tpu_custom_call.1
= control target key start
LH: loop header
LB: loop body
LE: loop exit
PB: predicated region body
PF: predicated region fallthrough
CT: control target
= control target key end

     0   :  { %13 = vsyncpa [#allocation3], 0  ;;  %s3345_s0 = inlined_call_operand.vmem [shape: bf16[1,128,32], index: 0, kind: input, shape index: {}]   ;;  %s3346_s1 = inlined_call_operand.vmem [shape: bf16[4,32,32], index: 1, kind: input, shape index: {}]   ;;  %s3347_s2 = inlined_call_operand.vmem [shape: f32[4,1,32], index: 2, kind: input, shape index: {}]   ;;  %s3348_s3 = inlined_call_operand.hbm [shape: bf16[4,32,32], index: 3, kind: input, shape index: {}]   ;;  %s3349_s4 = inlined_call_operand.hbm [shape: bf16[4,32,32], index: 4, kind: input, shape index: {}]   ;;  %s3350_s5 = inlined_call_operand.vmem [shape: f32[4,1,32], index: 5, kind: input, shape index: {}]   ;;  %s3351_s6 = inlined_call_operand.hbm [shape: bf16[4,32,128], index: 6, kind: input, shape index: {}]   ;;  %s3352_s7 = inlined_call_operand.vmem [shape: f32[1,128], index: 7, kind: input, shape index: {}]   ;;  %s3353_s8 = inlined_call_operand.hbm [shape: f32[1,8,128], index: 8, kind: output, shape index: {}]  }
   0x1   :  { %14 = vsyncpa [#allocation6], 0 }
   0x2   :  { %15 = vsyncpa [#allocation4], 0  ;;  %s39_s29 = sshll.u32 %s3349_s4, 4  ;;  %s2661_s30 = smov [#allocation5]   ;;  %s40_s29 = int_to_ptr.hbm [resolvable:$true] %s39_s29 }
   0x3   :  { %s41_s9 = sshll.u32 %s2661_s30, 4  ;;  %s26_s12 = sshll.u32 %s3348_s3, 4  ;;  %s42_s9 = int_to_ptr.vmem [resolvable:$true] %s41_s9  ;;  %s27_s12 = int_to_ptr.hbm [resolvable:$true] %s26_s12 }
   0x4   :  { %s2662_s13 = smov 64   ;;  %s2663_s14 = smov 4  }
   0x5   :  { %47 = dma.hbm_to_vmem [thread:$0]  %s40_s29, 1024, %s42_s9, [#allocation6], %s2662_s13, %s2662_s13, %s2663_s14  }
   0x6   :  { %s2664_s15 = smov [#allocation2]   ;;  %s54_s19 = sshll.u32 %s3351_s6, 4  ;;  %s55_s19 = int_to_ptr.hbm [resolvable:$true] %s54_s19 }
   0x7   :  { %s28_s16 = sshll.u32 %s2664_s15, 4  ;;  %s2665_s4 = smov [#allocation7]   ;;  %s29_s16 = int_to_ptr.vmem [resolvable:$true] %s28_s16 }
   0x8   :  { %34 = dma.hbm_to_vmem [thread:$0]  %s27_s12, 1024, %s29_s16, [#allocation3], %s2662_s13, %s2662_s13, %s2663_s14  }
   0x9   :  { %s56_s20 = sshll.u32 %s2665_s4, 4  ;;  %s57_s20 = int_to_ptr.vmem [resolvable:$true] %s56_s20 }
   0xa   :  { %62 = dma.hbm_to_vmem [thread:$0]  %s55_s19, 1024, %s57_s20, [#allocation6], %s2662_s13, %s2662_s13, %s2663_s14  }
   0xb   :  { %2655 = dma.done.wait [#allocation3], 1024  }
   0xc   :  { %2656 = vsyncadd [#allocation3], 4294966272 }
   0xd   :  { %2657 = dma.done.wait [#allocation6], 2048  }
   0xe   :  { %2658 = vsyncadd [#allocation6], 4294965248  ;;  %v2513_v0 = vld [vmem:[%s3346_s1 + $0x8] sm:$0xff]  ;;  %v2512_v1 = vld [vmem:[%s3346_s1] sm:$0xff]  ;;  %vm154_vm0 = vcmask 261120   ;;  %vm348_vm1 = vcmask 1041409  }
   0xf   :  { %185 = vmatpush.bf16.msra.mxu0 %v2513_v0  ;;  %v2504_v2 = vld [vmem:[%s3345_s0] sm:$0xff]  ;;  %v2505_v3 = vld [vmem:[%s3345_s0 + $0x8] sm:$0xff]  ;;  %v2506_v4 = vld [vmem:[%s3345_s0 + $0x10] sm:$0xff]  ;;  %vm350_vm2 = vcmask 1042434   ;;  %vm352_vm3 = vcmask 1043459   ;;  %vm354_vm4 = vcmask 1044484  }
  0x10   :  { %v2507_v5 = vld [vmem:[%s3345_s0 + $0x18] sm:$0xff]  ;;  %v2508_v6 = vld [vmem:[%s3345_s0 + $0x20] sm:$0xff]  ;;  %v2509_v7 = vld [vmem:[%s3345_s0 + $0x28] sm:$0xff]  ;;  %vm356_vm5 = vcmask 1045509   ;;  %vm358_vm6 = vcmask 1046534   ;;  %vm360_vm7 = vcmask 1047559  }
  0x11   :  { %v2510_v8 = vld [vmem:[%s3345_s0 + $0x30] sm:$0xff]  ;;  %v2517_v9 = vld [vmem:[#allocation2 + $0x8] sm:$0xff]  ;;  %v2516_v10 = vld [vmem:[#allocation2] sm:$0xff]  ;;  %s2215_s4 = sshll.u32 %s3353_s8, 4  ;;  %s2216_s4 = int_to_ptr.hbm [resolvable:$true] %s2215_s4 }
  0x12   :  { %445 = vmatpush.bf16.msra.mxu2 %v2517_v9  ;;  %v2511_v11 = vld [vmem:[%s3345_s0 + $0x38] sm:$0xff]  ;;  %v2515_v12 = vld [vmem:[#allocation5 + $0x8] sm:$0xff]  ;;  %v2762_v14 = vld [vmem:[%s3347_s2] ss:$0 sm:$0xff] }
  0x13   :  { %186 = vmatpush.bf16.msra.mxu0 %v2512_v1 }
  0x16   :  { %2266 = vmatmul.msk.bf16.vlgmr.msra.gmra.mxu0 %vm154_vm0, %v2504_v2  ;;  %446 = vmatpush.bf16.msra.mxu2 %v2516_v10 }
  0x17   :  { %384 = vmatpush.bf16.msrb.mxu0 %v2515_v12  ;;  %v2514_v12 = vld [vmem:[#allocation5] sm:$0xff] }
  0x1b   :  { %385 = vmatpush.bf16.msrb.mxu0 %v2514_v12 }
  0x26   :  { %2267 = vmatmul.msk.bf16.gmra.mxu0 %vm154_vm0, %v2505_v3 }
  0x36   :  { %2268 = vmatmul.msk.bf16.gmra.mxu0 %vm154_vm0, %v2506_v4 }
  0x46   :  { %2269 = vmatmul.msk.bf16.gmra.mxu0 %vm154_vm0, %v2507_v5 }
  0x56   :  { %2270 = vmatmul.msk.bf16.gmra.mxu0 %vm154_vm0, %v2508_v6 }
  0x66   :  { %2271 = vmatmul.msk.bf16.gmra.mxu0 %vm154_vm0, %v2509_v7 }
  0x76   :  { %2272 = vmatmul.msk.bf16.gmra.mxu0 %vm154_vm0, %v2510_v8 }
  0x86   :  { %2273 = vmatmul.msk.bf16.gmra.mxu0 %vm154_vm0, %v2511_v11 }
  0x93   :  { %v188_v13 = vpop.f32.mrf.mxu0 }
  0x94   :  { %v189_v15 = vadd.f32 %v2762_v14, %v188_v13 }
  0x96   :  { %v228_v17 = vmax.f32 %v189_v15, 0.0 }
  0x98   :  { %v244_v20 = vsel %vm154_vm0, %v228_v17, -inf }
  0x9b   :  { %v190_v16 = vpop.f32.mrf.mxu0 }
  0x9c   :  { %v191_v18 = vadd.f32 %v2762_v14, %v190_v16 }
  0x9e   :  { %v229_v19 = vmax.f32 %v191_v18, 0.0 }
  0xa0   :  { %v245_v21 = vsel %vm154_vm0, %v229_v19, -inf  ;;  %v391_v22 = vpack.c.bf16 %v229_v19, %v228_v17 }
  0xa1   :  { %v246_v23 = vmax.f32 %v244_v20, %v245_v21 }
  0xa2   :  { %2291 = vmatmul.msk.bf16.vlgmr.msra.gmra.mxu2 %vm154_vm0, %v391_v22 }
  0xa3   :  { %v193_v24 = vpop.f32.mrf.mxu0  ;;  %v247_v25 = vrot.slane %v246_v23, 4 }
  0xa4   :  { %v194_v26 = vadd.f32 %v2762_v14, %v193_v24 }
  0xa5   :  { %v248_v27 = vmax.f32 %v246_v23, %v247_v25 }
  0xa6   :  { %v230_v29 = vmax.f32 %v194_v26, 0.0 }
  0xa7   :  { %v249_v31 = vrot.slane %v248_v27, 2 }
  0xa8   :  { %v253_v33 = vsel %vm154_vm0, %v230_v29, -inf }
  0xa9   :  { %v250_v36 = vmax.f32 %v248_v27, %v249_v31 }
  0xab   :  { %v195_v28 = vpop.f32.mrf.mxu0  ;;  %v251_v40 = vrot.slane %v250_v36, 1 }
  0xac   :  { %v196_v30 = vadd.f32 %v2762_v14, %v195_v28 }
  0xad   :  { %v252_v44 = vmax.f32 %v250_v36, %v251_v40 }
  0xae   :  { %v231_v32 = vmax.f32 %v196_v30, 0.0 }
  0xaf   :  { %v316_v50 = vpack.c.bf16 %v252_v44, %v252_v44 }
  0xb0   :  { %v254_v34 = vsel %vm154_vm0, %v231_v32, -inf  ;;  %v392_v35 = vpack.c.bf16 %v231_v32, %v230_v29 }
  0xb1   :  { %v255_v37 = vmax.f32 %v253_v33, %v254_v34  ;;  %v340_v57 = vunpack.c.l.b16 %v316_v50 }
  0xb2   :  { %2292 = vmatmul.msk.bf16.gmra.mxu2 %vm154_vm0, %v392_v35 }
  0xb3   :  { %v256_v38 = vrot.slane %v255_v37, 4  ;;  %v198_v39 = vpop.f32.mrf.mxu0 }
  0xb4   :  { %v199_v43 = vadd.f32 %v2762_v14, %v198_v39 }
  0xb5   :  { %v257_v41 = vmax.f32 %v255_v37, %v256_v38 }
  0xb6   :  { %v232_v48 = vmax.f32 %v199_v43, 0.0 }
  0xb7   :  { %v258_v42 = vrot.slane %v257_v41, 2 }
  0xb8   :  { %v262_v54 = vsel %vm154_vm0, %v232_v48, -inf }
  0xb9   :  { %v259_v45 = vmax.f32 %v257_v41, %v258_v42 }
  0xbb   :  { %v260_v46 = vrot.slane %v259_v45, 1  ;;  %v200_v47 = vpop.f32.mrf.mxu0 }
  0xbc   :  { %v201_v49 = vadd.f32 %v2762_v14, %v200_v47 }
  0xbd   :  { %v261_v51 = vmax.f32 %v259_v45, %v260_v46 }
  0xbe   :  { %v233_v52 = vmax.f32 %v201_v49, 0.0 }
  0xbf   :  { %v317_v53 = vpack.c.bf16 %v261_v51, %v261_v51 }
  0xc0   :  { %v263_v55 = vsel %vm154_vm0, %v233_v52, -inf  ;;  %v393_v56 = vpack.c.bf16 %v233_v52, %v232_v48 }
  0xc1   :  { %v341_v58 = vunpack.c.l.b16 %v317_v53  ;;  %v264_v59 = vmax.f32 %v262_v54, %v263_v55 }
  0xc2   :  { %2293 = vmatmul.msk.bf16.gmra.mxu2 %vm154_vm0, %v393_v56 }
  0xc3   :  { %v349_v60 = vsel %vm348_vm1, %v341_v58, %v340_v57  ;;  %v265_v61 = vrot.slane %v264_v59, 4  ;;  %v203_v62 = vpop.f32.mrf.mxu0 }
  0xc4   :  { %v204_v2 = vadd.f32 %v2762_v14, %v203_v62 }
  0xc5   :  { %v266_v63 = vmax.f32 %v264_v59, %v265_v61 }
  0xc6   :  { %v234_v7 = vmax.f32 %v204_v2, 0.0 }
  0xc7   :  { %v267_v0 = vrot.slane %v266_v63, 2 }
  0xc8   :  { %v271_v33 = vsel %vm154_vm0, %v234_v7, -inf }
  0xc9   :  { %v268_v1 = vmax.f32 %v266_v63, %v267_v0 }
  0xcb   :  { %v269_v3 = vrot.slane %v268_v1, 1  ;;  %v205_v4 = vpop.f32.mrf.mxu0 }
  0xcc   :  { %v206_v5 = vadd.f32 %v2762_v14, %v205_v4 }
  0xcd   :  { %v270_v6 = vmax.f32 %v268_v1, %v269_v3 }
  0xce   :  { %v235_v8 = vmax.f32 %v206_v5, 0.0 }
  0xcf   :  { %v318_v9 = vpack.c.bf16 %v270_v6, %v270_v6 }
  0xd0   :  { %v394_v10 = vpack.c.bf16 %v235_v8, %v234_v7  ;;  %v272_v30 = vsel %vm154_vm0, %v235_v8, -inf }
  0xd1   :  { %v342_v11 = vunpack.c.l.b16 %v318_v9  ;;  %v273_v35 = vmax.f32 %v271_v33, %v272_v30 }
  0xd2   :  { %2294 = vmatmul.msk.bf16.gmra.mxu2 %vm154_vm0, %v394_v10 }
  0xd3   :  { %v2784_v13 = vsel %vm350_vm2, %v342_v11, %v349_v60  ;;  %v208_v15 = vpop.f32.mrf.mxu0  ;;  %v274_v44 = vrot.slane %v273_v35, 4 }
  0xd4   :  { %v209_v16 = vadd.f32 %v2762_v14, %v208_v15 }
  0xd5   :  { %v275_v51 = vmax.f32 %v273_v35, %v274_v44 }
  0xd6   :  { %v236_v19 = vmax.f32 %v209_v16, 0.0 }
  0xd7   :  { %v276_v57 = vrot.slane %v275_v51, 2 }
  0xd8   :  { %v280_v36 = vsel %vm154_vm0, %v236_v19, -inf }
  0xd9   :  { %v277_v62 = vmax.f32 %v275_v51, %v276_v57 }
  0xdb   :  { %v210_v17 = vpop.f32.mrf.mxu0  ;;  %v278_v6 = vrot.slane %v277_v62, 1 }
  0xdc   :  { %v211_v18 = vadd.f32 %v2762_v14, %v210_v17 }
  0xdd   :  { %v279_v16 = vmax.f32 %v277_v62, %v278_v6 }
  0xde   :  { %v237_v20 = vmax.f32 %v211_v18, 0.0 }
  0xe0   :  { %v395_v21 = vpack.c.bf16 %v237_v20, %v236_v19  ;;  %v281_v32 = vsel %vm154_vm0, %v237_v20, -inf }
  0xe1   :  { %v282_v38 = vmax.f32 %v280_v36, %v281_v32 }
  0xe2   :  { %2295 = vmatmul.msk.bf16.gmra.mxu2 %vm154_vm0, %v395_v21  ;;  %v319_v21 = vpack.c.bf16 %v279_v16, %v279_v16 }
  0xe3   :  { %v213_v22 = vpop.f32.mrf.mxu0  ;;  %v283_v45 = vrot.slane %v282_v38, 4 }
  0xe4   :  { %v214_v23 = vadd.f32 %v2762_v14, %v213_v22 }
  0xe5   :  { %v284_v54 = vmax.f32 %v282_v38, %v283_v45 }
  0xe6   :  { %v238_v26 = vmax.f32 %v214_v23, 0.0 }
  0xe7   :  { %v285_v58 = vrot.slane %v284_v54, 2 }
  0xe8   :  { %v289_v39 = vsel %vm154_vm0, %v238_v26, -inf }
  0xe9   :  { %v286_v0 = vmax.f32 %v284_v54, %v285_v58 }
  0xeb   :  { %v215_v24 = vpop.f32.mrf.mxu0  ;;  %v287_v7 = vrot.slane %v286_v0, 1 }
  0xec   :  { %v216_v25 = vadd.f32 %v2762_v14, %v215_v24 }
  0xed   :  { %v288_v18 = vmax.f32 %v286_v0, %v287_v7 }
  0xee   :  { %v239_v27 = vmax.f32 %v216_v25, 0.0 }
  0xef   :  { %v320_v23 = vpack.c.bf16 %v288_v18, %v288_v18 }
  0xf0   :  { %v396_v28 = vpack.c.bf16 %v239_v27, %v238_v26  ;;  %v290_v34 = vsel %vm154_vm0, %v239_v27, -inf  ;;  %v343_v27 = vunpack.c.l.b16 %v319_v21 }
  0xf1   :  { %v291_v42 = vmax.f32 %v289_v39, %v290_v34 }
  0xf2   :  { %2296 = vmatmul.msk.bf16.gmra.mxu2 %vm154_vm0, %v396_v28  ;;  %v353_v34 = vsel %vm352_vm3, %v343_v27, %v2784_v13 }
  0xf3   :  { %v218_v29 = vpop.f32.mrf.mxu0  ;;  %v292_v49 = vrot.slane %v291_v42, 4 }
  0xf4   :  { %v219_v31 = vadd.f32 %v2762_v14, %v218_v29  ;;  %v344_v29 = vunpack.c.l.b16 %v320_v23 }
  0xf5   :  { %v293_v55 = vmax.f32 %v291_v42, %v292_v49  ;;  %v2521_v42 = vld [vmem:[%s3346_s1 + $0x18] sm:$0xff] }
  0xf6   :  { %v240_v40 = vmax.f32 %v219_v31, 0.0  ;;  %v355_v35 = vsel %vm354_vm4, %v344_v29, %v353_v34  ;;  %608 = vmatpush.bf16.msra.mxu3 %v2521_v42 }
  0xf7   :  { %v294_v60 = vrot.slane %v293_v55, 2 }
  0xf8   :  { %v298_v46 = vsel %vm154_vm0, %v240_v40, -inf }
  0xf9   :  { %v295_v3 = vmax.f32 %v293_v55, %v294_v60 }
  0xfb   :  { %v220_v37 = vpop.f32.mrf.mxu0  ;;  %v296_v11 = vrot.slane %v295_v3, 1 }
  0xfc   :  { %v221_v41 = vadd.f32 %v2762_v14, %v220_v37 }
  0xfd   :  { %v297_v19 = vmax.f32 %v295_v3, %v296_v11 }
  0xfe   :  { %v241_v43 = vmax.f32 %v221_v41, 0.0 }
  0xff   :  { %v321_v24 = vpack.c.bf16 %v297_v19, %v297_v19 }
 0x100   :  { %v299_v47 = vsel %vm154_vm0, %v241_v43, -inf  ;;  %v397_v48 = vpack.c.bf16 %v241_v43, %v240_v40  ;;  %v2520_v43 = vld [vmem:[%s3346_s1 + $0x10] sm:$0xff] }
 0x101   :  { %v300_v50 = vmax.f32 %v298_v46, %v299_v47  ;;  %v345_v30 = vunpack.c.l.b16 %v321_v24  ;;  %609 = vmatpush.bf16.msra.mxu3 %v2520_v43  ;;  %v2551_v46 = vld [vmem:[%s3350_s5] ss:$0 sm:$0xff] }
 0x102   :  { %2297 = vmatmul.msk.bf16.gmra.mxu2 %vm154_vm0, %v397_v48 }
 0x103   :  { %v301_v52 = vrot.slane %v300_v50, 4  ;;  %v223_v53 = vpop.f32.mrf.mxu0  ;;  %v357_v37 = vsel %vm356_vm5, %v345_v30, %v355_v35 }
 0x104   :  { %v224_v59 = vadd.f32 %v2762_v14, %v223_v53 }
 0x105   :  { %v302_v56 = vmax.f32 %v300_v50, %v301_v52 }
 0x106   :  { %v242_v1 = vmax.f32 %v224_v59, 0.0 }
 0x107   :  { %v303_v61 = vrot.slane %v302_v56, 2 }
 0x108   :  { %v307_v8 = vsel %vm154_vm0, %v242_v1, -inf }
 0x109   :  { %v304_v4 = vmax.f32 %v302_v56, %v303_v61 }
 0x10b   :  { %v225_v63 = vpop.f32.mrf.mxu0  ;;  %v305_v15 = vrot.slane %v304_v4, 1 }
 0x10c   :  { %v226_v2 = vadd.f32 %v2762_v14, %v225_v63 }
 0x10d   :  { %v306_v20 = vmax.f32 %v304_v4, %v305_v15 }
 0x10e   :  { %v243_v5 = vmax.f32 %v226_v2, 0.0 }
 0x10f   :  { %v322_v26 = vpack.c.bf16 %v306_v20, %v306_v20 }
 0x110   :  { %v308_v9 = vsel %vm154_vm0, %v243_v5, -inf  ;;  %v398_v10 = vpack.c.bf16 %v243_v5, %v242_v1 }
 0x111   :  { %v309_v12 = vmax.f32 %v307_v8, %v308_v9  ;;  %v346_v32 = vunpack.c.l.b16 %v322_v26 }
 0x112   :  { %2298 = vmatmul.msk.bf16.gmra.mxu2 %vm154_vm0, %v398_v10 }
 0x113   :  { %v310_v17 = vrot.slane %v309_v12, 4  ;;  %v359_v38 = vsel %vm358_vm6, %v346_v32, %v357_v37 }
 0x115   :  { %v311_v14 = vmax.f32 %v309_v12, %v310_v17 }
 0x117   :  { %v312_v22 = vrot.slane %v311_v14, 2 }
 0x119   :  { %v313_v25 = vmax.f32 %v311_v14, %v312_v22 }
 0x11b   :  { %v314_v28 = vrot.slane %v313_v25, 1 }
 0x11d   :  { %v315_v31 = vmax.f32 %v313_v25, %v314_v28 }
 0x11f   :  { %v323_v33 = vpack.c.bf16 %v315_v31, %v315_v31 }
 0x121   :  { %v347_v36 = vunpack.c.l.b16 %v323_v33 }
 0x123   :  { %v361_v39 = vsel %vm360_vm7, %v347_v36, %v359_v38 }
 0x124   :  { %v362_v40 = vpack.c.b16 %v361_v39, %v361_v39 }
 0x125   :  { %v448_v41 = vpop.f32.mrf.mxu2 }
 0x126   :  { %2282 = vmatmul.msk.bf16.vlgmr.msrb.gmra.mxu0 %vm154_vm0, %v362_v40 }
 0x12d   :  { %v450_v13 = vpop.f32.mrf.mxu2 }
 0x135   :  { %v453_v44 = vpop.f32.mrf.mxu2 }
 0x13d   :  { %v455_v45 = vpop.f32.mrf.mxu2 }
 0x145   :  { %v458_v49 = vpop.f32.mrf.mxu2 }
 0x14d   :  { %v460_v58 = vpop.f32.mrf.mxu2 }
 0x155   :  { %v463_v0 = vpop.f32.mrf.mxu2 }
 0x15d   :  { %v465_v4 = vpop.f32.mrf.mxu2 }
 0x165   :  { %v468_v11 = vpop.f32.mrf.mxu2 }
 0x16d   :  { %v470_v17 = vpop.f32.mrf.mxu2 }
 0x175   :  { %v473_v22 = vpop.f32.mrf.mxu2 }
 0x17d   :  { %v475_v27 = vpop.f32.mrf.mxu2 }
 0x185   :  { %v478_v33 = vpop.f32.mrf.mxu2 }
 0x18d   :  { %v480_v38 = vpop.f32.mrf.mxu2 }
 0x195   :  { %v483_v43 = vpop.f32.mrf.mxu2 }
 0x1a3   :  { %v387_v47 = vpop.f32.mrf.mxu0 }
 0x1a4   :  { %v2824_v48 = vadd.f32 %v2551_v46, %v387_v47  ;;  %v485_v47 = vpop.f32.mrf.mxu2 }
 0x1a6   :  { %v496_v50 = vperm.slane %v2824_v48, 0  ;;  %v489_v57 = vrot.slane %v2824_v48, 1  ;;  %v490_v2 = vrot.slane %v2824_v48, 2  ;;  %v491_v10 = vrot.slane %v2824_v48, 3 }
 0x1a7   :  { %v492_v20 = vrot.slane %v2824_v48, 4  ;;  %v493_v29 = vrot.slane %v2824_v48, 5  ;;  %v494_v37 = vrot.slane %v2824_v48, 6 }
 0x1a8   :  { %v512_v51 = vadd.f32 %v496_v50, %v448_v41  ;;  %v513_v52 = vadd.f32 %v496_v50, %v450_v13  ;;  %v497_v59 = vperm.slane %v489_v57, 0  ;;  %v498_v3 = vperm.slane %v490_v2, 0  ;;  %v2523_v57 = vld [vmem:[#allocation5 + $0x18] sm:$0xff] }
 0x1a9   :  { %v499_v12 = vperm.slane %v491_v10, 0  ;;  %v500_v21 = vperm.slane %v492_v20, 0  ;;  %v501_v30 = vperm.slane %v493_v29, 0  ;;  %v502_v39 = vperm.slane %v494_v37, 0  ;;  %802 = vmatpush.bf16.msrb.mxu2 %v2523_v57 }
 0x1aa   :  { %v528_v53 = vmax.f32 %v512_v51, 0.0  ;;  %v529_v54 = vmax.f32 %v513_v52, 0.0  ;;  %v514_v60 = vadd.f32 %v497_v59, %v453_v44  ;;  %v515_v61 = vadd.f32 %v497_v59, %v455_v45 }
 0x1ab   :  { %v389_v55 = vpop.f32.mrf.mxu0  ;;  %v516_v5 = vadd.f32 %v498_v3, %v458_v49  ;;  %v517_v6 = vadd.f32 %v498_v3, %v460_v58  ;;  %v518_v15 = vadd.f32 %v499_v12, %v463_v0  ;;  %v519_v16 = vadd.f32 %v499_v12, %v465_v4  ;;  %v2869_v58 = vld [vmem:[%s3347_s2 + $0x1] ss:$0 sm:$0xff] }
 0x1ac   :  { %v2827_v56 = vpack.c.bf16 %v529_v54, %v528_v53  ;;  %v530_v62 = vmax.f32 %v514_v60, 0.0  ;;  %v531_v63 = vmax.f32 %v515_v61, 0.0  ;;  %v520_v23 = vadd.f32 %v500_v21, %v468_v11  ;;  %v2525_v54 = vld [vmem:[#allocation2 + $0x18] sm:$0xff]  ;;  %v2524_v55 = vld [vmem:[#allocation2 + $0x10] sm:$0xff] }
 0x1ad   :  { %v532_v7 = vmax.f32 %v516_v5, 0.0  ;;  %v533_v8 = vmax.f32 %v517_v6, 0.0  ;;  %v534_v18 = vmax.f32 %v518_v15, 0.0  ;;  %v535_v19 = vmax.f32 %v519_v16, 0.0  ;;  %864 = vmatpush.bf16.msra.mxu1 %v2525_v54 }
 0x1ae   :  { %2312 = vmatmul.msk.bf16.vlgmr.msra.gmra.mxu3 %vm154_vm0, %v2827_v56  ;;  %v2832_v1 = vpack.c.bf16 %v531_v63, %v530_v62  ;;  %v521_v24 = vadd.f32 %v500_v21, %v470_v17  ;;  %v536_v25 = vmax.f32 %v520_v23, 0.0  ;;  %v522_v31 = vadd.f32 %v501_v30, %v473_v22 }
 0x1af   :  { %v2837_v9 = vpack.c.bf16 %v533_v8, %v532_v7  ;;  %v2842_v14 = vpack.c.bf16 %v535_v19, %v534_v18  ;;  %v523_v32 = vadd.f32 %v501_v30, %v475_v27  ;;  %v524_v40 = vadd.f32 %v502_v39, %v478_v33 }
 0x1b0   :  { %v537_v26 = vmax.f32 %v521_v24, 0.0  ;;  %v538_v34 = vmax.f32 %v522_v31, 0.0  ;;  %v525_v41 = vadd.f32 %v502_v39, %v480_v38  ;;  %v495_v45 = vrot.slane %v2824_v48, 7 }
 0x1b1   :  { %v539_v35 = vmax.f32 %v523_v32, 0.0  ;;  %v540_v42 = vmax.f32 %v524_v40, 0.0  ;;  %865 = vmatpush.bf16.msra.mxu1 %v2524_v55 }
 0x1b2   :  { %v2847_v28 = vpack.c.bf16 %v537_v26, %v536_v25  ;;  %v541_v13 = vmax.f32 %v525_v41, 0.0  ;;  %v503_v46 = vperm.slane %v495_v45, 0 }
 0x1b3   :  { %v2852_v36 = vpack.c.bf16 %v539_v35, %v538_v34 }
 0x1b4   :  { %v2857_v44 = vpack.c.bf16 %v541_v13, %v540_v42  ;;  %v526_v49 = vadd.f32 %v503_v46, %v483_v43  ;;  %v527_v50 = vadd.f32 %v503_v46, %v485_v47 }
 0x1b6   :  { %v542_v51 = vmax.f32 %v526_v49, 0.0  ;;  %v543_v52 = vmax.f32 %v527_v50, 0.0 }
 0x1b8   :  { %v2862_v53 = vpack.c.bf16 %v543_v52, %v542_v51 }
 0x1be   :  { %2313 = vmatmul.msk.bf16.gmra.mxu3 %vm154_vm0, %v2832_v1 }
 0x1ce   :  { %2314 = vmatmul.msk.bf16.gmra.mxu3 %vm154_vm0, %v2837_v9 }
 0x1de   :  { %2315 = vmatmul.msk.bf16.gmra.mxu3 %vm154_vm0, %v2842_v14 }
 0x1ee   :  { %2316 = vmatmul.msk.bf16.gmra.mxu3 %vm154_vm0, %v2847_v28 }
 0x1fe   :  { %2317 = vmatmul.msk.bf16.gmra.mxu3 %vm154_vm0, %v2852_v36 }
 0x20e   :  { %2318 = vmatmul.msk.bf16.gmra.mxu3 %vm154_vm0, %v2857_v44 }
 0x21e   :  { %2319 = vmatmul.msk.bf16.gmra.mxu3 %vm154_vm0, %v2862_v53 }
 0x231   :  { %v611_v48 = vpop.f32.mrf.mxu3 }
 0x232   :  { %v612_v59 = vadd.f32 %v2869_v58, %v611_v48 }
 0x234   :  { %v651_v61 = vmax.f32 %v612_v59, 0.0 }
 0x236   :  { %v667_v0 = vsel %vm154_vm0, %v651_v61, -inf }
 0x239   :  { %v613_v60 = vpop.f32.mrf.mxu3 }
 0x23a   :  { %v614_v62 = vadd.f32 %v2869_v58, %v613_v60 }
 0x23c   :  { %v652_v63 = vmax.f32 %v614_v62, 0.0 }
 0x23e   :  { %v668_v2 = vsel %vm154_vm0, %v652_v63, -inf  ;;  %v809_v3 = vpack.c.bf16 %v652_v63, %v651_v61 }
 0x23f   :  { %v669_v4 = vmax.f32 %v667_v0, %v668_v2  ;;  %v2522_v2 = vld [vmem:[#allocation5 + $0x10] sm:$0xff] }
 0x240   :  { %2338 = vmatmul.msk.bf16.vlgmr.msra.gmra.mxu1 %vm154_vm0, %v809_v3  ;;  %803 = vmatpush.bf16.msrb.mxu2 %v2522_v2 }
 0x241   :  { %v616_v5 = vpop.f32.mrf.mxu3  ;;  %v670_v6 = vrot.slane %v669_v4, 4 }
 0x242   :  { %v617_v7 = vadd.f32 %v2869_v58, %v616_v5 }
 0x243   :  { %v671_v8 = vmax.f32 %v669_v4, %v670_v6 }
 0x244   :  { %v653_v11 = vmax.f32 %v617_v7, 0.0 }
 0x245   :  { %v672_v15 = vrot.slane %v671_v8, 2 }
 0x246   :  { %v676_v17 = vsel %vm154_vm0, %v653_v11, -inf }
 0x247   :  { %v673_v20 = vmax.f32 %v671_v8, %v672_v15 }
 0x249   :  { %v618_v10 = vpop.f32.mrf.mxu3  ;;  %v674_v24 = vrot.slane %v673_v20, 1 }
 0x24a   :  { %v619_v12 = vadd.f32 %v2869_v58, %v618_v10 }
 0x24b   :  { %v675_v29 = vmax.f32 %v673_v20, %v674_v24 }
 0x24c   :  { %v654_v16 = vmax.f32 %v619_v12, 0.0 }
 0x24d   :  { %v739_v35 = vpack.c.bf16 %v675_v29, %v675_v29 }
 0x24e   :  { %v677_v18 = vsel %vm154_vm0, %v654_v16, -inf  ;;  %v810_v19 = vpack.c.bf16 %v654_v16, %v653_v11 }
 0x24f   :  { %v678_v21 = vmax.f32 %v676_v17, %v677_v18  ;;  %v765_v13 = vunpack.c.l.b16 %v739_v35 }
 0x250   :  { %2339 = vmatmul.msk.bf16.gmra.mxu1 %vm154_vm0, %v810_v19 }
 0x251   :  { %v679_v22 = vrot.slane %v678_v21, 4  ;;  %v621_v23 = vpop.f32.mrf.mxu3 }
 0x252   :  { %v622_v27 = vadd.f32 %v2869_v58, %v621_v23 }
 0x253   :  { %v680_v25 = vmax.f32 %v678_v21, %v679_v22 }
 0x254   :  { %v655_v33 = vmax.f32 %v622_v27, 0.0 }
 0x255   :  { %v681_v26 = vrot.slane %v680_v25, 2 }
 0x256   :  { %v685_v40 = vsel %vm154_vm0, %v655_v33, -inf }
 0x257   :  { %v682_v30 = vmax.f32 %v680_v25, %v681_v26 }
 0x259   :  { %v683_v31 = vrot.slane %v682_v30, 1  ;;  %v623_v32 = vpop.f32.mrf.mxu3 }
 0x25a   :  { %v624_v34 = vadd.f32 %v2869_v58, %v623_v32 }
 0x25b   :  { %v684_v37 = vmax.f32 %v682_v30, %v683_v31 }
 0x25c   :  { %v656_v38 = vmax.f32 %v624_v34, 0.0 }
 0x25d   :  { %v740_v39 = vpack.c.bf16 %v684_v37, %v684_v37 }
 0x25e   :  { %v686_v41 = vsel %vm154_vm0, %v656_v38, -inf  ;;  %v811_v42 = vpack.c.bf16 %v656_v38, %v655_v33 }
 0x25f   :  { %v766_v43 = vunpack.c.l.b16 %v740_v39  ;;  %v687_v45 = vmax.f32 %v685_v40, %v686_v41 }
 0x260   :  { %2340 = vmatmul.msk.bf16.gmra.mxu1 %vm154_vm0, %v811_v42 }
 0x261   :  { %v773_v46 = vsel %vm348_vm1, %v766_v43, %v765_v13  ;;  %v688_v47 = vrot.slane %v687_v45, 4  ;;  %v626_v49 = vpop.f32.mrf.mxu3 }
 0x262   :  { %v627_v54 = vadd.f32 %v2869_v58, %v626_v49 }
 0x263   :  { %v689_v50 = vmax.f32 %v687_v45, %v688_v47 }
 0x264   :  { %v657_v60 = vmax.f32 %v627_v54, 0.0 }
 0x265   :  { %v690_v51 = vrot.slane %v689_v50, 2 }
 0x266   :  { %v694_v25 = vsel %vm154_vm0, %v657_v60, -inf }
 0x267   :  { %v691_v52 = vmax.f32 %v689_v50, %v690_v51 }
 0x269   :  { %v692_v55 = vrot.slane %v691_v52, 1  ;;  %v628_v57 = vpop.f32.mrf.mxu3 }
 0x26a   :  { %v629_v48 = vadd.f32 %v2869_v58, %v628_v57 }
 0x26b   :  { %v693_v59 = vmax.f32 %v691_v52, %v692_v55 }
 0x26c   :  { %v658_v61 = vmax.f32 %v629_v48, 0.0 }
 0x26d   :  { %v741_v62 = vpack.c.bf16 %v693_v59, %v693_v59 }
 0x26e   :  { %v812_v63 = vpack.c.bf16 %v658_v61, %v657_v60  ;;  %v695_v22 = vsel %vm154_vm0, %v658_v61, -inf }
 0x26f   :  { %v767_v0 = vunpack.c.l.b16 %v741_v62  ;;  %v696_v27 = vmax.f32 %v694_v25, %v695_v22 }
 0x270   :  { %2341 = vmatmul.msk.bf16.gmra.mxu1 %vm154_vm0, %v812_v63 }
 0x271   :  { %v2891_v3 = vsel %vm350_vm2, %v767_v0, %v773_v46  ;;  %v631_v4 = vpop.f32.mrf.mxu3  ;;  %v697_v38 = vrot.slane %v696_v27, 4 }
 0x272   :  { %v632_v5 = vadd.f32 %v2869_v58, %v631_v4 }
 0x273   :  { %v698_v45 = vmax.f32 %v696_v27, %v697_v38 }
 0x274   :  { %v659_v8 = vmax.f32 %v632_v5, 0.0 }
 0x275   :  { %v699_v52 = vrot.slane %v698_v45, 2 }
 0x276   :  { %v703_v29 = vsel %vm154_vm0, %v659_v8, -inf }
 0x277   :  { %v700_v59 = vmax.f32 %v698_v45, %v699_v52 }
 0x279   :  { %v633_v6 = vpop.f32.mrf.mxu3  ;;  %v701_v5 = vrot.slane %v700_v59, 1 }
 0x27a   :  { %v634_v7 = vadd.f32 %v2869_v58, %v633_v6  ;;  %v2519_v6 = vld [vmem:[#allocation7 + $0x8] sm:$0xff] }
 0x27b   :  { %1079 = vmatpush.bf16.msra.mxu2 %v2519_v6 }
 0x27c   :  { %v660_v10 = vmax.f32 %v634_v7, 0.0  ;;  %v2529_v7 = vld [vmem:[%s3346_s1 + $0x28] sm:$0xff] }
 0x27d   :  { %1150 = vmatpush.bf16.msrb.mxu3 %v2529_v7 }
 0x27e   :  { %v813_v11 = vpack.c.bf16 %v660_v10, %v659_v8  ;;  %v704_v24 = vsel %vm154_vm0, %v660_v10, -inf }
 0x27f   :  { %v705_v31 = vmax.f32 %v703_v29, %v704_v24 }
 0x280   :  { %2342 = vmatmul.msk.bf16.gmra.mxu1 %vm154_vm0, %v813_v11 }
 0x281   :  { %v636_v12 = vpop.f32.mrf.mxu3  ;;  %v706_v39 = vrot.slane %v705_v31, 4 }
 0x282   :  { %v637_v15 = vadd.f32 %v2869_v58, %v636_v12 }
 0x283   :  { %v707_v49 = vmax.f32 %v705_v31, %v706_v39 }
 0x284   :  { %v661_v18 = vmax.f32 %v637_v15, 0.0 }
 0x285   :  { %v708_v54 = vrot.slane %v707_v49, 2 }
 0x286   :  { %v712_v32 = vsel %vm154_vm0, %v661_v18, -inf }
 0x287   :  { %v709_v61 = vmax.f32 %v707_v49, %v708_v54 }
 0x289   :  { %v638_v16 = vpop.f32.mrf.mxu3  ;;  %v710_v8 = vrot.slane %v709_v61, 1 }
 0x28a   :  { %v639_v17 = vadd.f32 %v2869_v58, %v638_v16 }
 0x28c   :  { %v662_v19 = vmax.f32 %v639_v17, 0.0  ;;  %v2518_v17 = vld [vmem:[#allocation7] sm:$0xff] }
 0x28d   :  { %1080 = vmatpush.bf16.msra.mxu2 %v2518_v17 }
 0x28e   :  { %v814_v20 = vpack.c.bf16 %v662_v19, %v661_v18  ;;  %v713_v26 = vsel %vm154_vm0, %v662_v19, -inf  ;;  %v702_v18 = vmax.f32 %v700_v59, %v701_v5 }
 0x28f   :  { %v714_v35 = vmax.f32 %v712_v32, %v713_v26 }
 0x290   :  { %2343 = vmatmul.msk.bf16.gmra.mxu1 %vm154_vm0, %v814_v20  ;;  %v711_v20 = vmax.f32 %v709_v61, %v710_v8  ;;  %v742_v24 = vpack.c.bf16 %v702_v18, %v702_v18 }
 0x291   :  { %v641_v21 = vpop.f32.mrf.mxu3  ;;  %v715_v13 = vrot.slane %v714_v35, 4 }
 0x292   :  { %v642_v23 = vadd.f32 %v2869_v58, %v641_v21  ;;  %v743_v26 = vpack.c.bf16 %v711_v20, %v711_v20  ;;  %v768_v31 = vunpack.c.l.b16 %v742_v24 }
 0x293   :  { %v716_v50 = vmax.f32 %v714_v35, %v715_v13 }
 0x294   :  { %v663_v33 = vmax.f32 %v642_v23, 0.0  ;;  %v775_v39 = vsel %vm352_vm3, %v768_v31, %v2891_v3  ;;  %v2528_v3 = vld [vmem:[%s3346_s1 + $0x20] sm:$0xff] }
 0x295   :  { %v717_v57 = vrot.slane %v716_v50, 2  ;;  %1151 = vmatpush.bf16.msrb.mxu3 %v2528_v3 }
 0x296   :  { %v721_v40 = vsel %vm154_vm0, %v663_v33, -inf }
 0x297   :  { %v718_v0 = vmax.f32 %v716_v50, %v717_v57 }
 0x299   :  { %v643_v30 = vpop.f32.mrf.mxu3  ;;  %v719_v15 = vrot.slane %v718_v0, 1 }
 0x29a   :  { %v644_v34 = vadd.f32 %v2869_v58, %v643_v30 }
 0x29b   :  { %v720_v21 = vmax.f32 %v718_v0, %v719_v15 }
 0x29c   :  { %v664_v37 = vmax.f32 %v644_v34, 0.0 }
 0x29d   :  { %v744_v27 = vpack.c.bf16 %v720_v21, %v720_v21 }
 0x29e   :  { %v722_v41 = vsel %vm154_vm0, %v664_v37, -inf  ;;  %v815_v42 = vpack.c.bf16 %v664_v37, %v663_v33  ;;  %v769_v33 = vunpack.c.l.b16 %v743_v26 }
 0x29f   :  { %v723_v43 = vmax.f32 %v721_v40, %v722_v41  ;;  %v770_v34 = vunpack.c.l.b16 %v744_v27 }
 0x2a0   :  { %2344 = vmatmul.msk.bf16.gmra.mxu1 %vm154_vm0, %v815_v42  ;;  %v776_v40 = vsel %vm354_vm4, %v769_v33, %v775_v39 }
 0x2a1   :  { %v724_v46 = vrot.slane %v723_v43, 4  ;;  %v646_v47 = vpop.f32.mrf.mxu3  ;;  %v777_v42 = vsel %vm356_vm5, %v770_v34, %v776_v40 }
 0x2a2   :  { %v647_v55 = vadd.f32 %v2869_v58, %v646_v47  ;;  %v2526_v47 = vld [vmem:[#allocation7 + $0x10] sm:$0xff] }
 0x2a3   :  { %v725_v51 = vmax.f32 %v723_v43, %v724_v46 }
 0x2a4   :  { %v665_v62 = vmax.f32 %v647_v55, 0.0 }
 0x2a5   :  { %v726_v48 = vrot.slane %v725_v51, 2 }
 0x2a6   :  { %v730_v10 = vsel %vm154_vm0, %v665_v62, -inf }
 0x2a7   :  { %v727_v2 = vmax.f32 %v725_v51, %v726_v48 }
 0x2a9   :  { %v648_v60 = vpop.f32.mrf.mxu3 }
 0x2aa   :  { %v649_v63 = vadd.f32 %v2869_v58, %v648_v60  ;;  %v728_v58 = vrot.slane %v727_v2, 1 }
 0x2ac   :  { %v666_v4 = vmax.f32 %v649_v63, 0.0  ;;  %v729_v23 = vmax.f32 %v727_v2, %v728_v58 }
 0x2ae   :  { %v731_v11 = vsel %vm154_vm0, %v666_v4, -inf  ;;  %v816_v12 = vpack.c.bf16 %v666_v4, %v665_v62  ;;  %v745_v30 = vpack.c.bf16 %v729_v23, %v729_v23 }
 0x2af   :  { %v732_v16 = vmax.f32 %v730_v10, %v731_v11 }
 0x2b0   :  { %2345 = vmatmul.msk.bf16.gmra.mxu1 %vm154_vm0, %v816_v12  ;;  %v771_v37 = vunpack.c.l.b16 %v745_v30 }
 0x2b1   :  { %v733_v19 = vrot.slane %v732_v16, 4 }
 0x2b2   :  { %v778_v13 = vsel %vm358_vm6, %v771_v37, %v777_v42 }
 0x2b3   :  { %v734_v22 = vmax.f32 %v732_v16, %v733_v19 }
 0x2b5   :  { %v735_v25 = vrot.slane %v734_v22, 2 }
 0x2b7   :  { %v736_v29 = vmax.f32 %v734_v22, %v735_v25 }
 0x2b9   :  { %v737_v32 = vrot.slane %v736_v29, 1 }
 0x2bb   :  { %v738_v35 = vmax.f32 %v736_v29, %v737_v32 }
 0x2bd   :  { %v746_v38 = vpack.c.bf16 %v738_v35, %v738_v35  ;;  %v867_v46 = vpop.f32.mrf.mxu1 }
 0x2bf   :  { %v772_v41 = vunpack.c.l.b16 %v746_v38 }
 0x2c1   :  { %v779_v43 = vsel %vm360_vm7, %v772_v41, %v778_v13 }
 0x2c2   :  { %v780_v45 = vpack.c.b16 %v779_v43, %v779_v43 }
 0x2c4   :  { %2329 = vmatmul.msk.bf16.vlgmr.msrb.gmra.mxu2 %vm154_vm0, %v780_v45 }
 0x2d4   :  { %2370 = vmatmul.msk.bf16.vlgmr.msra.gmra.mxu2 %vm154_vm0, %v2827_v56  ;;  %v2527_v56 = vld [vmem:[#allocation7 + $0x18] sm:$0xff] }
 0x2d5   :  { %1018 = vmatpush.bf16.msra.mxu0 %v2527_v56 }
 0x2d9   :  { %1019 = vmatpush.bf16.msra.mxu0 %v2526_v47 }
 0x2e4   :  { %2371 = vmatmul.msk.bf16.gmra.mxu2 %vm154_vm0, %v2832_v1  ;;  %v869_v1 = vpop.f32.mrf.mxu1 }
 0x2ec   :  { %v872_v49 = vpop.f32.mrf.mxu1 }
 0x2f4   :  { %2372 = vmatmul.msk.bf16.gmra.mxu2 %vm154_vm0, %v2837_v9  ;;  %v874_v9 = vpop.f32.mrf.mxu1 }
 0x304   :  { %2373 = vmatmul.msk.bf16.gmra.mxu2 %vm154_vm0, %v2842_v14  ;;  %v2553_v14 = vld [vmem:[%s3350_s5 + $0x1] ss:$0 sm:$0xff] }
 0x314   :  { %2374 = vmatmul.msk.bf16.gmra.mxu2 %vm154_vm0, %v2847_v28 }
 0x324   :  { %2375 = vmatmul.msk.bf16.gmra.mxu2 %vm154_vm0, %v2852_v36  ;;  %v877_v36 = vpop.f32.mrf.mxu1 }
 0x334   :  { %2376 = vmatmul.msk.bf16.gmra.mxu2 %vm154_vm0, %v2857_v44 }
 0x344   :  { %2377 = vmatmul.msk.bf16.gmra.mxu2 %vm154_vm0, %v2862_v53  ;;  %v879_v53 = vpop.f32.mrf.mxu1 }
 0x347   :  { %v805_v28 = vpop.f32.mrf.mxu2 }
 0x348   :  { %v2947_v50 = vadd.f32 %v2553_v14, %v805_v28 }
 0x34a   :  { %v915_v51 = vperm.slane %v2947_v50, 0  ;;  %v908_v59 = vrot.slane %v2947_v50, 1  ;;  %v909_v5 = vrot.slane %v2947_v50, 2  ;;  %v910_v16 = vrot.slane %v2947_v50, 3 }
 0x34b   :  { %v911_v24 = vrot.slane %v2947_v50, 4  ;;  %v912_v34 = vrot.slane %v2947_v50, 5  ;;  %v913_v13 = vrot.slane %v2947_v50, 6 }
 0x34c   :  { %v931_v52 = vadd.f32 %v915_v51, %v867_v46  ;;  %v932_v54 = vadd.f32 %v915_v51, %v869_v1  ;;  %v916_v60 = vperm.slane %v908_v59, 0  ;;  %v882_v2 = vpop.f32.mrf.mxu1  ;;  %v917_v6 = vperm.slane %v909_v5, 0 }
 0x34d   :  { %v918_v58 = vperm.slane %v910_v16, 0  ;;  %v919_v25 = vperm.slane %v911_v24, 0  ;;  %v920_v35 = vperm.slane %v912_v34, 0  ;;  %v921_v45 = vperm.slane %v913_v13, 0 }
 0x34e   :  { %v947_v55 = vmax.f32 %v931_v52, 0.0  ;;  %v948_v57 = vmax.f32 %v932_v54, 0.0  ;;  %v933_v61 = vadd.f32 %v916_v60, %v872_v49  ;;  %v934_v62 = vadd.f32 %v916_v60, %v874_v9 }
 0x34f   :  { %v807_v44 = vpop.f32.mrf.mxu2  ;;  %v935_v8 = vadd.f32 %v917_v6, %v877_v36  ;;  %v936_v10 = vadd.f32 %v917_v6, %v879_v53  ;;  %v937_v18 = vadd.f32 %v918_v58, %v882_v2  ;;  %v914_v9 = vrot.slane %v2947_v50, 7  ;;  %v2976_v50 = vld [vmem:[%s3347_s2 + $0x2] ss:$0 sm:$0xff] }
 0x350   :  { %v963_v48 = vpack.c.bf16 %v948_v57, %v947_v55  ;;  %v949_v63 = vmax.f32 %v933_v61, 0.0  ;;  %v950_v0 = vmax.f32 %v934_v62, 0.0  ;;  %v2531_v57 = vld [vmem:[#allocation5 + $0x28] sm:$0xff] }
 0x351   :  { %v951_v11 = vmax.f32 %v935_v8, 0.0  ;;  %v952_v12 = vmax.f32 %v936_v10, 0.0  ;;  %v953_v21 = vmax.f32 %v937_v18, 0.0  ;;  %v922_v14 = vperm.slane %v914_v9, 0  ;;  %1344 = vmatpush.bf16.msrb.mxu1 %v2531_v57 }
 0x352   :  { %2354 = vmatmul.msk.bf16.vlgmr.msra.gmra.mxu0 %vm154_vm0, %v963_v48  ;;  %2391 = vmatmul.msk.bf16.vlgmr.msrb.gmra.mxu3 %vm154_vm0, %v963_v48  ;;  %v964_v4 = vpack.c.bf16 %v950_v0, %v949_v63 }
 0x353   :  { %v965_v15 = vpack.c.bf16 %v952_v12, %v951_v11 }
 0x354   :  { %v884_v7 = vpop.f32.mrf.mxu1 }
 0x355   :  { %v938_v19 = vadd.f32 %v918_v58, %v884_v7 }
 0x357   :  { %v954_v22 = vmax.f32 %v938_v19, 0.0 }
 0x359   :  { %v966_v23 = vpack.c.bf16 %v954_v22, %v953_v21 }
 0x35c   :  { %v887_v17 = vpop.f32.mrf.mxu1 }
 0x35d   :  { %v939_v27 = vadd.f32 %v919_v25, %v887_v17 }
 0x35f   :  { %v955_v30 = vmax.f32 %v939_v27, 0.0 }
 0x362   :  { %2355 = vmatmul.msk.bf16.gmra.mxu0 %vm154_vm0, %v964_v4  ;;  %2392 = vmatmul.msk.bf16.gmra.mxu3 %vm154_vm0, %v964_v4 }
 0x364   :  { %v889_v20 = vpop.f32.mrf.mxu1 }
 0x365   :  { %v940_v29 = vadd.f32 %v919_v25, %v889_v20 }
 0x367   :  { %v956_v31 = vmax.f32 %v940_v29, 0.0 }
 0x369   :  { %v967_v33 = vpack.c.bf16 %v956_v31, %v955_v30 }
 0x36c   :  { %v892_v26 = vpop.f32.mrf.mxu1 }
 0x36d   :  { %v941_v37 = vadd.f32 %v920_v35, %v892_v26 }
 0x36f   :  { %v957_v40 = vmax.f32 %v941_v37, 0.0 }
 0x372   :  { %2356 = vmatmul.msk.bf16.gmra.mxu0 %vm154_vm0, %v965_v15  ;;  %2393 = vmatmul.msk.bf16.gmra.mxu3 %vm154_vm0, %v965_v15 }
 0x374   :  { %v894_v32 = vpop.f32.mrf.mxu1 }
 0x375   :  { %v942_v38 = vadd.f32 %v920_v35, %v894_v32 }
 0x377   :  { %v958_v41 = vmax.f32 %v942_v38, 0.0 }
 0x379   :  { %v968_v42 = vpack.c.bf16 %v958_v41, %v957_v40 }
 0x37c   :  { %v897_v39 = vpop.f32.mrf.mxu1 }
 0x37d   :  { %v943_v3 = vadd.f32 %v921_v45, %v897_v39 }
 0x37f   :  { %v959_v56 = vmax.f32 %v943_v3, 0.0 }
 0x382   :  { %2357 = vmatmul.msk.bf16.gmra.mxu0 %vm154_vm0, %v966_v23  ;;  %2394 = vmatmul.msk.bf16.gmra.mxu3 %vm154_vm0, %v966_v23 }
 0x384   :  { %v899_v43 = vpop.f32.mrf.mxu1 }
 0x385   :  { %v944_v46 = vadd.f32 %v921_v45, %v899_v43 }
 0x387   :  { %v960_v1 = vmax.f32 %v944_v46, 0.0 }
 0x389   :  { %v969_v49 = vpack.c.bf16 %v960_v1, %v959_v56 }
 0x38c   :  { %v902_v47 = vpop.f32.mrf.mxu1 }
 0x38d   :  { %v945_v36 = vadd.f32 %v922_v14, %v902_v47 }
 0x38f   :  { %v961_v52 = vmax.f32 %v945_v36, 0.0 }
 0x392   :  { %2358 = vmatmul.msk.bf16.gmra.mxu0 %vm154_vm0, %v967_v33  ;;  %2395 = vmatmul.msk.bf16.gmra.mxu3 %vm154_vm0, %v967_v33 }
 0x394   :  { %v904_v28 = vpop.f32.mrf.mxu1 }
 0x395   :  { %v946_v51 = vadd.f32 %v922_v14, %v904_v28 }
 0x397   :  { %v962_v54 = vmax.f32 %v946_v51, 0.0 }
 0x399   :  { %v970_v55 = vpack.c.bf16 %v962_v54, %v961_v52 }
 0x3a2   :  { %2359 = vmatmul.msk.bf16.gmra.mxu0 %vm154_vm0, %v968_v42  ;;  %2396 = vmatmul.msk.bf16.gmra.mxu3 %vm154_vm0, %v968_v42 }
 0x3b2   :  { %2360 = vmatmul.msk.bf16.gmra.mxu0 %vm154_vm0, %v969_v49  ;;  %2397 = vmatmul.msk.bf16.gmra.mxu3 %vm154_vm0, %v969_v49 }
 0x3c2   :  { %2361 = vmatmul.msk.bf16.gmra.mxu0 %vm154_vm0, %v970_v55  ;;  %2398 = vmatmul.msk.bf16.gmra.mxu3 %vm154_vm0, %v970_v55 }
 0x3d5   :  { %v1153_v44 = vpop.f32.mrf.mxu3 }
 0x3d6   :  { %v2979_v48 = vadd.f32 %v2976_v50, %v1153_v44  ;;  %v2530_v44 = vld [vmem:[#allocation5 + $0x20] sm:$0xff] }
 0x3d7   :  { %1345 = vmatpush.bf16.msrb.mxu1 %v2530_v44 }
 0x3d8   :  { %v1193_v53 = vmax.f32 %v2979_v48, 0.0  ;;  %v2535_v48 = vld [vmem:[#allocation7 + $0x28] sm:$0xff] }
 0x3d9   :  { %1560 = vmatpush.bf16.msrb.mxu0 %v2535_v48 }
 0x3da   :  { %v1209_v62 = vsel %vm154_vm0, %v1193_v53, -inf }
 0x3dd   :  { %v1155_v59 = vpop.f32.mrf.mxu3 }
 0x3de   :  { %v2983_v60 = vadd.f32 %v2976_v50, %v1155_v59 }
 0x3e0   :  { %v1194_v61 = vmax.f32 %v2983_v60, 0.0  ;;  %v2534_v60 = vld [vmem:[#allocation7 + $0x20] sm:$0xff] }
 0x3e1   :  { %1561 = vmatpush.bf16.msrb.mxu0 %v2534_v60 }
 0x3e2   :  { %v1210_v63 = vsel %vm154_vm0, %v1194_v61, -inf }
 0x3e3   :  { %v1211_v0 = vmax.f32 %v1209_v62, %v1210_v63 }
 0x3e5   :  { %v1158_v2 = vpop.f32.mrf.mxu3  ;;  %v1212_v4 = vrot.slane %v1211_v0, 4 }
 0x3e6   :  { %v2993_v5 = vadd.f32 %v2976_v50, %v1158_v2 }
 0x3e7   :  { %v1213_v6 = vmax.f32 %v1211_v0, %v1212_v4 }
 0x3e8   :  { %v1195_v8 = vmax.f32 %v2993_v5, 0.0  ;;  %v3080_v5 = vpop.f32.mrf.mxu2 }
 0x3e9   :  { %v1214_v11 = vrot.slane %v1213_v6, 2 }
 0x3ea   :  { %v1218_v15 = vsel %vm154_vm0, %v1195_v8, -inf }
 0x3eb   :  { %v1215_v17 = vmax.f32 %v1213_v6, %v1214_v11 }
 0x3ed   :  { %v1160_v7 = vpop.f32.mrf.mxu3  ;;  %v1216_v20 = vrot.slane %v1215_v17, 1 }
 0x3ee   :  { %v2997_v10 = vadd.f32 %v2976_v50, %v1160_v7 }
 0x3ef   :  { %v1217_v24 = vmax.f32 %v1215_v17, %v1216_v20 }
 0x3f0   :  { %v1196_v12 = vmax.f32 %v2997_v10, 0.0 }
 0x3f1   :  { %v1281_v31 = vpack.c.bf16 %v1217_v24, %v1217_v24 }
 0x3f2   :  { %v1219_v16 = vsel %vm154_vm0, %v1196_v12, -inf }
 0x3f3   :  { %v1220_v58 = vmax.f32 %v1218_v15, %v1219_v16  ;;  %v1307_v39 = vunpack.c.l.b16 %v1281_v31 }
 0x3f5   :  { %v1221_v18 = vrot.slane %v1220_v58, 4  ;;  %v1163_v19 = vpop.f32.mrf.mxu3 }
 0x3f6   :  { %v1164_v23 = vadd.f32 %v2976_v50, %v1163_v19 }
 0x3f7   :  { %v1222_v21 = vmax.f32 %v1220_v58, %v1221_v18 }
 0x3f8   :  { %v1197_v29 = vmax.f32 %v1164_v23, 0.0 }
 0x3f9   :  { %v1223_v22 = vrot.slane %v1222_v21, 2 }
 0x3fa   :  { %v1227_v35 = vsel %vm154_vm0, %v1197_v29, -inf }
 0x3fb   :  { %v1224_v25 = vmax.f32 %v1222_v21, %v1223_v22 }
 0x3fd   :  { %v1225_v26 = vrot.slane %v1224_v25, 1  ;;  %v1165_v27 = vpop.f32.mrf.mxu3 }
 0x3fe   :  { %v1166_v30 = vadd.f32 %v2976_v50, %v1165_v27 }
 0x3ff   :  { %v1226_v32 = vmax.f32 %v1224_v25, %v1225_v26 }
 0x400   :  { %v1198_v33 = vmax.f32 %v1166_v30, 0.0 }
 0x401   :  { %v1282_v34 = vpack.c.bf16 %v1226_v32, %v1226_v32 }
 0x402   :  { %v1228_v37 = vsel %vm154_vm0, %v1198_v33, -inf  ;;  %v3010_v38 = vpack.c.bf16 %v1198_v33, %v1197_v29 }
 0x403   :  { %v1308_v40 = vunpack.c.l.b16 %v1282_v34  ;;  %v1229_v41 = vmax.f32 %v1227_v35, %v1228_v37 }
 0x405   :  { %v1315_v42 = vsel %vm348_vm1, %v1308_v40, %v1307_v39  ;;  %v1230_v13 = vrot.slane %v1229_v41, 4  ;;  %v1168_v43 = vpop.f32.mrf.mxu3 }
 0x406   :  { %v1169_v46 = vadd.f32 %v2976_v50, %v1168_v43 }
 0x407   :  { %v1231_v45 = vmax.f32 %v1229_v41, %v1230_v13 }
 0x408   :  { %v1199_v49 = vmax.f32 %v1169_v46, 0.0 }
 0x409   :  { %v1232_v3 = vrot.slane %v1231_v45, 2 }
 0x40a   :  { %v1236_v51 = vsel %vm154_vm0, %v1199_v49, -inf }
 0x40b   :  { %v1233_v56 = vmax.f32 %v1231_v45, %v1232_v3 }
 0x40d   :  { %v1234_v1 = vrot.slane %v1233_v56, 1  ;;  %v1170_v47 = vpop.f32.mrf.mxu3 }
 0x40e   :  { %v1171_v9 = vadd.f32 %v2976_v50, %v1170_v47 }
 0x40f   :  { %v1235_v14 = vmax.f32 %v1233_v56, %v1234_v1 }
 0x410   :  { %v1200_v28 = vmax.f32 %v1171_v9, 0.0 }
 0x411   :  { %v1283_v36 = vpack.c.bf16 %v1235_v14, %v1235_v14 }
 0x412   :  { %v1237_v52 = vsel %vm154_vm0, %v1200_v28, -inf  ;;  %v3017_v54 = vpack.c.bf16 %v1200_v28, %v1199_v49 }
 0x413   :  { %v1309_v55 = vunpack.c.l.b16 %v1283_v36  ;;  %v1238_v57 = vmax.f32 %v1236_v51, %v1237_v52  ;;  %v2533_v36 = vld [vmem:[#allocation2 + $0x28] sm:$0xff] }
 0x414   :  { %1406 = vmatpush.bf16.msra.mxu1 %v2533_v36 }
 0x415   :  { %v1316_v59 = vsel %vm350_vm2, %v1309_v55, %v1315_v42  ;;  %v1239_v62 = vrot.slane %v1238_v57, 4  ;;  %v1173_v63 = vpop.f32.mrf.mxu3  ;;  %v2532_v55 = vld [vmem:[#allocation2 + $0x20] sm:$0xff] }
 0x416   :  { %v1174_v6 = vadd.f32 %v2976_v50, %v1173_v63 }
 0x417   :  { %v1240_v0 = vmax.f32 %v1238_v57, %v1239_v62 }
 0x418   :  { %v1201_v17 = vmax.f32 %v1174_v6, 0.0  ;;  %1407 = vmatpush.bf16.msra.mxu1 %v2532_v55 }
 0x419   :  { %v1241_v2 = vrot.slane %v1240_v0, 2 }
 0x41a   :  { %v1245_v34 = vsel %vm154_vm0, %v1201_v17, -inf }
 0x41b   :  { %v1242_v4 = vmax.f32 %v1240_v0, %v1241_v2 }
 0x41d   :  { %v1243_v7 = vrot.slane %v1242_v4, 1  ;;  %v1175_v11 = vpop.f32.mrf.mxu3 }
 0x41e   :  { %v1176_v15 = vadd.f32 %v2976_v50, %v1175_v11 }
 0x41f   :  { %v1244_v16 = vmax.f32 %v1242_v4, %v1243_v7 }
 0x420   :  { %v1202_v58 = vmax.f32 %v1176_v15, 0.0 }
 0x421   :  { %v1284_v18 = vpack.c.bf16 %v1244_v16, %v1244_v16 }
 0x422   :  { %v3022_v19 = vpack.c.bf16 %v1202_v58, %v1201_v17  ;;  %v1246_v32 = vsel %vm154_vm0, %v1202_v58, -inf }
 0x423   :  { %v1310_v20 = vunpack.c.l.b16 %v1284_v18  ;;  %v1247_v37 = vmax.f32 %v1245_v34, %v1246_v32 }
 0x425   :  { %v1178_v21 = vpop.f32.mrf.mxu3  ;;  %v3025_v22 = vsel %vm352_vm3, %v1310_v20, %v1316_v59  ;;  %v1248_v43 = vrot.slane %v1247_v37, 4 }
 0x426   :  { %v1179_v23 = vadd.f32 %v2976_v50, %v1178_v21 }
 0x427   :  { %v1249_v9 = vmax.f32 %v1247_v37, %v1248_v43 }
 0x428   :  { %v1203_v26 = vmax.f32 %v1179_v23, 0.0 }
 0x429   :  { %v1250_v51 = vrot.slane %v1249_v9, 2 }
 0x42a   :  { %v1254_v39 = vsel %vm154_vm0, %v1203_v26, -inf }
 0x42b   :  { %v1251_v62 = vmax.f32 %v1249_v9, %v1250_v51 }
 0x42d   :  { %v1180_v24 = vpop.f32.mrf.mxu3  ;;  %v1252_v7 = vrot.slane %v1251_v62, 1 }
 0x42e   :  { %v1181_v25 = vadd.f32 %v2976_v50, %v1180_v24 }
 0x42f   :  { %v1253_v21 = vmax.f32 %v1251_v62, %v1252_v7 }
 0x430   :  { %v1204_v27 = vmax.f32 %v1181_v25, 0.0 }
 0x432   :  { %v3029_v29 = vpack.c.bf16 %v1204_v27, %v1203_v26  ;;  %v1255_v33 = vsel %vm154_vm0, %v1204_v27, -inf  ;;  %v1285_v27 = vpack.c.bf16 %v1253_v21, %v1253_v21 }
 0x433   :  { %v1256_v42 = vmax.f32 %v1254_v39, %v1255_v33 }
 0x434   :  { %v1311_v34 = vunpack.c.l.b16 %v1285_v27 }
 0x435   :  { %v1183_v30 = vpop.f32.mrf.mxu3  ;;  %v1257_v56 = vrot.slane %v1256_v42, 4 }
 0x436   :  { %v1184_v31 = vadd.f32 %v2976_v50, %v1183_v30 }
 0x437   :  { %v1258_v14 = vmax.f32 %v1256_v42, %v1257_v56  ;;  %v1351_v56 = vpack.c.bf16 %v1194_v61, %v1193_v53  ;;  %v3077_v53 = vpop.f32.mrf.mxu0 }
 0x438   :  { %v1205_v40 = vmax.f32 %v1184_v31, 0.0 }
 0x439   :  { %v1259_v57 = vrot.slane %v1258_v14, 2 }
 0x43a   :  { %v1263_v45 = vsel %vm154_vm0, %v1205_v40, -inf }
 0x43b   :  { %v1260_v2 = vmax.f32 %v1258_v14, %v1259_v57 }
 0x43d   :  { %v1185_v35 = vpop.f32.mrf.mxu3  ;;  %v1261_v17 = vrot.slane %v1260_v2, 1 }
 0x43e   :  { %v1186_v41 = vadd.f32 %v2976_v50, %v1185_v35 }
 0x43f   :  { %v1262_v23 = vmax.f32 %v1260_v2, %v1261_v17 }
 0x440   :  { %v1206_v13 = vmax.f32 %v1186_v41, 0.0  ;;  %v1318_v41 = vsel %vm354_vm4, %v1311_v34, %v3025_v22  ;;  %v1352_v22 = vpack.c.bf16 %v1196_v12, %v1195_v8  ;;  %v3082_v8 = vpop.f32.mrf.mxu0  ;;  %v2555_v12 = vld [vmem:[%s3350_s5 + $0x2] ss:$0 sm:$0xff] }
 0x441   :  { %v1286_v30 = vpack.c.bf16 %v1262_v23, %v1262_v23 }
 0x442   :  { %v1264_v3 = vsel %vm154_vm0, %v1206_v13, -inf  ;;  %v3039_v46 = vpack.c.bf16 %v1206_v13, %v1205_v40 }
 0x443   :  { %v1265_v1 = vmax.f32 %v1263_v45, %v1264_v3  ;;  %v1312_v35 = vunpack.c.l.b16 %v1286_v30 }
 0x445   :  { %v1266_v47 = vrot.slane %v1265_v1, 4  ;;  %v1188_v49 = vpop.f32.mrf.mxu3  ;;  %v1319_v13 = vsel %vm356_vm5, %v1312_v35, %v1318_v41 }
 0x446   :  { %v1189_v52 = vadd.f32 %v2976_v50, %v1188_v49 }
 0x447   :  { %v1267_v28 = vmax.f32 %v1265_v1, %v1266_v47  ;;  %v2536_v1 = vld [vmem:[%s3346_s1 + $0x30] sm:$0xff] }
 0x448   :  { %v1207_v63 = vmax.f32 %v1189_v52, 0.0 }
 0x449   :  { %v1268_v44 = vrot.slane %v1267_v28, 2 }
 0x44a   :  { %v1272_v11 = vsel %vm154_vm0, %v1207_v63, -inf }
 0x44b   :  { %v1269_v4 = vmax.f32 %v1267_v28, %v1268_v44 }
 0x44d   :  { %v1190_v59 = vpop.f32.mrf.mxu3  ;;  %v1270_v18 = vrot.slane %v1269_v4, 1 }
 0x44e   :  { %v1191_v0 = vadd.f32 %v2976_v50, %v1190_v59  ;;  %v2537_v50 = vld [vmem:[%s3346_s1 + $0x38] sm:$0xff] }
 0x44f   :  { %v1271_v25 = vmax.f32 %v1269_v4, %v1270_v18  ;;  %1647 = vmatpush.bf16.msrb.mxu2 %v2537_v50 }
 0x450   :  { %v1208_v6 = vmax.f32 %v1191_v0, 0.0 }
 0x451   :  { %v1287_v32 = vpack.c.bf16 %v1271_v25, %v1271_v25 }
 0x452   :  { %v1273_v15 = vsel %vm154_vm0, %v1208_v6, -inf  ;;  %v1358_v16 = vpack.c.bf16 %v1208_v6, %v1207_v63 }
 0x453   :  { %v1274_v58 = vmax.f32 %v1272_v11, %v1273_v15  ;;  %v1313_v39 = vunpack.c.l.b16 %v1287_v32  ;;  %1648 = vmatpush.bf16.msrb.mxu2 %v2536_v1 }
 0x455   :  { %v1275_v20 = vrot.slane %v1274_v58, 4  ;;  %v1320_v43 = vsel %vm358_vm6, %v1313_v39, %v1319_v13 }
 0x457   :  { %v1276_v24 = vmax.f32 %v1274_v58, %v1275_v20 }
 0x459   :  { %v1277_v26 = vrot.slane %v1276_v24, 2 }
 0x45b   :  { %v1278_v31 = vmax.f32 %v1276_v24, %v1277_v26 }
 0x45d   :  { %v1279_v33 = vrot.slane %v1278_v31, 1 }
 0x45f   :  { %v1280_v37 = vmax.f32 %v1278_v31, %v1279_v33 }
 0x461   :  { %v1288_v40 = vpack.c.bf16 %v1280_v37, %v1280_v37 }
 0x463   :  { %v1314_v42 = vunpack.c.l.b16 %v1288_v40 }
 0x465   :  { %v1321_v45 = vsel %vm360_vm7, %v1314_v42, %v1320_v43 }
 0x466   :  { %v1322_v3 = vpack.c.b16 %v1321_v45, %v1321_v45 }
 0x468   :  { %2408 = vmatmul.msk.bf16.vlgmr.msrb.gmra.mxu1 %vm154_vm0, %v1322_v3 }
 0x478   :  { %2417 = vmatmul.msk.bf16.vlgmr.msra.gmra.mxu1 %vm154_vm0, %v1351_v56 }
 0x488   :  { %2418 = vmatmul.msk.bf16.gmra.mxu1 %vm154_vm0, %v1352_v22 }
 0x498   :  { %2419 = vmatmul.msk.bf16.gmra.mxu1 %vm154_vm0, %v3010_v38  ;;  %v3087_v38 = vpop.f32.mrf.mxu2 }
 0x4a0   :  { %v3094_v49 = vpop.f32.mrf.mxu2 }
 0x4a8   :  { %2420 = vmatmul.msk.bf16.gmra.mxu1 %vm154_vm0, %v3017_v54  ;;  %v3101_v44 = vpop.f32.mrf.mxu2 }
 0x4b0   :  { %v3105_v7 = vpop.f32.mrf.mxu2 }
 0x4b8   :  { %2421 = vmatmul.msk.bf16.gmra.mxu1 %vm154_vm0, %v3022_v19  ;;  %v3112_v18 = vpop.f32.mrf.mxu2 }
 0x4c0   :  { %v3118_v27 = vpop.f32.mrf.mxu2 }
 0x4c8   :  { %2422 = vmatmul.msk.bf16.gmra.mxu1 %vm154_vm0, %v3029_v29  ;;  %v3091_v29 = vpop.f32.mrf.mxu0  ;;  %v3123_v39 = vpop.f32.mrf.mxu2 }
 0x4d0   :  { %v3096_v51 = vpop.f32.mrf.mxu0  ;;  %v3130_v3 = vpop.f32.mrf.mxu2 }
 0x4d8   :  { %2423 = vmatmul.msk.bf16.gmra.mxu1 %vm154_vm0, %v3039_v46  ;;  %v3103_v62 = vpop.f32.mrf.mxu0 }
 0x4e0   :  { %v3109_v15 = vpop.f32.mrf.mxu0 }
 0x4e5   :  { %v1347_v61 = vpop.f32.mrf.mxu1 }
 0x4e6   :  { %v3089_v19 = vadd.f32 %v2555_v12, %v1347_v61 }
 0x4e8   :  { %2424 = vmatmul.msk.bf16.gmra.mxu1 %vm154_vm0, %v1358_v16  ;;  %v1457_v46 = vperm.slane %v3089_v19, 0  ;;  %v1450_v57 = vrot.slane %v3089_v19, 1  ;;  %v1451_v17 = vrot.slane %v3089_v19, 2  ;;  %v3114_v24 = vpop.f32.mrf.mxu0  ;;  %v1452_v31 = vrot.slane %v3089_v19, 3 }
 0x4e9   :  { %v1453_v45 = vrot.slane %v3089_v19, 4 }
 0x4ea   :  { %v1458_v59 = vperm.slane %v1450_v57, 0  ;;  %v1459_v58 = vperm.slane %v1451_v17, 0  ;;  %v1460_v33 = vperm.slane %v1452_v31, 0  ;;  %v1456_v31 = vrot.slane %v3089_v19, 7 }
 0x4eb   :  { %v1461_v56 = vperm.slane %v1453_v45, 0 }
 0x4ed   :  { %v1349_v10 = vpop.f32.mrf.mxu1 }
 0x4f0   :  { %v3121_v32 = vpop.f32.mrf.mxu0 }
 0x4f5   :  { %v1409_v54 = vpop.f32.mrf.mxu1 }
 0x4f6   :  { %v1473_v47 = vadd.f32 %v1457_v46, %v1409_v54  ;;  %v3134_v54 = vpop.f32.mrf.mxu2 }
 0x4f8   :  { %v1489_v28 = vmax.f32 %v1473_v47, 0.0  ;;  %v3125_v13 = vpop.f32.mrf.mxu0  ;;  %v1454_v47 = vrot.slane %v3089_v19, 5 }
 0x4fd   :  { %v1411_v9 = vpop.f32.mrf.mxu1 }
 0x4fe   :  { %v1474_v14 = vadd.f32 %v1457_v46, %v1411_v9 }
 0x500   :  { %v1490_v36 = vmax.f32 %v1474_v14, 0.0  ;;  %v3132_v1 = vpop.f32.mrf.mxu0  ;;  %v1462_v14 = vperm.slane %v1454_v47, 0 }
 0x502   :  { %v1505_v52 = vpack.c.bf16 %v1490_v36, %v1489_v28  ;;  %v3141_v36 = vpop.f32.mrf.mxu2 }
 0x504   :  { %2433 = vmatmul.msk.bf16.vlgmr.msrb.gmra.mxu0 %vm154_vm0, %v1505_v52  ;;  %2454 = vmatmul.msk.bf16.vlgmr.msrb.gmra.mxu2 %vm154_vm0, %v1505_v52 }
 0x505   :  { %v1414_v55 = vpop.f32.mrf.mxu1 }
 0x506   :  { %v1475_v63 = vadd.f32 %v1458_v59, %v1414_v55 }
 0x508   :  { %v1491_v4 = vmax.f32 %v1475_v63, 0.0  ;;  %v3139_v9 = vpop.f32.mrf.mxu0 }
 0x50d   :  { %v1416_v0 = vpop.f32.mrf.mxu1 }
 0x50e   :  { %v1476_v2 = vadd.f32 %v1458_v59, %v1416_v0 }
 0x510   :  { %v1492_v6 = vmax.f32 %v1476_v2, 0.0  ;;  %v3143_v63 = vpop.f32.mrf.mxu0 }
 0x512   :  { %v1506_v11 = vpack.c.bf16 %v1492_v6, %v1491_v4  ;;  %v1455_v4 = vrot.slane %v3089_v19, 6  ;;  %v3148_v6 = vpop.f32.mrf.mxu2 }
 0x514   :  { %2434 = vmatmul.msk.bf16.gmra.mxu0 %vm154_vm0, %v1506_v11  ;;  %2455 = vmatmul.msk.bf16.gmra.mxu2 %vm154_vm0, %v1506_v11  ;;  %v1463_v11 = vperm.slane %v1455_v4, 0 }
 0x515   :  { %v1419_v16 = vpop.f32.mrf.mxu1 }
 0x516   :  { %v1477_v20 = vadd.f32 %v1459_v58, %v1419_v16 }
 0x518   :  { %v1493_v25 = vmax.f32 %v1477_v20, 0.0  ;;  %v3150_v16 = vpop.f32.mrf.mxu0 }
 0x51d   :  { %v1421_v21 = vpop.f32.mrf.mxu1 }
 0x51e   :  { %v1478_v23 = vadd.f32 %v1459_v58, %v1421_v21 }
 0x520   :  { %v1494_v50 = vmax.f32 %v1478_v23, 0.0 }
 0x522   :  { %v1507_v26 = vpack.c.bf16 %v1494_v50, %v1493_v25  ;;  %v3152_v25 = vpop.f32.mrf.mxu2 }
 0x524   :  { %2435 = vmatmul.msk.bf16.gmra.mxu0 %vm154_vm0, %v1507_v26  ;;  %2456 = vmatmul.msk.bf16.gmra.mxu2 %vm154_vm0, %v1507_v26  ;;  %v3156_v26 = vpop.f32.mrf.mxu0 }
 0x525   :  { %v1424_v30 = vpop.f32.mrf.mxu1 }
 0x526   :  { %v1479_v34 = vadd.f32 %v1460_v33, %v1424_v30 }
 0x528   :  { %v1495_v40 = vmax.f32 %v1479_v34, 0.0 }
 0x52a   :  { %v3159_v34 = vpop.f32.mrf.mxu2 }
 0x52d   :  { %v1426_v35 = vpop.f32.mrf.mxu1 }
 0x52e   :  { %v1480_v37 = vadd.f32 %v1460_v33, %v1426_v35  ;;  %v1464_v33 = vperm.slane %v1456_v31, 0 }
 0x530   :  { %v1496_v41 = vmax.f32 %v1480_v37, 0.0 }
 0x532   :  { %v1508_v42 = vpack.c.bf16 %v1496_v41, %v1495_v40  ;;  %v3161_v41 = vpop.f32.mrf.mxu0 }
 0x534   :  { %2436 = vmatmul.msk.bf16.gmra.mxu0 %vm154_vm0, %v1508_v42  ;;  %2457 = vmatmul.msk.bf16.gmra.mxu2 %vm154_vm0, %v1508_v42 }
 0x535   :  { %v1429_v43 = vpop.f32.mrf.mxu1 }
 0x536   :  { %v1481_v22 = vadd.f32 %v1461_v56, %v1429_v43 }
 0x538   :  { %v1497_v61 = vmax.f32 %v1481_v22, 0.0 }
 0x53a   :  { %v3167_v22 = vpop.f32.mrf.mxu0 }
 0x53b   :  { %3355 = vst [vmem:[#allocation13_spill] sm:$0xff] %v3167_v22 }
 0x53d   :  { %v1431_v48 = vpop.f32.mrf.mxu1 }
 0x53e   :  { %v1482_v60 = vadd.f32 %v1461_v56, %v1431_v48  ;;  %v3165_v56 = vpop.f32.mrf.mxu2  ;;  %v1083_v48 = vadd.f32 %v3080_v5, %v3077_v53 }
 0x53f   :  { %3354 = vst [vmem:[#allocation12_spill] sm:$0xff] %v3165_v56 }
 0x540   :  { %v1498_v10 = vmax.f32 %v1482_v60, 0.0 }
 0x542   :  { %v1509_v12 = vpack.c.bf16 %v1498_v10, %v1497_v61  ;;  %v2539_v10 = vld [vmem:[#allocation5 + $0x38] sm:$0xff] }
 0x543   :  { %1841 = vmatpush.bf16.msra.mxu3 %v2539_v10 }
 0x544   :  { %2437 = vmatmul.msk.bf16.gmra.mxu0 %vm154_vm0, %v1509_v12  ;;  %2458 = vmatmul.msk.bf16.gmra.mxu2 %vm154_vm0, %v1509_v12 }
 0x545   :  { %v1434_v46 = vpop.f32.mrf.mxu1 }
 0x546   :  { %v1483_v28 = vadd.f32 %v1462_v14, %v1434_v46  ;;  %v3169_v19 = vpop.f32.mrf.mxu2  ;;  %v3178_v46 = vld [vmem:[%s3347_s2 + $0x3] ss:$0 sm:$0xff] }
 0x547   :  { %3356 = vst [vmem:[#allocation14_spill] sm:$0xff] %v3169_v19 }
 0x548   :  { %v1499_v57 = vmax.f32 %v1483_v28, 0.0 }
 0x54d   :  { %v1436_v52 = vpop.f32.mrf.mxu1 }
 0x54e   :  { %v1484_v55 = vadd.f32 %v1462_v14, %v1436_v52  ;;  %v1088_v52 = vadd.f32 %v3094_v49, %v3091_v29 }
 0x550   :  { %v1500_v59 = vmax.f32 %v1484_v55, 0.0 }
 0x552   :  { %v1510_v0 = vpack.c.bf16 %v1500_v59, %v1499_v57 }
 0x554   :  { %2438 = vmatmul.msk.bf16.gmra.mxu0 %vm154_vm0, %v1510_v0  ;;  %2459 = vmatmul.msk.bf16.gmra.mxu2 %vm154_vm0, %v1510_v0 }
 0x555   :  { %v1439_v2 = vpop.f32.mrf.mxu1 }
 0x556   :  { %v1485_v17 = vadd.f32 %v1463_v11, %v1439_v2 }
 0x558   :  { %v1501_v21 = vmax.f32 %v1485_v17, 0.0 }
 0x55d   :  { %v1441_v58 = vpop.f32.mrf.mxu1 }
 0x55e   :  { %v1486_v20 = vadd.f32 %v1463_v11, %v1441_v58 }
 0x560   :  { %v1502_v23 = vmax.f32 %v1486_v20, 0.0 }
 0x562   :  { %v1511_v50 = vpack.c.bf16 %v1502_v23, %v1501_v21  ;;  %v1093_v23 = vadd.f32 %v3105_v7, %v3103_v62 }
 0x564   :  { %2439 = vmatmul.msk.bf16.gmra.mxu0 %vm154_vm0, %v1511_v50  ;;  %2460 = vmatmul.msk.bf16.gmra.mxu2 %vm154_vm0, %v1511_v50 }
 0x565   :  { %v1444_v30 = vpop.f32.mrf.mxu1 }
 0x566   :  { %v1487_v35 = vadd.f32 %v1464_v33, %v1444_v30 }
 0x568   :  { %v1503_v42 = vmax.f32 %v1487_v35, 0.0 }
 0x56d   :  { %v1446_v37 = vpop.f32.mrf.mxu1 }
 0x56e   :  { %v1488_v40 = vadd.f32 %v1464_v33, %v1446_v37 }
 0x570   :  { %v1504_v43 = vmax.f32 %v1488_v40, 0.0 }
 0x572   :  { %v1512_v45 = vpack.c.bf16 %v1504_v43, %v1503_v42 }
 0x574   :  { %2440 = vmatmul.msk.bf16.gmra.mxu0 %vm154_vm0, %v1512_v45  ;;  %2461 = vmatmul.msk.bf16.gmra.mxu2 %vm154_vm0, %v1512_v45 }
 0x581   :  { %v1563_v60 = vpop.f32.mrf.mxu0 }
 0x582   :  { %v3173_v61 = vadd.f32 %v1563_v60, %v1083_v48 }
 0x587   :  { %v1650_v12 = vpop.f32.mrf.mxu2 }
 0x588   :  { %v1651_v14 = vadd.f32 %v3178_v46, %v1650_v12 }
 0x589   :  { %v3180_v47 = vpop.f32.mrf.mxu0 }
 0x58a   :  { %v1690_v53 = vmax.f32 %v1651_v14, 0.0 }
 0x58c   :  { %v1706_v0 = vsel %vm154_vm0, %v1690_v53, -inf }
 0x58f   :  { %v1652_v28 = vpop.f32.mrf.mxu2 }
 0x590   :  { %v1653_v5 = vadd.f32 %v3178_v46, %v1652_v28 }
 0x591   :  { %v1568_v55 = vpop.f32.mrf.mxu0 }
 0x592   :  { %v1691_v57 = vmax.f32 %v1653_v5, 0.0  ;;  %v3186_v59 = vadd.f32 %v1568_v55, %v1088_v52 }
 0x594   :  { %v1707_v2 = vsel %vm154_vm0, %v1691_v57, -inf  ;;  %v3190_v4 = vpack.c.bf16 %v1691_v57, %v1690_v53  ;;  %v1098_v57 = vadd.f32 %v3118_v27, %v3114_v24 }
 0x595   :  { %v1708_v11 = vmax.f32 %v1706_v0, %v1707_v2 }
 0x597   :  { %v1655_v17 = vpop.f32.mrf.mxu2  ;;  %v1709_v58 = vrot.slane %v1708_v11, 4 }
 0x598   :  { %v1656_v29 = vadd.f32 %v3178_v46, %v1655_v17 }
 0x599   :  { %v3192_v20 = vpop.f32.mrf.mxu0  ;;  %v1710_v49 = vmax.f32 %v1708_v11, %v1709_v58 }
 0x59a   :  { %v1692_v50 = vmax.f32 %v1656_v29, 0.0 }
 0x59b   :  { %v1711_v31 = vrot.slane %v1710_v49, 2 }
 0x59c   :  { %v1715_v40 = vsel %vm154_vm0, %v1692_v50, -inf }
 0x59d   :  { %v1712_v45 = vmax.f32 %v1710_v49, %v1711_v31 }
 0x59f   :  { %v1657_v21 = vpop.f32.mrf.mxu2  ;;  %v1713_v12 = vrot.slane %v1712_v45, 1 }
 0x5a0   :  { %v1658_v30 = vadd.f32 %v3178_v46, %v1657_v21 }
 0x5a1   :  { %v1573_v33 = vpop.f32.mrf.mxu0  ;;  %v1714_v52 = vmax.f32 %v1712_v45, %v1713_v12 }
 0x5a2   :  { %v1693_v35 = vmax.f32 %v1658_v30, 0.0  ;;  %v3198_v37 = vadd.f32 %v1573_v33, %v1093_v23 }
 0x5a3   :  { %v1778_v11 = vpack.c.bf16 %v1714_v52, %v1714_v52 }
 0x5a4   :  { %v1716_v42 = vsel %vm154_vm0, %v1693_v35, -inf  ;;  %v3202_v43 = vpack.c.bf16 %v1693_v35, %v1692_v50 }
 0x5a5   :  { %v1717_v48 = vmax.f32 %v1715_v40, %v1716_v42  ;;  %v1804_v31 = vunpack.c.l.b16 %v1778_v11 }
 0x5a7   :  { %v1718_v60 = vrot.slane %v1717_v48, 4  ;;  %v1660_v10 = vpop.f32.mrf.mxu2 }
 0x5a8   :  { %v1661_v28 = vadd.f32 %v3178_v46, %v1660_v10 }
 0x5a9   :  { %v1719_v62 = vmax.f32 %v1717_v48, %v1718_v60  ;;  %v3204_v7 = vpop.f32.mrf.mxu0 }
 0x5aa   :  { %v1694_v0 = vmax.f32 %v1661_v28, 0.0 }
 0x5ab   :  { %v1720_v14 = vrot.slane %v1719_v62, 2 }
 0x5ac   :  { %v1724_v23 = vsel %vm154_vm0, %v1694_v0, -inf }
 0x5ad   :  { %v1721_v53 = vmax.f32 %v1719_v62, %v1720_v14 }
 0x5af   :  { %v1722_v5 = vrot.slane %v1721_v53, 1  ;;  %v1662_v55 = vpop.f32.mrf.mxu2 }
 0x5b0   :  { %v1663_v2 = vadd.f32 %v3178_v46, %v1662_v55 }
 0x5b1   :  { %v1723_v17 = vmax.f32 %v1721_v53, %v1722_v5  ;;  %v1578_v58 = vpop.f32.mrf.mxu0 }
 0x5b2   :  { %v1695_v29 = vmax.f32 %v1663_v2, 0.0  ;;  %v3210_v49 = vadd.f32 %v1578_v58, %v1098_v57 }
 0x5b3   :  { %v1779_v21 = vpack.c.bf16 %v1723_v17, %v1723_v17 }
 0x5b4   :  { %v1725_v50 = vsel %vm154_vm0, %v1695_v29, -inf  ;;  %v3214_v30 = vpack.c.bf16 %v1695_v29, %v1694_v0  ;;  %v2538_v29 = vld [vmem:[#allocation5 + $0x30] sm:$0xff] }
 0x5b5   :  { %v1805_v33 = vunpack.c.l.b16 %v1779_v21  ;;  %v1726_v35 = vmax.f32 %v1724_v23, %v1725_v50  ;;  %1842 = vmatpush.bf16.msra.mxu3 %v2538_v29 }
 0x5b7   :  { %v1812_v24 = vsel %vm348_vm1, %v1805_v33, %v1804_v31  ;;  %v1727_v27 = vrot.slane %v1726_v35, 4  ;;  %v1665_v40 = vpop.f32.mrf.mxu2 }
 0x5b8   :  { %v1666_v48 = vadd.f32 %v3178_v46, %v1665_v40 }
 0x5b9   :  { %v1728_v42 = vmax.f32 %v1726_v35, %v1727_v27 }
 0x5ba   :  { %v1696_v62 = vmax.f32 %v1666_v48, 0.0 }
 0x5bb   :  { %v1729_v45 = vrot.slane %v1728_v42, 2 }
 0x5bc   :  { %v1733_v5 = vsel %vm154_vm0, %v1696_v62, -inf }
 0x5bd   :  { %v1730_v60 = vmax.f32 %v1728_v42, %v1729_v45 }
 0x5bf   :  { %v1731_v10 = vrot.slane %v1730_v60, 1  ;;  %v1667_v12 = vpop.f32.mrf.mxu2 }
 0x5c0   :  { %v1668_v14 = vadd.f32 %v3178_v46, %v1667_v12 }
 0x5c1   :  { %v1732_v28 = vmax.f32 %v1730_v60, %v1731_v10 }
 0x5c2   :  { %v1697_v52 = vmax.f32 %v1668_v14, 0.0 }
 0x5c3   :  { %v1780_v53 = vpack.c.bf16 %v1732_v28, %v1732_v28 }
 0x5c4   :  { %v1734_v55 = vsel %vm154_vm0, %v1697_v52, -inf  ;;  %v3221_v57 = vpack.c.bf16 %v1697_v52, %v1696_v62 }
 0x5c5   :  { %v1806_v0 = vunpack.c.l.b16 %v1780_v53  ;;  %v1735_v2 = vmax.f32 %v1733_v5, %v1734_v55 }
 0x5c7   :  { %v1813_v11 = vsel %vm350_vm2, %v1806_v0, %v1812_v24  ;;  %v1736_v17 = vrot.slane %v1735_v2, 4  ;;  %v1670_v58 = vpop.f32.mrf.mxu2 }
 0x5c8   :  { %v1671_v31 = vadd.f32 %v3178_v46, %v1670_v58 }
 0x5c9   :  { %v1737_v21 = vmax.f32 %v1735_v2, %v1736_v17 }
 0x5ca   :  { %v1698_v42 = vmax.f32 %v1671_v31, 0.0 }
 0x5cb   :  { %v1738_v23 = vrot.slane %v1737_v21, 2 }
 0x5cd   :  { %v1739_v50 = vmax.f32 %v1737_v21, %v1738_v23 }
 0x5cf   :  { %v1740_v33 = vrot.slane %v1739_v50, 1  ;;  %v1672_v35 = vpop.f32.mrf.mxu2 }
 0x5d0   :  { %v1673_v27 = vadd.f32 %v3178_v46, %v1672_v35 }
 0x5d1   :  { %v1741_v40 = vmax.f32 %v1739_v50, %v1740_v33 }
 0x5d2   :  { %v1699_v45 = vmax.f32 %v1673_v27, 0.0 }
 0x5d3   :  { %v1781_v48 = vpack.c.bf16 %v1741_v40, %v1741_v40 }
 0x5d4   :  { %v3226_v60 = vpack.c.bf16 %v1699_v45, %v1698_v42  ;;  %v1743_v2 = vsel %vm154_vm0, %v1699_v45, -inf }
 0x5d5   :  { %v1807_v24 = vunpack.c.l.b16 %v1781_v48 }
 0x5d7   :  { %v3229_v10 = vsel %vm352_vm3, %v1807_v24, %v1813_v11  ;;  %v1675_v12 = vpop.f32.mrf.mxu2  ;;  %v1742_v11 = vsel %vm154_vm0, %v1698_v42, -inf }
 0x5d8   :  { %v1676_v62 = vadd.f32 %v3178_v46, %v1675_v12  ;;  %v1744_v29 = vmax.f32 %v1742_v11, %v1743_v2 }
 0x5da   :  { %v1700_v52 = vmax.f32 %v1676_v62, 0.0  ;;  %v1745_v35 = vrot.slane %v1744_v29, 4 }
 0x5dc   :  { %v1751_v21 = vsel %vm154_vm0, %v1700_v52, -inf  ;;  %v1746_v62 = vmax.f32 %v1744_v29, %v1745_v35 }
 0x5df   :  { %v1677_v14 = vpop.f32.mrf.mxu2 }
 0x5e0   :  { %v1678_v28 = vadd.f32 %v3178_v46, %v1677_v14 }
 0x5e2   :  { %v1701_v53 = vmax.f32 %v1678_v28, 0.0 }
 0x5e4   :  { %v3233_v5 = vpack.c.bf16 %v1701_v53, %v1700_v52  ;;  %v1752_v17 = vsel %vm154_vm0, %v1701_v53, -inf  ;;  %v2541_v52 = vld [vmem:[#allocation2 + $0x38] sm:$0xff]  ;;  %v1747_v53 = vrot.slane %v1746_v62, 2 }
 0x5e5   :  { %v1753_v31 = vmax.f32 %v1751_v21, %v1752_v17  ;;  %1903 = vmatpush.bf16.msrb.mxu3 %v2541_v52 }
 0x5e7   :  { %v1680_v55 = vpop.f32.mrf.mxu2  ;;  %v1754_v45 = vrot.slane %v1753_v31, 4 }
 0x5e8   :  { %v1681_v0 = vadd.f32 %v3178_v46, %v1680_v55 }
 0x5e9   :  { %v1755_v14 = vmax.f32 %v1753_v31, %v1754_v45 }
 0x5ea   :  { %v1702_v23 = vmax.f32 %v1681_v0, 0.0  ;;  %v2540_v0 = vld [vmem:[#allocation2 + $0x30] sm:$0xff] }
 0x5eb   :  { %v1756_v2 = vrot.slane %v1755_v14, 2  ;;  %1904 = vmatpush.bf16.msrb.mxu3 %v2540_v0 }
 0x5ec   :  { %v1760_v27 = vsel %vm154_vm0, %v1702_v23, -inf }
 0x5ef   :  { %v1682_v58 = vpop.f32.mrf.mxu2 }
 0x5f0   :  { %v1683_v50 = vadd.f32 %v3178_v46, %v1682_v58  ;;  %v1748_v58 = vmax.f32 %v1746_v62, %v1747_v53 }
 0x5f2   :  { %v1703_v33 = vmax.f32 %v1683_v50, 0.0  ;;  %v1757_v50 = vmax.f32 %v1755_v14, %v1756_v2  ;;  %v1749_v29 = vrot.slane %v1748_v58, 1 }
 0x5f4   :  { %v1761_v40 = vsel %vm154_vm0, %v1703_v33, -inf  ;;  %v3243_v48 = vpack.c.bf16 %v1703_v33, %v1702_v23  ;;  %v1758_v45 = vrot.slane %v1757_v50, 1  ;;  %v1750_v52 = vmax.f32 %v1748_v58, %v1749_v29 }
 0x5f5   :  { %v1762_v24 = vmax.f32 %v1760_v27, %v1761_v40 }
 0x5f6   :  { %v1759_v19 = vmax.f32 %v1757_v50, %v1758_v45 }
 0x5f7   :  { %v1763_v12 = vrot.slane %v1762_v24, 4  ;;  %v1685_v42 = vpop.f32.mrf.mxu2 }
 0x5f8   :  { %v1686_v55 = vadd.f32 %v3178_v46, %v1685_v42  ;;  %v1783_v0 = vpack.c.bf16 %v1759_v19, %v1759_v19  ;;  %v2543_v19 = vld [vmem:[#allocation7 + $0x38] sm:$0xff] }
 0x5f9   :  { %v1764_v28 = vmax.f32 %v1762_v24, %v1763_v12  ;;  %2057 = vmatpush.bf16.msrb.mxu1 %v2543_v19 }
 0x5fa   :  { %v1704_v21 = vmax.f32 %v1686_v55, 0.0 }
 0x5fb   :  { %v1765_v17 = vrot.slane %v1764_v28, 2 }
 0x5fc   :  { %v1769_v31 = vsel %vm154_vm0, %v1704_v21, -inf }
 0x5fd   :  { %v1766_v33 = vmax.f32 %v1764_v28, %v1765_v17 }
 0x5ff   :  { %v1687_v11 = vpop.f32.mrf.mxu2  ;;  %v1767_v12 = vrot.slane %v1766_v33, 1 }
 0x600   :  { %v1688_v23 = vadd.f32 %v3178_v46, %v1687_v11  ;;  %v1782_v46 = vpack.c.bf16 %v1750_v52, %v1750_v52  ;;  %v1809_v11 = vunpack.c.l.b16 %v1783_v0 }
 0x601   :  { %v1768_v53 = vmax.f32 %v1766_v33, %v1767_v12 }
 0x602   :  { %v1705_v27 = vmax.f32 %v1688_v23, 0.0  ;;  %v1808_v17 = vunpack.c.l.b16 %v1782_v46 }
 0x603   :  { %v1784_v28 = vpack.c.bf16 %v1768_v53, %v1768_v53 }
 0x604   :  { %v1770_v35 = vsel %vm154_vm0, %v1705_v27, -inf  ;;  %v1855_v40 = vpack.c.bf16 %v1705_v27, %v1704_v21  ;;  %v1815_v21 = vsel %vm354_vm4, %v1808_v17, %v3229_v10 }
 0x605   :  { %v1771_v24 = vmax.f32 %v1769_v31, %v1770_v35  ;;  %v1810_v22 = vunpack.c.l.b16 %v1784_v28  ;;  %v1816_v27 = vsel %vm356_vm5, %v1809_v11, %v1815_v21 }
 0x607   :  { %v1772_v42 = vrot.slane %v1771_v24, 4  ;;  %v1817_v50 = vsel %vm358_vm6, %v1810_v22, %v1816_v27 }
 0x609   :  { %v1773_v62 = vmax.f32 %v1771_v24, %v1772_v42 }
 0x60b   :  { %v1774_v55 = vrot.slane %v1773_v62, 2 }
 0x60d   :  { %v1775_v14 = vmax.f32 %v1773_v62, %v1774_v55 }
 0x60f   :  { %v1776_v2 = vrot.slane %v1775_v14, 1 }
 0x611   :  { %v1777_v23 = vmax.f32 %v1775_v14, %v1776_v2 }
 0x613   :  { %v1785_v56 = vpack.c.bf16 %v1777_v23, %v1777_v23 }
 0x615   :  { %v1811_v58 = vunpack.c.l.b16 %v1785_v56  ;;  %v2542_v56 = vld [vmem:[#allocation7 + $0x30] sm:$0xff] }
 0x616   :  { %2058 = vmatpush.bf16.msrb.mxu1 %v2542_v56 }
 0x617   :  { %v1818_v33 = vsel %vm360_vm7, %v1811_v58, %v1817_v50 }
 0x618   :  { %v1819_v29 = vpack.c.b16 %v1818_v33, %v1818_v33 }
 0x61a   :  { %2471 = vmatmul.msk.bf16.vlgmr.msra.gmra.mxu3 %vm154_vm0, %v1819_v29 }
 0x62a   :  { %2480 = vmatmul.msk.bf16.vlgmr.msrb.gmra.mxu3 %vm154_vm0, %v3190_v4 }
 0x63a   :  { %2481 = vmatmul.msk.bf16.gmra.mxu3 %vm154_vm0, %v3202_v43  ;;  %v2557_v43 = vld [vmem:[%s3350_s5 + $0x3] ss:$0 sm:$0xff] }
 0x64a   :  { %2482 = vmatmul.msk.bf16.gmra.mxu3 %vm154_vm0, %v3214_v30 }
 0x65a   :  { %2483 = vmatmul.msk.bf16.gmra.mxu3 %vm154_vm0, %v3221_v57 }
 0x66a   :  { %2484 = vmatmul.msk.bf16.gmra.mxu3 %vm154_vm0, %v3226_v60 }
 0x67a   :  { %2485 = vmatmul.msk.bf16.gmra.mxu3 %vm154_vm0, %v3233_v5 }
 0x68a   :  { %2486 = vmatmul.msk.bf16.gmra.mxu3 %vm154_vm0, %v3243_v48 }
 0x69a   :  { %2487 = vmatmul.msk.bf16.gmra.mxu3 %vm154_vm0, %v1855_v40 }
 0x69d   :  { %v1844_v22 = vpop.f32.mrf.mxu3 }
 0x69e   :  { %v3273_v57 = vadd.f32 %v2557_v43, %v1844_v22 }
 0x6a0   :  { %v1954_v10 = vperm.slane %v3273_v57, 0  ;;  %v1947_v40 = vrot.slane %v3273_v57, 1  ;;  %v1948_v14 = vrot.slane %v3273_v57, 2  ;;  %v1949_v50 = vrot.slane %v3273_v57, 3 }
 0x6a2   :  { %v1955_v12 = vperm.slane %v1947_v40, 0  ;;  %v1956_v28 = vperm.slane %v1948_v14, 0  ;;  %v1957_v33 = vperm.slane %v1949_v50, 0 }
 0x6a5   :  { %v1846_v4 = vpop.f32.mrf.mxu3 }
 0x6ad   :  { %v1906_v30 = vpop.f32.mrf.mxu3 }
 0x6ae   :  { %v1970_v60 = vadd.f32 %v1954_v10, %v1906_v30 }
 0x6b0   :  { %v1986_v5 = vmax.f32 %v1970_v60, 0.0 }
 0x6b5   :  { %v1908_v31 = vpop.f32.mrf.mxu3 }
 0x6b6   :  { %v1971_v35 = vadd.f32 %v1954_v10, %v1908_v31  ;;  %v1950_v10 = vrot.slane %v3273_v57, 4 }
 0x6b8   :  { %v1987_v45 = vmax.f32 %v1971_v35, 0.0  ;;  %v1958_v60 = vperm.slane %v1950_v10, 0 }
 0x6ba   :  { %v2002_v24 = vpack.c.bf16 %v1987_v45, %v1986_v5 }
 0x6bc   :  { %2496 = vmatmul.msk.bf16.vlgmr.msrb.gmra.mxu1 %vm154_vm0, %v2002_v24 }
 0x6bd   :  { %v1911_v48 = vpop.f32.mrf.mxu3 }
 0x6be   :  { %v1972_v42 = vadd.f32 %v1955_v12, %v1911_v48 }
 0x6c0   :  { %v1988_v53 = vmax.f32 %v1972_v42, 0.0 }
 0x6c5   :  { %v1913_v52 = vpop.f32.mrf.mxu3 }
 0x6c6   :  { %v1973_v62 = vadd.f32 %v1955_v12, %v1913_v52  ;;  %v1951_v12 = vrot.slane %v3273_v57, 5 }
 0x6c8   :  { %v1989_v55 = vmax.f32 %v1973_v62, 0.0  ;;  %v1959_v42 = vperm.slane %v1951_v12, 0  ;;  %v1090_v12 = vadd.f32 %v3101_v44, %v3096_v51  ;;  %v1095_v51 = vadd.f32 %v3112_v18, %v3109_v15 }
 0x6ca   :  { %v2003_v46 = vpack.c.bf16 %v1989_v55, %v1988_v53 }
 0x6cc   :  { %2497 = vmatmul.msk.bf16.gmra.mxu1 %vm154_vm0, %v2003_v46 }
 0x6cd   :  { %v1916_v0 = vpop.f32.mrf.mxu3 }
 0x6ce   :  { %v1974_v2 = vadd.f32 %v1956_v28, %v1916_v0 }
 0x6d0   :  { %v1990_v23 = vmax.f32 %v1974_v2, 0.0 }
 0x6d5   :  { %v1918_v17 = vpop.f32.mrf.mxu3 }
 0x6d6   :  { %v1975_v11 = vadd.f32 %v1956_v28, %v1918_v17  ;;  %v1952_v28 = vrot.slane %v3273_v57, 6 }
 0x6d8   :  { %v1991_v21 = vmax.f32 %v1975_v11, 0.0  ;;  %v1960_v2 = vperm.slane %v1952_v28, 0 }
 0x6da   :  { %v2004_v27 = vpack.c.bf16 %v1991_v21, %v1990_v23 }
 0x6dc   :  { %2498 = vmatmul.msk.bf16.gmra.mxu1 %vm154_vm0, %v2004_v27 }
 0x6dd   :  { %v1921_v58 = vpop.f32.mrf.mxu3 }
 0x6de   :  { %v1976_v29 = vadd.f32 %v1957_v33, %v1921_v58 }
 0x6e0   :  { %v1992_v22 = vmax.f32 %v1976_v29, 0.0 }
 0x6e5   :  { %v1923_v19 = vpop.f32.mrf.mxu3 }
 0x6e6   :  { %v1977_v56 = vadd.f32 %v1957_v33, %v1923_v19  ;;  %v1953_v33 = vrot.slane %v3273_v57, 7 }
 0x6e8   :  { %v1993_v4 = vmax.f32 %v1977_v56, 0.0  ;;  %v1961_v29 = vperm.slane %v1953_v33, 0 }
 0x6ea   :  { %v2005_v43 = vpack.c.bf16 %v1993_v4, %v1992_v22 }
 0x6ec   :  { %2499 = vmatmul.msk.bf16.gmra.mxu1 %vm154_vm0, %v2005_v43 }
 0x6ed   :  { %v1926_v30 = vpop.f32.mrf.mxu3 }
 0x6ee   :  { %v1978_v31 = vadd.f32 %v1958_v60, %v1926_v30 }
 0x6f0   :  { %v1994_v45 = vmax.f32 %v1978_v31, 0.0  ;;  %v1085_v31 = vadd.f32 %v3087_v38, %v3082_v8 }
 0x6f5   :  { %v1928_v35 = vpop.f32.mrf.mxu3 }
 0x6f6   :  { %v1979_v5 = vadd.f32 %v1958_v60, %v1928_v35  ;;  %v1604_v35 = vadd.f32 %v3180_v47, %v1085_v31 }
 0x6f8   :  { %v1995_v24 = vmax.f32 %v1979_v5, 0.0 }
 0x6fa   :  { %v2006_v48 = vpack.c.bf16 %v1995_v24, %v1994_v45 }
 0x6fc   :  { %2500 = vmatmul.msk.bf16.gmra.mxu1 %vm154_vm0, %v2006_v48 }
 0x6fd   :  { %v1931_v40 = vpop.f32.mrf.mxu3 }
 0x6fe   :  { %v1980_v52 = vadd.f32 %v1959_v42, %v1931_v40 }
 0x700   :  { %v1996_v55 = vmax.f32 %v1980_v52, 0.0 }
 0x705   :  { %v1933_v62 = vpop.f32.mrf.mxu3 }
 0x706   :  { %v1981_v53 = vadd.f32 %v1959_v42, %v1933_v62  ;;  %v1606_v42 = vadd.f32 %v3192_v20, %v1090_v12  ;;  %v1608_v20 = vadd.f32 %v3204_v7, %v1095_v51 }
 0x708   :  { %v1997_v46 = vmax.f32 %v1981_v53, 0.0 }
 0x70a   :  { %v2007_v0 = vpack.c.bf16 %v1997_v46, %v1996_v55 }
 0x70c   :  { %2501 = vmatmul.msk.bf16.gmra.mxu1 %vm154_vm0, %v2007_v0 }
 0x70d   :  { %v1936_v14 = vpop.f32.mrf.mxu3 }
 0x70e   :  { %v1982_v17 = vadd.f32 %v1960_v2, %v1936_v14 }
 0x710   :  { %v1998_v21 = vmax.f32 %v1982_v17, 0.0 }
 0x715   :  { %v1938_v11 = vpop.f32.mrf.mxu3 }
 0x716   :  { %v1983_v23 = vadd.f32 %v1960_v2, %v1938_v11  ;;  %v1580_v2 = vpop.f32.mrf.mxu0  ;;  %v3306_v11 = vld [vmem:[%s3352_s7] ss:$0 sm:$0xff]  ;;  %s2666_s7 = smov [#allocation8]  }
 0x717   :  { %s2213_s18 = sshll.u32 %s2666_s7, 4  ;;  %s2214_s18 = int_to_ptr.vmem [resolvable:$true] %s2213_s18 }
 0x718   :  { %v1999_v27 = vmax.f32 %v1983_v23, 0.0 }
 0x71a   :  { %v2008_v58 = vpack.c.bf16 %v1999_v27, %v1998_v21 }
 0x71c   :  { %2502 = vmatmul.msk.bf16.gmra.mxu1 %vm154_vm0, %v2008_v58 }
 0x71d   :  { %v1941_v50 = vpop.f32.mrf.mxu3 }
 0x71e   :  { %v1984_v19 = vadd.f32 %v1961_v29, %v1941_v50 }
 0x720   :  { %v2000_v4 = vmax.f32 %v1984_v19, 0.0 }
 0x725   :  { %v1943_v56 = vpop.f32.mrf.mxu3 }
 0x726   :  { %v1985_v22 = vadd.f32 %v1961_v29, %v1943_v56  ;;  %v1583_v29 = vpop.f32.mrf.mxu0 }
 0x728   :  { %v2001_v43 = vmax.f32 %v1985_v22, 0.0 }
 0x72a   :  { %v2009_v30 = vpack.c.bf16 %v2001_v43, %v2000_v4  ;;  %v1100_v43 = vadd.f32 %v3123_v39, %v3121_v32  ;;  %v1103_v32 = vadd.f32 %v3130_v3, %v3125_v13  ;;  %v1105_v39 = vadd.f32 %v3134_v54, %v3132_v1 }
 0x72b   :  { %v1108_v1 = vadd.f32 %v3141_v36, %v3139_v9  ;;  %v1110_v54 = vadd.f32 %v3148_v6, %v3143_v63  ;;  %v1113_v6 = vadd.f32 %v3152_v25, %v3150_v16 }
 0x72c   :  { %2503 = vmatmul.msk.bf16.gmra.mxu1 %vm154_vm0, %v2009_v30 }
 0x72e   :  { %v1585_v31 = vpop.f32.mrf.mxu0 }
 0x739   :  { %v2060_v10 = vpop.f32.mrf.mxu1 }
 0x73a   :  { %v2100_v60 = vadd.f32 %v2060_v10, %v3173_v61  ;;  %v1610_v10 = vadd.f32 %v1580_v2, %v1100_v43 }
 0x741   :  { %v2062_v5 = vpop.f32.mrf.mxu1 }
 0x742   :  { %v2101_v45 = vadd.f32 %v2062_v5, %v1604_v35 }
 0x744   :  { %v2116_v57 = vmax.f32 %v2100_v60, %v2101_v45 }
 0x746   :  { %v2117_v40 = vrot.slane %v2116_v57, 4 }
 0x748   :  { %v2118_v52 = vmax.f32 %v2116_v57, %v2117_v40 }
 0x749   :  { %v2065_v24 = vpop.f32.mrf.mxu1 }
 0x74a   :  { %v2102_v48 = vadd.f32 %v2065_v24, %v3186_v59  ;;  %v2119_v53 = vrot.slane %v2118_v52, 2 }
 0x74c   :  { %v2120_v38 = vmax.f32 %v2118_v52, %v2119_v53  ;;  %v1588_v52 = vpop.f32.mrf.mxu0  ;;  %v1611_v53 = vadd.f32 %v1583_v29, %v1103_v32  ;;  %v3359_v32 = vld [vmem:[#allocation14_spill] sm:$0xff] }
 0x74e   :  { %v2121_v28 = vrot.slane %v2120_v38, 1 }
 0x750   :  { %v2122_v17 = vmax.f32 %v2120_v38, %v2121_v28 }
 0x751   :  { %v2067_v62 = vpop.f32.mrf.mxu1 }
 0x752   :  { %v2103_v61 = vadd.f32 %v2067_v62, %v1606_v42  ;;  %v2176_v58 = vadd.f32 %v3306_v11, %v2122_v17 }
 0x754   :  { %v2123_v55 = vmax.f32 %v2102_v48, %v2103_v61 }
 0x756   :  { %v2124_v8 = vrot.slane %v2123_v55, 4 }
 0x758   :  { %v2125_v47 = vmax.f32 %v2123_v55, %v2124_v8  ;;  %v1612_v55 = vadd.f32 %v1585_v31, %v1105_v39 }
 0x759   :  { %v2070_v46 = vpop.f32.mrf.mxu1 }
 0x75a   :  { %v2126_v0 = vrot.slane %v2125_v47, 2  ;;  %v2104_v14 = vadd.f32 %v2070_v46, %v3198_v37 }
 0x75c   :  { %v2127_v59 = vmax.f32 %v2125_v47, %v2126_v0 }
 0x75e   :  { %v2128_v44 = vrot.slane %v2127_v59, 1 }
 0x760   :  { %v2129_v23 = vmax.f32 %v2127_v59, %v2128_v44  ;;  %v1590_v59 = vpop.f32.mrf.mxu0 }
 0x761   :  { %v2072_v21 = vpop.f32.mrf.mxu1 }
 0x762   :  { %v2177_v27 = vadd.f32 %v3306_v11, %v2129_v23  ;;  %v2105_v37 = vadd.f32 %v2072_v21, %v1608_v20  ;;  %v1613_v21 = vadd.f32 %v1588_v52, %v1108_v1 }
 0x764   :  { %v2192_v50 = vrot.slane %v2177_v27, 7  ;;  %v2130_v33 = vmax.f32 %v2104_v14, %v2105_v37  ;;  %v1614_v27 = vadd.f32 %v1590_v59, %v1110_v54 }
 0x766   :  { %v2193_v15 = vsel %vm348_vm1, %v2192_v50, %v2176_v58  ;;  %v2131_v18 = vrot.slane %v2130_v33, 4 }
 0x768   :  { %v2132_v7 = vmax.f32 %v2130_v33, %v2131_v18  ;;  %v1593_v23 = vpop.f32.mrf.mxu0 }
 0x769   :  { %v2075_v19 = vpop.f32.mrf.mxu1 }
 0x76a   :  { %v2133_v56 = vrot.slane %v2132_v7, 2  ;;  %v2106_v22 = vadd.f32 %v2075_v19, %v3210_v49 }
 0x76c   :  { %v2134_v4 = vmax.f32 %v2132_v7, %v2133_v56 }
 0x76e   :  { %v2135_v30 = vrot.slane %v2134_v4, 1 }
 0x770   :  { %v2136_v60 = vmax.f32 %v2134_v4, %v2135_v30  ;;  %v1595_v9 = vpop.f32.mrf.mxu0  ;;  %v1115_v4 = vadd.f32 %v3159_v34, %v3156_v26  ;;  %v1615_v30 = vadd.f32 %v1593_v23, %v1113_v6  ;;  %v3357_v34 = vld [vmem:[#allocation12_spill] sm:$0xff] }
 0x771   :  { %v2077_v35 = vpop.f32.mrf.mxu1  ;;  %v1118_v52 = vadd.f32 %v3357_v34, %v3161_v41 }
 0x772   :  { %v2178_v5 = vadd.f32 %v3306_v11, %v2136_v60  ;;  %v2107_v45 = vadd.f32 %v2077_v35, %v1610_v10  ;;  %v1616_v10 = vadd.f32 %v1595_v9, %v1115_v4 }
 0x774   :  { %v2194_v57 = vrot.slane %v2178_v5, 6  ;;  %v2137_v24 = vmax.f32 %v2106_v22, %v2107_v45 }
 0x776   :  { %v2195_v48 = vsel %vm350_vm2, %v2194_v57, %v2193_v15  ;;  %v2138_v40 = vrot.slane %v2137_v24, 4 }
 0x778   :  { %v2139_v12 = vmax.f32 %v2137_v24, %v2138_v40  ;;  %v1598_v57 = vpop.f32.mrf.mxu0 }
 0x779   :  { %v2080_v42 = vpop.f32.mrf.mxu1 }
 0x77a   :  { %v2140_v49 = vrot.slane %v2139_v12, 2  ;;  %v2108_v46 = vadd.f32 %v2080_v42, %v1611_v53  ;;  %v1617_v53 = vadd.f32 %v1598_v57, %v1118_v52 }
 0x77c   :  { %v2141_v62 = vmax.f32 %v2139_v12, %v2140_v49 }
 0x77e   :  { %v2142_v61 = vrot.slane %v2141_v62, 1 }
 0x780   :  { %v2143_v8 = vmax.f32 %v2141_v62, %v2142_v61  ;;  %v1600_v26 = vpop.f32.mrf.mxu0  ;;  %v3358_v62 = vld [vmem:[#allocation13_spill] sm:$0xff] }
 0x781   :  { %v2082_v38 = vpop.f32.mrf.mxu1  ;;  %v1120_v39 = vadd.f32 %v3359_v32, %v3358_v62 }
 0x782   :  { %v2179_v47 = vadd.f32 %v3306_v11, %v2143_v8  ;;  %v2109_v0 = vadd.f32 %v2082_v38, %v1612_v55 }
 0x783   :  { %v1618_v55 = vadd.f32 %v1600_v26, %v1120_v39 }
 0x784   :  { %v2196_v14 = vrot.slane %v2179_v47, 5  ;;  %v2144_v28 = vmax.f32 %v2108_v46, %v2109_v0 }
 0x786   :  { %v2145_v2 = vrot.slane %v2144_v28, 4  ;;  %v2197_v51 = vsel %vm352_vm3, %v2196_v14, %v2195_v48 }
 0x788   :  { %v2146_v44 = vmax.f32 %v2144_v28, %v2145_v2 }
 0x789   :  { %v2085_v13 = vpop.f32.mrf.mxu1 }
 0x78a   :  { %v2147_v3 = vrot.slane %v2146_v44, 2  ;;  %v2110_v33 = vadd.f32 %v2085_v13, %v1613_v21 }
 0x78c   :  { %v2148_v20 = vmax.f32 %v2146_v44, %v2147_v3 }
 0x78e   :  { %v2149_v17 = vrot.slane %v2148_v20, 1 }
 0x790   :  { %v2150_v37 = vmax.f32 %v2148_v20, %v2149_v17 }
 0x791   :  { %v2087_v58 = vpop.f32.mrf.mxu1 }
 0x792   :  { %v2180_v50 = vadd.f32 %v3306_v11, %v2150_v37  ;;  %v2111_v15 = vadd.f32 %v2087_v58, %v1614_v27 }
 0x794   :  { %v2198_v18 = vrot.slane %v2180_v50, 4  ;;  %v2151_v29 = vmax.f32 %v2110_v33, %v2111_v15 }
 0x796   :  { %v2152_v7 = vrot.slane %v2151_v29, 4  ;;  %v2199_v19 = vsel %vm354_vm4, %v2198_v18, %v2197_v51 }
 0x798   :  { %v2153_v56 = vmax.f32 %v2151_v29, %v2152_v7 }
 0x799   :  { %v2090_v36 = vpop.f32.mrf.mxu1 }
 0x79a   :  { %v2154_v22 = vrot.slane %v2153_v56, 2  ;;  %v2112_v5 = vadd.f32 %v2090_v36, %v1615_v30 }
 0x79c   :  { %v2155_v63 = vmax.f32 %v2153_v56, %v2154_v22 }
 0x79e   :  { %v2156_v43 = vrot.slane %v2155_v63, 1 }
 0x7a0   :  { %v2157_v60 = vmax.f32 %v2155_v63, %v2156_v43 }
 0x7a1   :  { %v2092_v31 = vpop.f32.mrf.mxu1 }
 0x7a2   :  { %v2181_v35 = vadd.f32 %v3306_v11, %v2157_v60  ;;  %v2113_v45 = vadd.f32 %v2092_v31, %v1616_v10 }
 0x7a4   :  { %v2200_v24 = vrot.slane %v2181_v35, 3  ;;  %v2158_v48 = vmax.f32 %v2112_v5, %v2113_v45 }
 0x7a6   :  { %v2159_v40 = vrot.slane %v2158_v48, 4  ;;  %v2201_v12 = vsel %vm356_vm5, %v2200_v24, %v2199_v19 }
 0x7a8   :  { %v2160_v42 = vmax.f32 %v2158_v48, %v2159_v40 }
 0x7a9   :  { %v2095_v16 = vpop.f32.mrf.mxu1 }
 0x7aa   :  { %v2161_v25 = vrot.slane %v2160_v42, 2  ;;  %v2114_v46 = vadd.f32 %v2095_v16, %v1617_v53 }
 0x7ac   :  { %v2162_v49 = vmax.f32 %v2160_v42, %v2161_v25 }
 0x7ae   :  { %v2163_v61 = vrot.slane %v2162_v49, 1 }
 0x7b0   :  { %v2164_v8 = vmax.f32 %v2162_v49, %v2163_v61 }
 0x7b1   :  { %v2097_v38 = vpop.f32.mrf.mxu1 }
 0x7b2   :  { %v2182_v47 = vadd.f32 %v3306_v11, %v2164_v8  ;;  %v2115_v0 = vadd.f32 %v2097_v38, %v1618_v55 }
 0x7b4   :  { %v2202_v14 = vrot.slane %v2182_v47, 2  ;;  %v2165_v28 = vmax.f32 %v2114_v46, %v2115_v0 }
 0x7b6   :  { %v2166_v59 = vrot.slane %v2165_v28, 4  ;;  %v2203_v2 = vsel %vm358_vm6, %v2202_v14, %v2201_v12 }
 0x7b8   :  { %v2167_v51 = vmax.f32 %v2165_v28, %v2166_v59 }
 0x7ba   :  { %v2168_v44 = vrot.slane %v2167_v51, 2 }
 0x7bc   :  { %v2169_v41 = vmax.f32 %v2167_v51, %v2168_v44 }
 0x7be   :  { %v2170_v13 = vrot.slane %v2169_v41, 1 }
 0x7c0   :  { %v2171_v3 = vmax.f32 %v2169_v41, %v2170_v13 }
 0x7c2   :  { %v2183_v20 = vadd.f32 %v3306_v11, %v2171_v3 }
 0x7c4   :  { %v2204_v1 = vrot.slane %v2183_v20, 1 }
 0x7c6   :  { %v2205_v54 = vsel %vm360_vm7, %v2204_v1, %v2203_v2 }
 0x7c7   :  { %2207 = vst [vmem:[#allocation8] sm:$0xff] %v2205_v54 }
 0x7c8   :  { %2218 = dma.vmem_to_hbm [thread:$0]  %s2214_s18, 128, %s2216_s4, [#allocation4]  }
 0x7c9   :  { %2659 = dma.done.wait [#allocation4], 128  }
 0x7ca   :  { %2660 = vsyncadd [#allocation4], 4294967168 }
 0x7cb   :  { %2223 = vsyncpa [#allocation3], 1 }
 0x7cc   :  { %2224 = vsyncpa [#allocation6], 1 }
 0x7cd   :  { %2225 = vsyncpa [#allocation4], 1 }

</bundles_post_ra>
